<compile_context>
chip_gen: v7x
topology: tpu7x:2x2x1
jax: 0.10.0
libtpu: 0.0.40
codegen_flags: <defaults>
</compile_context>

<pallas_src>
import functools

import numpy as np
import jax
import jax.numpy as jnp
from jax import lax
from jax.experimental import pallas as pl
from jax.experimental.pallas import tpu as pltpu


# ---------------------------------------------------------------------------
# Model constants (representative mini-YOLOv3)
# ---------------------------------------------------------------------------
NUM_CLASSES = 2
NUM_ANCHORS = 3
NO = 5 + NUM_CLASSES                       # x, y, w, h, obj, classes  (= 7)
ANCHORS_PX = np.array([[2.0, 3.0], [4.0, 5.0], [6.0, 8.0]], np.float32)

C_PAD = 128          # every channel axis zero-padded to 128 lanes
H_IN = 16            # input spatial size of this mini network
H_OUT = H_IN // 2    # spatial size after the single stride-2 stage (= 8)
K = 3                # 3x3 convs
R = H_OUT * H_OUT    # flattened pixels per image after the stride-2 stage (64)
R1 = H_IN * H_IN     # flattened pixels per image for conv1's output (256)
STRIDE_PX = float(H_IN) / float(H_OUT)

OFS = 16                    # 8-aligned row offset of real data in plane scratch
Y1_ROWS = OFS + R           # 80:  conv2 tap row shifts are in [-9, 0]
Y2_ROWS = OFS + R + 16      # 96:  conv3 tap row shifts are in [-9, +9]


# ---------------------------------------------------------------------------
# Fused kernel: conv1 -> conv2(stride 2) -> conv3 -> 1x1 head -> YOLO decode
# ---------------------------------------------------------------------------
def fused_yolo_kernel(x1_ref, w1_ref, w2_ref, w3_ref, wh_ref, bias_ref,
                      dec_ref, grid_ref, o_ref, y1p_ref, y2p_ref, lhs_ref,
                      *, bb, stride_px):
    """One batch-block (bb images) per grid step.  Everything is 2-D slabs.

    x1_ref  : (bb*256, 128) bf16  conv1 im2col LHS (rows grouped image/parity
                                  plane/row-major 8x8; built in glue, cin=4)
    w1_ref  : (128, 128)   bf16   conv1 weights, BN scale folded
    w2_ref  : (1152, 128)  bf16   conv2 weights, tap-blocked rows, scale folded
    w3_ref  : (1152, 128)  bf16   conv3 weights, tap-blocked rows, scale folded
    wh_ref  : (128, 128)   bf16   1x1 head weights
    bias_ref: (8, 128)     f32    rows = b1, b2, b3, b_head
    dec_ref : (8, 128)     f32    rows = xy_mask, wh_mask, anchor_px
    grid_ref: (bb*64, 128) f32    per-row/lane grid-cell offset * stride
    o_ref   : (bb*64, 128) f32    decoded predictions (lane-dense)
    y1p_ref : (bb*4, 80, 128) f32 scratch: conv1 output parity planes (padded)
    y2p_ref : (bb, 96, 128)  f32  scratch: conv2 output (padded, flattened)
    lhs_ref : (bb*64, 1152) bf16  scratch: im2col LHS shared by conv2/conv3
    """
    f32, bf16 = jnp.float32, jnp.bfloat16
    HH = H_OUT

    bias = bias_ref[...]
    b1, b2, b3, bh = bias[0:1, :], bias[1:2, :], bias[2:3, :], bias[3:4, :]

    def leaky(v):
        return jnp.maximum(v, 0.1 * v)            # LeakyReLU(0.1), one VALU op

    # Zero ONLY the halo rows that conv taps may read but stores never write.
    # Scratch persists across grid steps, so this runs every step (do NOT gate
    # on program_id==0: with 'parallel' semantics each v7x core owns its own
    # scratch and only sees part of the grid).
    zeros8 = jnp.zeros((8, C_PAD), f32)
    for pidx in range(bb * 4):
        y1p_ref[pidx, pl.ds(OFS - 8, 8), :] = zeros8
    for ib in range(bb):
        y2p_ref[ib, pl.ds(OFS - 8, 8), :] = zeros8
        y2p_ref[ib, pl.ds(OFS + R, 8), :] = zeros8

    # ---- conv1: 3x3 / s1 / p1 (+folded BN, leaky) --------------------------
    # im2col done in glue (36 real lanes): ONE (bb*256,128)@(128,128) dot.
    y1 = jnp.dot(x1_ref[...], w1_ref[...], preferred_element_type=f32)
    y1 = leaky(y1 + b1)
    # Rows arrive plane-major, so scatter straight into the padded per-plane
    # scratch; the stride-2 conv2 below then needs no strided access at all.
    for ib in range(bb):
        for pp in range(4):
            r0 = ib * R1 + pp * R
            y1p_ref[ib * 4 + pp, pl.ds(OFS, R), :] = y1[r0:r0 + R, :]

    # Lane-wrap masks for x-shifted taps (rows are flattened oy*8+ox).
    ridx = lax.broadcasted_iota(jnp.int32, (R, C_PAD), 0)
    col = ridx & (HH - 1)
    m_left = col != 0            # keep, for taps with dx == -1
    m_right = col != HH - 1      # keep, for taps with dx == +1

    # ---- conv2: 3x3 / s2 / p1 (+folded BN, leaky) --------------------------
    # Stride 2 == parity-plane lookup; each tap is one shifted 2-D read that
    # lands in its own 128-lane column block of the im2col LHS scratch.
    for ky in range(K):
        for kx in range(K):
            tap = ky * K + kx
            plane = ((ky + 1) % 2) * 2 + ((kx + 1) % 2)
            sy = -1 if ky == 0 else 0
            sx = -1 if kx == 0 else 0
            for ib in range(bb):
                t = y1p_ref[ib * 4 + plane, pl.ds(OFS + sy * HH + sx, R), :]
                if sx == -1:
                    t = jnp.where(m_left, t, 0.0)
                lhs_ref[pl.ds(ib * R, R),
                        pl.ds(tap * C_PAD, C_PAD)] = t.astype(bf16)
    y2 = jnp.dot(lhs_ref[...], w2_ref[...], preferred_element_type=f32)
    y2 = leaky(y2 + b2)
    for ib in range(bb):
        y2p_ref[ib, pl.ds(OFS, R), :] = y2[ib * R:(ib + 1) * R, :]

    # ---- conv3: 3x3 / s1 / p1 (+folded BN, leaky) --------------------------
    for ky in range(K):
        for kx in range(K):
            tap = ky * K + kx
            dy, dx = ky - 1, kx - 1
            for ib in range(bb):
                t = y2p_ref[ib, pl.ds(OFS + dy * HH + dx, R), :]
                if dx == -1:
                    t = jnp.where(m_left, t, 0.0)
                elif dx == 1:
                    t = jnp.where(m_right, t, 0.0)
                lhs_ref[pl.ds(ib * R, R),
                        pl.ds(tap * C_PAD, C_PAD)] = t.astype(bf16)
    y3 = jnp.dot(lhs_ref[...], w3_ref[...], preferred_element_type=f32)
    y3 = leaky(y3 + b3)

    # ---- 1x1 detection head (+bias, no activation) -------------------------
    logits = jnp.dot(y3.astype(bf16), wh_ref[...],
                     preferred_element_type=f32) + bh

    # ---- YOLO decode (lane-constant tables; grid*stride precomputed) -------
    dec = dec_ref[...]
    xy_m = dec[0:1, :] > 0.5            # lanes holding x/y offsets
    wh_m = dec[1:2, :] > 0.5            # lanes holding w/h logits
    anc = dec[2:3, :]                   # anchor size (px) on wh lanes, else 1
    sig = jax.nn.sigmoid(logits)
    xy = sig * stride_px + grid_ref[...]
    wh = jnp.exp(jnp.where(wh_m, logits, 0.0)) * anc   # exp only on wh lanes
    o_ref[...] = jnp.where(xy_m, xy, jnp.where(wh_m, wh, sig))


# ---------------------------------------------------------------------------
# Parameter packing (lane padding + BN-scale folding) and decode constants
# ---------------------------------------------------------------------------
def _fold(w, scale):
    return w * scale.reshape((1,) * (w.ndim - 1) + (-1,))


def _pack_dense_weight(w, scale):
    """(kh,kw,cin,cout) -> (128,128): compact im2col rows (tap*cin + c).
    Used for conv1 (9*4=36 rows) and the 1x1 head (32 rows)."""
    kh, kw, cin, cout = w.shape
    w_eff = _fold(w, scale).reshape(kh * kw * cin, cout)
    wp = jnp.zeros((C_PAD, C_PAD), jnp.float32)
    wp = wp.at[:kh * kw * cin, :cout].set(w_eff)
    return wp.astype(jnp.bfloat16)


def _pack_tapblocked_weight(w, scale):
    """(3,3,cin,cout) -> (9*128,128): each tap owns a 128-row block matching
    the in-kernel im2col LHS column blocks."""
    kh, kw, cin, cout = w.shape
    w_eff = _fold(w, scale).reshape(kh * kw, cin, cout)
    wp = jnp.zeros((kh * kw, C_PAD, C_PAD), jnp.float32)
    wp = wp.at[:, :cin, :cout].set(w_eff)
    return wp.reshape(kh * kw * C_PAD, C_PAD).astype(jnp.bfloat16)


def _pack_bias_rows(*biases):
    tbl = jnp.zeros((8, C_PAD), jnp.float32)
    for i, b in enumerate(biases):
        tbl = tbl.at[i, :b.size].set(b.reshape(-1))
    return tbl


def _decode_tables(bb):
    xy_mask = np.zeros((C_PAD,), np.float32)
    wh_mask = np.zeros((C_PAD,), np.float32)
    anc = np.ones((C_PAD,), np.float32)
    is_x = np.zeros((C_PAD,), np.float32)
    is_y = np.zeros((C_PAD,), np.float32)
    for a in range(NUM_ANCHORS):
        base = a * NO
        xy_mask[base + 0] = 1.0; is_x[base + 0] = 1.0
        xy_mask[base + 1] = 1.0; is_y[base + 1] = 1.0
        wh_mask[base + 2] = 1.0; anc[base + 2] = ANCHORS_PX[a, 0]
        wh_mask[base + 3] = 1.0; anc[base + 3] = ANCHORS_PX[a, 1]
    dec = np.zeros((8, C_PAD), np.float32)
    dec[0], dec[1], dec[2] = xy_mask, wh_mask, anc
    # grid-cell offsets * stride, per flattened row (oy*8+ox) and lane
    oy = np.repeat(np.arange(H_OUT, dtype=np.float32), H_OUT)
    ox = np.tile(np.arange(H_OUT, dtype=np.float32), H_OUT)
    g = (np.outer(oy, is_y) + np.outer(ox, is_x)) * STRIDE_PX        # (64,128)
    g = np.tile(g, (bb, 1))                                          # (bb*64,128)
    return jnp.asarray(dec), jnp.asarray(g)


def _build_conv1_lhs(x_nhwc, bb):
    """NHWC input -> (B//bb, bb*256, 128) bf16 conv1 im2col LHS.  Rows are
    grouped (image, parity plane a*2+b, oy, ox) so conv1's matmul output
    scatters straight into the stride-2 parity-plane scratch."""
    B, H, W, cin = x_nhwc.shape
    xpad = jnp.pad(x_nhwc, ((0, 0), (1, 1), (1, 1), (0, 0)))
    taps = [xpad[:, ky:ky + H, kx:kx + W, :]
            for ky in range(K) for kx in range(K)]
    pat = jnp.concatenate(taps, axis=-1)                       # (B,H,W,9*cin)
    pat = pat.reshape(B, H // 2, 2, W // 2, 2, K * K * cin)
    pat = pat.transpose(0, 2, 4, 1, 3, 5)                      # (B,a,b,m,n,·)
    pat = pat.reshape(B, R1, K * K * cin)
    pat = jnp.pad(pat, ((0, 0), (0, 0), (0, C_PAD - K * K * cin)))
    return pat.reshape(B // bb, bb * R1, C_PAD).astype(jnp.bfloat16)


# ---------------------------------------------------------------------------
# Forward pass (eval mode of the torch wrapper: returns self.model(x))
# ---------------------------------------------------------------------------
def yolov3_forward(x_nchw, params):
    x = jnp.transpose(x_nchw, (0, 2, 3, 1)).astype(jnp.float32)   # NCHW->NHWC
    b, h, w, cin = x.shape
    assert h == H_IN and w == H_IN and K * K * cin <= C_PAD
    bb = 2 if b % 2 == 0 else 1          # batch block; grid stays >= 2 for v7x
    nb = b // bb

    w1, s1, b1 = params["l1"]
    w2, s2, b2 = params["l2"]
    w3, s3, b3 = params["l3"]
    whd, shd, bhd = params["head"]

    x1 = _build_conv1_lhs(x, bb)                        # (nb, bb*256, 128)
    w1p = _pack_dense_weight(w1, s1)                    # (128, 128)
    w2p = _pack_tapblocked_weight(w2, s2)               # (1152, 128)
    w3p = _pack_tapblocked_weight(w3, s3)               # (1152, 128)
    whp = _pack_dense_weight(whd, shd)                  # (128, 128)
    bias_tbl = _pack_bias_rows(b1, b2, b3, bhd)         # (8, 128)
    dec, grid_tbl = _decode_tables(bb)                  # (8,128), (bb*64,128)

    kernel = functools.partial(fused_yolo_kernel, bb=bb, stride_px=STRIDE_PX)
    out = pl.pallas_call(
        kernel,
        out_shape=jax.ShapeDtypeStruct((nb, bb * R, C_PAD), jnp.float32),
        grid=(nb,),
        in_specs=[
            pl.BlockSpec((None, bb * R1, C_PAD), lambda i: (i, 0, 0)),
            pl.BlockSpec((C_PAD, C_PAD), lambda i: (0, 0)),
            pl.BlockSpec((K * K * C_PAD, C_PAD), lambda i: (0, 0)),
            pl.BlockSpec((K * K * C_PAD, C_PAD), lambda i: (0, 0)),
            pl.BlockSpec((C_PAD, C_PAD), lambda i: (0, 0)),
            pl.BlockSpec((8, C_PAD), lambda i: (0, 0)),
            pl.BlockSpec((8, C_PAD), lambda i: (0, 0)),
            pl.BlockSpec((bb * R, C_PAD), lambda i: (0, 0)),
        ],
        out_specs=pl.BlockSpec((None, bb * R, C_PAD), lambda i: (i, 0, 0)),
        scratch_shapes=[
            pltpu.VMEM((bb * 4, Y1_ROWS, C_PAD), jnp.float32),   # conv1 planes
            pltpu.VMEM((bb, Y2_ROWS, C_PAD), jnp.float32),       # conv2 output
            pltpu.VMEM((bb * R, K * K * C_PAD), jnp.bfloat16),   # im2col LHS
        ],
        compiler_params=pltpu.CompilerParams(
            dimension_semantics=("parallel",)),   # batch blocks independent
    )(x1, w1p, w2p, w3p, whp, bias_tbl, dec, grid_tbl)

    # strip lane padding and match the torch layout:
    # (B,H,W,A*NO) -> (B,A,H,W,NO) -> (B, A*H*W, NO)
    p = out.reshape(b, H_OUT, H_OUT, C_PAD)[..., :NUM_ANCHORS * NO]
    p = p.reshape(b, H_OUT, H_OUT, NUM_ANCHORS, NO).transpose(0, 3, 1, 2, 4)
    return p.reshape(b, NUM_ANCHORS * H_OUT * H_OUT, NO)


# ---------------------------------------------------------------------------
# Synthetic parameters (deterministic)
# ---------------------------------------------------------------------------
def init_conv_block(key, kh, kw, cin, cout):
    k1, k2, k3, k4, k5 = jax.random.split(key, 5)
    w = jax.random.normal(k1, (kh, kw, cin, cout), jnp.float32)
    w = w * (1.0 / (kh * kw * cin)) ** 0.5
    gamma = jax.random.uniform(k2, (cout,), jnp.float32, 0.5, 1.5)
    beta = 0.1 * jax.random.normal(k3, (cout,), jnp.float32)
    mean = 0.1 * jax.random.normal(k4, (cout,), jnp.float32)
    var = jax.random.uniform(k5, (cout,), jnp.float32, 0.5, 1.5)
    eps = 1e-5
    scale = gamma / jnp.sqrt(var + eps)           # folded BN
    bias = beta - mean * scale
    return w, scale.reshape(1, cout), bias.reshape(1, cout)


def init_params(key, cin):
    keys = jax.random.split(key, 4)
    params = {}
    params["l1"] = init_conv_block(keys[0], 3, 3, cin, 16)
    params["l2"] = init_conv_block(keys[1], 3, 3, 16, 32)
    params["l3"] = init_conv_block(keys[2], 3, 3, 32, 32)
    # detection head: 1x1 conv with bias, no BN, no activation
    k1, k2 = jax.random.split(keys[3])
    head_cout = NUM_ANCHORS * NO
    hw = jax.random.normal(k1, (1, 1, 32, head_cout), jnp.float32) * (1.0 / 32.0) ** 0.5
    hb = 0.1 * jax.random.normal(k2, (head_cout,), jnp.float32)
    params["head"] = (hw, jnp.ones((1, head_cout), jnp.float32),
                      hb.reshape(1, head_cout))
    return params


# ---------------------------------------------------------------------------
# Pure-JAX reference (bf16 matmul operands / f32 accumulate, BN scale folded
# into the f32 weights exactly like the kernel packing does)
# ---------------------------------------------------------------------------
def _conv_ref(x, w, scale, bias, *, stride, pad, leaky):
    w_eff = w * scale.reshape(1, 1, 1, -1)        # exact fold in f32
    y = lax.conv_general_dilated(
        x.astype(jnp.bfloat16), w_eff.astype(jnp.bfloat16),
        window_strides=(stride, stride),
        padding=[(pad, pad), (pad, pad)],
        dimension_numbers=("NHWC", "HWIO", "NHWC"),
        preferred_element_type=jnp.float32)
    y = y + bias.reshape(1, 1, 1, -1)
    if leaky:
        y = jnp.maximum(y, 0.1 * y)
    return y


def yolov3_reference(x_nchw, params):
    x = jnp.transpose(x_nchw, (0, 2, 3, 1)).astype(jnp.float32)
    w, s, bb = params["l1"]; x = _conv_ref(x, w, s, bb, stride=1, pad=1, leaky=True)
    w, s, bb = params["l2"]; x = _conv_ref(x, w, s, bb, stride=2, pad=1, leaky=True)
    w, s, bb = params["l3"]; x = _conv_ref(x, w, s, bb, stride=1, pad=1, leaky=True)
    w, s, bb = params["head"]; p = _conv_ref(x, w, s, bb, stride=1, pad=0, leaky=False)

    b, h, wd, _ = p.shape
    p = p.reshape(b, h, wd, NUM_ANCHORS, NO).transpose(0, 3, 1, 2, 4)  # (B,A,H,W,NO)
    stride_px = x_nchw.shape[2] / h
    gy, gx = jnp.meshgrid(jnp.arange(h, dtype=jnp.float32),
                          jnp.arange(wd, dtype=jnp.float32), indexing="ij")
    grid = jnp.stack([gx, gy], axis=-1)[None, None]                    # (1,1,h,w,2)
    sig = jax.nn.sigmoid(p)
    xy = (sig[..., 0:2] + grid) * stride_px
    anc = jnp.asarray(ANCHORS_PX)[None, :, None, None, :]
    wh = jnp.exp(p[..., 2:4]) * anc
    out = jnp.concatenate([xy, wh, sig[..., 4:]], axis=-1)
    return out.reshape(b, NUM_ANCHORS * h * wd, NO)


if __name__ == "__main__":
    key = jax.random.PRNGKey(0)
    k_x, k_p = jax.random.split(key)
    B = 4                                                             # bb=2, grid=2
    x = jax.random.normal(k_x, (B, 4, H_IN, H_IN), jnp.float32)       # NCHW input
    params = init_params(k_p, cin=4)

    fwd = jax.jit(yolov3_forward)
    out = fwd(x, params)
    jax.block_until_ready(out)

    assert out.shape == (B, NUM_ANCHORS * H_OUT * H_OUT, NO), out.shape
    assert bool(jnp.all(jnp.isfinite(out)))

    ref = yolov3_reference(x, params)
    max_err = float(jnp.max(jnp.abs(out - ref)))
    assert bool(jnp.allclose(out, ref, rtol=2e-2, atol=2e-2)), f"max|diff|={max_err}"

    print("KERNEL_OK")
</pallas_src>

<mosaic_0001>
module attributes {stable_mosaic.version = 11 : i64} {
  func.func @fused_yolo_kernel(%arg0: i32, %arg1: memref<1x512x128xbf16, #tpu.memory_space<vmem>>, %arg2: memref<128x128xbf16, #tpu.memory_space<vmem>>, %arg3: memref<1152x128xbf16, #tpu.memory_space<vmem>>, %arg4: memref<1152x128xbf16, #tpu.memory_space<vmem>>, %arg5: memref<128x128xbf16, #tpu.memory_space<vmem>>, %arg6: memref<8x128xf32, #tpu.memory_space<vmem>>, %arg7: memref<8x128xf32, #tpu.memory_space<vmem>>, %arg8: memref<128x128xf32, #tpu.memory_space<vmem>>, %arg9: memref<1x128x128xf32, #tpu.memory_space<vmem>>, %arg10: memref<8x80x128xf32, #tpu.memory_space<vmem>>, %arg11: memref<2x96x128xf32, #tpu.memory_space<vmem>>, %arg12: memref<128x1152xbf16, #tpu.memory_space<vmem>>) attributes {dimension_semantics = [#tpu.dimension_semantics<parallel>], iteration_bounds = array<i64: 2>, scalar_prefetch = 0 : i64, scratch_operands = 3 : i64, tpu.core_type = #tpu.core_type<tc>, window_params = [{transform_indices = @transform_0, window_bounds = array<i64: 1, 512, 128>}, {pipeline_mode = #tpu.pipeline_mode<synchronous>, transform_indices = @transform_1, window_bounds = array<i64: 128, 128>}, {pipeline_mode = #tpu.pipeline_mode<synchronous>, transform_indices = @transform_2, window_bounds = array<i64: 1152, 128>}, {pipeline_mode = #tpu.pipeline_mode<synchronous>, transform_indices = @transform_3, window_bounds = array<i64: 1152, 128>}, {pipeline_mode = #tpu.pipeline_mode<synchronous>, transform_indices = @transform_4, window_bounds = array<i64: 128, 128>}, {pipeline_mode = #tpu.pipeline_mode<synchronous>, transform_indices = @transform_5, window_bounds = array<i64: 8, 128>}, {pipeline_mode = #tpu.pipeline_mode<synchronous>, transform_indices = @transform_6, window_bounds = array<i64: 8, 128>}, {pipeline_mode = #tpu.pipeline_mode<synchronous>, transform_indices = @transform_7, window_bounds = array<i64: 128, 128>}, {transform_indices = @transform_8, window_bounds = array<i64: 1, 128, 128>}]} {
    %c0 = arith.constant 0 : index
    %c0_0 = arith.constant 0 : index
    %0 = vector.load %arg6[%c0, %c0_0] : memref<8x128xf32, #tpu.memory_space<vmem>>, vector<8x128xf32>
    %1 = vector.extract_strided_slice %0 {offsets = [0, 0], sizes = [1, 128], strides = [1, 1]} : vector<8x128xf32> to vector<1x128xf32>
    %2 = vector.extract_strided_slice %0 {offsets = [1, 0], sizes = [1, 128], strides = [1, 1]} : vector<8x128xf32> to vector<1x128xf32>
    %3 = vector.extract_strided_slice %0 {offsets = [2, 0], sizes = [1, 128], strides = [1, 1]} : vector<8x128xf32> to vector<1x128xf32>
    %4 = vector.extract_strided_slice %0 {offsets = [3, 0], sizes = [1, 128], strides = [1, 1]} : vector<8x128xf32> to vector<1x128xf32>
    %cst = arith.constant 0.000000e+00 : f32
    %5 = vector.broadcast %cst : f32 to vector<8x128xf32>
    %c0_1 = arith.constant 0 : index
    %c8 = arith.constant 8 : index
    %c0_2 = arith.constant 0 : index
    %6 = vector.load %arg10[%c0_1, %c8, %c0_2] : memref<8x80x128xf32, #tpu.memory_space<vmem>>, vector<1x8x128xf32>
    %7 = vector.shape_cast %6 : vector<1x8x128xf32> to vector<8x128xf32>
    %8 = vector.shape_cast %5 : vector<8x128xf32> to vector<1x8x128xf32>
    tpu.vector_store %arg10[%c0_1, %c8, %c0_2], %8 {strides = array<i32>} : memref<8x80x128xf32, #tpu.memory_space<vmem>>, vector<1x8x128xf32>,
    %c1 = arith.constant 1 : index
    %c8_3 = arith.constant 8 : index
    %c0_4 = arith.constant 0 : index
    %9 = vector.load %arg10[%c1, %c8_3, %c0_4] : memref<8x80x128xf32, #tpu.memory_space<vmem>>, vector<1x8x128xf32>
    %10 = vector.shape_cast %9 : vector<1x8x128xf32> to vector<8x128xf32>
    %11 = vector.shape_cast %5 : vector<8x128xf32> to vector<1x8x128xf32>
    tpu.vector_store %arg10[%c1, %c8_3, %c0_4], %11 {strides = array<i32>} : memref<8x80x128xf32, #tpu.memory_space<vmem>>, vector<1x8x128xf32>,
    %c2 = arith.constant 2 : index
    %c8_5 = arith.constant 8 : index
    %c0_6 = arith.constant 0 : index
    %12 = vector.load %arg10[%c2, %c8_5, %c0_6] : memref<8x80x128xf32, #tpu.memory_space<vmem>>, vector<1x8x128xf32>
    %13 = vector.shape_cast %12 : vector<1x8x128xf32> to vector<8x128xf32>
    %14 = vector.shape_cast %5 : vector<8x128xf32> to vector<1x8x128xf32>
    tpu.vector_store %arg10[%c2, %c8_5, %c0_6], %14 {strides = array<i32>} : memref<8x80x128xf32, #tpu.memory_space<vmem>>, vector<1x8x128xf32>,
    %c3 = arith.constant 3 : index
    %c8_7 = arith.constant 8 : index
    %c0_8 = arith.constant 0 : index
    %15 = vector.load %arg10[%c3, %c8_7, %c0_8] : memref<8x80x128xf32, #tpu.memory_space<vmem>>, vector<1x8x128xf32>
    %16 = vector.shape_cast %15 : vector<1x8x128xf32> to vector<8x128xf32>
    %17 = vector.shape_cast %5 : vector<8x128xf32> to vector<1x8x128xf32>
    tpu.vector_store %arg10[%c3, %c8_7, %c0_8], %17 {strides = array<i32>} : memref<8x80x128xf32, #tpu.memory_space<vmem>>, vector<1x8x128xf32>,
    %c4 = arith.constant 4 : index
    %c8_9 = arith.constant 8 : index
    %c0_10 = arith.constant 0 : index
    %18 = vector.load %arg10[%c4, %c8_9, %c0_10] : memref<8x80x128xf32, #tpu.memory_space<vmem>>, vector<1x8x128xf32>
    %19 = vector.shape_cast %18 : vector<1x8x128xf32> to vector<8x128xf32>
    %20 = vector.shape_cast %5 : vector<8x128xf32> to vector<1x8x128xf32>
    tpu.vector_store %arg10[%c4, %c8_9, %c0_10], %20 {strides = array<i32>} : memref<8x80x128xf32, #tpu.memory_space<vmem>>, vector<1x8x128xf32>,
    %c5 = arith.constant 5 : index
    %c8_11 = arith.constant 8 : index
    %c0_12 = arith.constant 0 : index
    %21 = vector.load %arg10[%c5, %c8_11, %c0_12] : memref<8x80x128xf32, #tpu.memory_space<vmem>>, vector<1x8x128xf32>
    %22 = vector.shape_cast %21 : vector<1x8x128xf32> to vector<8x128xf32>
    %23 = vector.shape_cast %5 : vector<8x128xf32> to vector<1x8x128xf32>
    tpu.vector_store %arg10[%c5, %c8_11, %c0_12], %23 {strides = array<i32>} : memref<8x80x128xf32, #tpu.memory_space<vmem>>, vector<1x8x128xf32>,
    %c6 = arith.constant 6 : index
    %c8_13 = arith.constant 8 : index
    %c0_14 = arith.constant 0 : index
    %24 = vector.load %arg10[%c6, %c8_13, %c0_14] : memref<8x80x128xf32, #tpu.memory_space<vmem>>, vector<1x8x128xf32>
    %25 = vector.shape_cast %24 : vector<1x8x128xf32> to vector<8x128xf32>
    %26 = vector.shape_cast %5 : vector<8x128xf32> to vector<1x8x128xf32>
    tpu.vector_store %arg10[%c6, %c8_13, %c0_14], %26 {strides = array<i32>} : memref<8x80x128xf32, #tpu.memory_space<vmem>>, vector<1x8x128xf32>,
    %c7 = arith.constant 7 : index
    %c8_15 = arith.constant 8 : index
    %c0_16 = arith.constant 0 : index
    %27 = vector.load %arg10[%c7, %c8_15, %c0_16] : memref<8x80x128xf32, #tpu.memory_space<vmem>>, vector<1x8x128xf32>
    %28 = vector.shape_cast %27 : vector<1x8x128xf32> to vector<8x128xf32>
    %29 = vector.shape_cast %5 : vector<8x128xf32> to vector<1x8x128xf32>
    tpu.vector_store %arg10[%c7, %c8_15, %c0_16], %29 {strides = array<i32>} : memref<8x80x128xf32, #tpu.memory_space<vmem>>, vector<1x8x128xf32>,
    %c0_17 = arith.constant 0 : index
    %c8_18 = arith.constant 8 : index
    %c0_19 = arith.constant 0 : index
    %30 = vector.load %arg11[%c0_17, %c8_18, %c0_19] : memref<2x96x128xf32, #tpu.memory_space<vmem>>, vector<1x8x128xf32>
    %31 = vector.shape_cast %30 : vector<1x8x128xf32> to vector<8x128xf32>
    %32 = vector.shape_cast %5 : vector<8x128xf32> to vector<1x8x128xf32>
    tpu.vector_store %arg11[%c0_17, %c8_18, %c0_19], %32 {strides = array<i32>} : memref<2x96x128xf32, #tpu.memory_space<vmem>>, vector<1x8x128xf32>,
    %c0_20 = arith.constant 0 : index
    %c80 = arith.constant 80 : index
    %c0_21 = arith.constant 0 : index
    %33 = vector.load %arg11[%c0_20, %c80, %c0_21] : memref<2x96x128xf32, #tpu.memory_space<vmem>>, vector<1x8x128xf32>
    %34 = vector.shape_cast %33 : vector<1x8x128xf32> to vector<8x128xf32>
    %35 = vector.shape_cast %5 : vector<8x128xf32> to vector<1x8x128xf32>
    tpu.vector_store %arg11[%c0_20, %c80, %c0_21], %35 {strides = array<i32>} : memref<2x96x128xf32, #tpu.memory_space<vmem>>, vector<1x8x128xf32>,
    %c1_22 = arith.constant 1 : index
    %c8_23 = arith.constant 8 : index
    %c0_24 = arith.constant 0 : index
    %36 = vector.load %arg11[%c1_22, %c8_23, %c0_24] : memref<2x96x128xf32, #tpu.memory_space<vmem>>, vector<1x8x128xf32>
    %37 = vector.shape_cast %36 : vector<1x8x128xf32> to vector<8x128xf32>
    %38 = vector.shape_cast %5 : vector<8x128xf32> to vector<1x8x128xf32>
    tpu.vector_store %arg11[%c1_22, %c8_23, %c0_24], %38 {strides = array<i32>} : memref<2x96x128xf32, #tpu.memory_space<vmem>>, vector<1x8x128xf32>,
    %c1_25 = arith.constant 1 : index
    %c80_26 = arith.constant 80 : index
    %c0_27 = arith.constant 0 : index
    %39 = vector.load %arg11[%c1_25, %c80_26, %c0_27] : memref<2x96x128xf32, #tpu.memory_space<vmem>>, vector<1x8x128xf32>
    %40 = vector.shape_cast %39 : vector<1x8x128xf32> to vector<8x128xf32>
    %41 = vector.shape_cast %5 : vector<8x128xf32> to vector<1x8x128xf32>
    tpu.vector_store %arg11[%c1_25, %c80_26, %c0_27], %41 {strides = array<i32>} : memref<2x96x128xf32, #tpu.memory_space<vmem>>, vector<1x8x128xf32>,
    %c0_28 = arith.constant 0 : index
    %c0_29 = arith.constant 0 : index
    %c0_30 = arith.constant 0 : index
    %42 = vector.load %arg1[%c0_28, %c0_29, %c0_30] : memref<1x512x128xbf16, #tpu.memory_space<vmem>>, vector<1x512x128xbf16>
    %43 = vector.shape_cast %42 : vector<1x512x128xbf16> to vector<512x128xbf16>
    %c0_31 = arith.constant 0 : index
    %c0_32 = arith.constant 0 : index
    %44 = vector.load %arg2[%c0_31, %c0_32] : memref<128x128xbf16, #tpu.memory_space<vmem>>, vector<128x128xbf16>
    %cst_33 = arith.constant dense<0.000000e+00> : vector<512x128xf32>
    %45 = tpu.matmul %43, %44, %cst_33 {dimension_numbers = #tpu.dot_dimension_numbers<[1], [0], [0], [1], [0, 0, 1, 1], [], []>} : vector<512x128xbf16>, vector<128x128xbf16>, vector<512x128xf32> -> vector<512x128xf32>
    %46 = vector.broadcast %1 : vector<1x128xf32> to vector<512x128xf32>
    %47 = arith.addf %45, %46 : vector<512x128xf32>
    %cst_34 = arith.constant 1.000000e-01 : f32
    %48 = vector.broadcast %cst_34 : f32 to vector<512x128xf32>
    %49 = arith.mulf %48, %47 : vector<512x128xf32>
    %50 = arith.maximumf %47, %49 : vector<512x128xf32>
    %51 = vector.extract_strided_slice %50 {offsets = [0, 0], sizes = [64, 128], strides = [1, 1]} : vector<512x128xf32> to vector<64x128xf32>
    %c0_35 = arith.constant 0 : index
    %c16 = arith.constant 16 : index
    %c0_36 = arith.constant 0 : index
    %52 = vector.load %arg10[%c0_35, %c16, %c0_36] : memref<8x80x128xf32, #tpu.memory_space<vmem>>, vector<1x64x128xf32>
    %53 = vector.shape_cast %52 : vector<1x64x128xf32> to vector<64x128xf32>
    %54 = vector.shape_cast %51 : vector<64x128xf32> to vector<1x64x128xf32>
    tpu.vector_store %arg10[%c0_35, %c16, %c0_36], %54 {strides = array<i32>} : memref<8x80x128xf32, #tpu.memory_space<vmem>>, vector<1x64x128xf32>,
    %55 = vector.extract_strided_slice %50 {offsets = [64, 0], sizes = [64, 128], strides = [1, 1]} : vector<512x128xf32> to vector<64x128xf32>
    %c1_37 = arith.constant 1 : index
    %c16_38 = arith.constant 16 : index
    %c0_39 = arith.constant 0 : index
    %56 = vector.load %arg10[%c1_37, %c16_38, %c0_39] : memref<8x80x128xf32, #tpu.memory_space<vmem>>, vector<1x64x128xf32>
    %57 = vector.shape_cast %56 : vector<1x64x128xf32> to vector<64x128xf32>
    %58 = vector.shape_cast %55 : vector<64x128xf32> to vector<1x64x128xf32>
    tpu.vector_store %arg10[%c1_37, %c16_38, %c0_39], %58 {strides = array<i32>} : memref<8x80x128xf32, #tpu.memory_space<vmem>>, vector<1x64x128xf32>,
    %59 = vector.extract_strided_slice %50 {offsets = [128, 0], sizes = [64, 128], strides = [1, 1]} : vector<512x128xf32> to vector<64x128xf32>
    %c2_40 = arith.constant 2 : index
    %c16_41 = arith.constant 16 : index
    %c0_42 = arith.constant 0 : index
    %60 = vector.load %arg10[%c2_40, %c16_41, %c0_42] : memref<8x80x128xf32, #tpu.memory_space<vmem>>, vector<1x64x128xf32>
    %61 = vector.shape_cast %60 : vector<1x64x128xf32> to vector<64x128xf32>
    %62 = vector.shape_cast %59 : vector<64x128xf32> to vector<1x64x128xf32>
    tpu.vector_store %arg10[%c2_40, %c16_41, %c0_42], %62 {strides = array<i32>} : memref<8x80x128xf32, #tpu.memory_space<vmem>>, vector<1x64x128xf32>,
    %63 = vector.extract_strided_slice %50 {offsets = [192, 0], sizes = [64, 128], strides = [1, 1]} : vector<512x128xf32> to vector<64x128xf32>
    %c3_43 = arith.constant 3 : index
    %c16_44 = arith.constant 16 : index
    %c0_45 = arith.constant 0 : index
    %64 = vector.load %arg10[%c3_43, %c16_44, %c0_45] : memref<8x80x128xf32, #tpu.memory_space<vmem>>, vector<1x64x128xf32>
    %65 = vector.shape_cast %64 : vector<1x64x128xf32> to vector<64x128xf32>
    %66 = vector.shape_cast %63 : vector<64x128xf32> to vector<1x64x128xf32>
    tpu.vector_store %arg10[%c3_43, %c16_44, %c0_45], %66 {strides = array<i32>} : memref<8x80x128xf32, #tpu.memory_space<vmem>>, vector<1x64x128xf32>,
    %67 = vector.extract_strided_slice %50 {offsets = [256, 0], sizes = [64, 128], strides = [1, 1]} : vector<512x128xf32> to vector<64x128xf32>
    %c4_46 = arith.constant 4 : index
    %c16_47 = arith.constant 16 : index
    %c0_48 = arith.constant 0 : index
    %68 = vector.load %arg10[%c4_46, %c16_47, %c0_48] : memref<8x80x128xf32, #tpu.memory_space<vmem>>, vector<1x64x128xf32>
    %69 = vector.shape_cast %68 : vector<1x64x128xf32> to vector<64x128xf32>
    %70 = vector.shape_cast %67 : vector<64x128xf32> to vector<1x64x128xf32>
    tpu.vector_store %arg10[%c4_46, %c16_47, %c0_48], %70 {strides = array<i32>} : memref<8x80x128xf32, #tpu.memory_space<vmem>>, vector<1x64x128xf32>,
    %71 = vector.extract_strided_slice %50 {offsets = [320, 0], sizes = [64, 128], strides = [1, 1]} : vector<512x128xf32> to vector<64x128xf32>
    %c5_49 = arith.constant 5 : index
    %c16_50 = arith.constant 16 : index
    %c0_51 = arith.constant 0 : index
    %72 = vector.load %arg10[%c5_49, %c16_50, %c0_51] : memref<8x80x128xf32, #tpu.memory_space<vmem>>, vector<1x64x128xf32>
    %73 = vector.shape_cast %72 : vector<1x64x128xf32> to vector<64x128xf32>
    %74 = vector.shape_cast %71 : vector<64x128xf32> to vector<1x64x128xf32>
    tpu.vector_store %arg10[%c5_49, %c16_50, %c0_51], %74 {strides = array<i32>} : memref<8x80x128xf32, #tpu.memory_space<vmem>>, vector<1x64x128xf32>,
    %75 = vector.extract_strided_slice %50 {offsets = [384, 0], sizes = [64, 128], strides = [1, 1]} : vector<512x128xf32> to vector<64x128xf32>
    %c6_52 = arith.constant 6 : index
    %c16_53 = arith.constant 16 : index
    %c0_54 = arith.constant 0 : index
    %76 = vector.load %arg10[%c6_52, %c16_53, %c0_54] : memref<8x80x128xf32, #tpu.memory_space<vmem>>, vector<1x64x128xf32>
    %77 = vector.shape_cast %76 : vector<1x64x128xf32> to vector<64x128xf32>
    %78 = vector.shape_cast %75 : vector<64x128xf32> to vector<1x64x128xf32>
    tpu.vector_store %arg10[%c6_52, %c16_53, %c0_54], %78 {strides = array<i32>} : memref<8x80x128xf32, #tpu.memory_space<vmem>>, vector<1x64x128xf32>,
    %79 = vector.extract_strided_slice %50 {offsets = [448, 0], sizes = [64, 128], strides = [1, 1]} : vector<512x128xf32> to vector<64x128xf32>
    %c7_55 = arith.constant 7 : index
    %c16_56 = arith.constant 16 : index
    %c0_57 = arith.constant 0 : index
    %80 = vector.load %arg10[%c7_55, %c16_56, %c0_57] : memref<8x80x128xf32, #tpu.memory_space<vmem>>, vector<1x64x128xf32>
    %81 = vector.shape_cast %80 : vector<1x64x128xf32> to vector<64x128xf32>
    %82 = vector.shape_cast %79 : vector<64x128xf32> to vector<1x64x128xf32>
    tpu.vector_store %arg10[%c7_55, %c16_56, %c0_57], %82 {strides = array<i32>} : memref<8x80x128xf32, #tpu.memory_space<vmem>>, vector<1x64x128xf32>,
    %83 = tpu.iota {dimensions = array<i32: 0>} : vector<64x128xi32>
    %c7_i32 = arith.constant 7 : i32
    %84 = vector.broadcast %c7_i32 : i32 to vector<64x128xi32>
    %85 = arith.andi %83, %84 : vector<64x128xi32>
    %c0_i32 = arith.constant 0 : i32
    %86 = vector.broadcast %c0_i32 : i32 to vector<64x128xi32>
    %87 = arith.cmpi ne, %85, %86 : vector<64x128xi32>
    %c7_i32_58 = arith.constant 7 : i32
    %88 = vector.broadcast %c7_i32_58 : i32 to vector<64x128xi32>
    %89 = arith.cmpi ne, %85, %88 : vector<64x128xi32>
    %c3_59 = arith.constant 3 : index
    %c7_60 = arith.constant 7 : index
    %c0_61 = arith.constant 0 : index
    %90 = vector.load %arg10[%c3_59, %c7_60, %c0_61] : memref<8x80x128xf32, #tpu.memory_space<vmem>>, vector<1x64x128xf32>
    %91 = vector.shape_cast %90 : vector<1x64x128xf32> to vector<64x128xf32>
    %cst_62 = arith.constant 0.000000e+00 : f32
    %92 = vector.broadcast %cst_62 : f32 to vector<64x128xf32>
    %93 = arith.select %87, %91, %92 : vector<64x128xi1>, vector<64x128xf32>
    %94 = arith.truncf %93 : vector<64x128xf32> to vector<64x128xbf16>
    %c0_63 = arith.constant 0 : index
    %c0_64 = arith.constant 0 : index
    %95 = vector.load %arg12[%c0_63, %c0_64] : memref<128x1152xbf16, #tpu.memory_space<vmem>>, vector<64x128xbf16>
    tpu.vector_store %arg12[%c0_63, %c0_64], %94 {strides = array<i32>} : memref<128x1152xbf16, #tpu.memory_space<vmem>>, vector<64x128xbf16>,
    %c7_65 = arith.constant 7 : index
    %c7_66 = arith.constant 7 : index
    %c0_67 = arith.constant 0 : index
    %96 = vector.load %arg10[%c7_65, %c7_66, %c0_67] : memref<8x80x128xf32, #tpu.memory_space<vmem>>, vector<1x64x128xf32>
    %97 = vector.shape_cast %96 : vector<1x64x128xf32> to vector<64x128xf32>
    %cst_68 = arith.constant 0.000000e+00 : f32
    %98 = vector.broadcast %cst_68 : f32 to vector<64x128xf32>
    %99 = arith.select %87, %97, %98 : vector<64x128xi1>, vector<64x128xf32>
    %100 = arith.truncf %99 : vector<64x128xf32> to vector<64x128xbf16>
    %c64 = arith.constant 64 : index
    %c0_69 = arith.constant 0 : index
    %101 = vector.load %arg12[%c64, %c0_69] : memref<128x1152xbf16, #tpu.memory_space<vmem>>, vector<64x128xbf16>
    tpu.vector_store %arg12[%c64, %c0_69], %100 {strides = array<i32>} : memref<128x1152xbf16, #tpu.memory_space<vmem>>, vector<64x128xbf16>,
    %c2_70 = arith.constant 2 : index
    %c8_71 = arith.constant 8 : index
    %c0_72 = arith.constant 0 : index
    %102 = vector.load %arg10[%c2_70, %c8_71, %c0_72] : memref<8x80x128xf32, #tpu.memory_space<vmem>>, vector<1x64x128xf32>
    %103 = vector.shape_cast %102 : vector<1x64x128xf32> to vector<64x128xf32>
    %104 = arith.truncf %103 : vector<64x128xf32> to vector<64x128xbf16>
    %c0_73 = arith.constant 0 : index
    %c128 = arith.constant 128 : index
    %105 = vector.load %arg12[%c0_73, %c128] : memref<128x1152xbf16, #tpu.memory_space<vmem>>, vector<64x128xbf16>
    tpu.vector_store %arg12[%c0_73, %c128], %104 {strides = array<i32>} : memref<128x1152xbf16, #tpu.memory_space<vmem>>, vector<64x128xbf16>,
    %c6_74 = arith.constant 6 : index
    %c8_75 = arith.constant 8 : index
    %c0_76 = arith.constant 0 : index
    %106 = vector.load %arg10[%c6_74, %c8_75, %c0_76] : memref<8x80x128xf32, #tpu.memory_space<vmem>>, vector<1x64x128xf32>
    %107 = vector.shape_cast %106 : vector<1x64x128xf32> to vector<64x128xf32>
    %108 = arith.truncf %107 : vector<64x128xf32> to vector<64x128xbf16>
    %c64_77 = arith.constant 64 : index
    %c128_78 = arith.constant 128 : index
    %109 = vector.load %arg12[%c64_77, %c128_78] : memref<128x1152xbf16, #tpu.memory_space<vmem>>, vector<64x128xbf16>
    tpu.vector_store %arg12[%c64_77, %c128_78], %108 {strides = array<i32>} : memref<128x1152xbf16, #tpu.memory_space<vmem>>, vector<64x128xbf16>,
    %c3_79 = arith.constant 3 : index
    %c8_80 = arith.constant 8 : index
    %c0_81 = arith.constant 0 : index
    %110 = vector.load %arg10[%c3_79, %c8_80, %c0_81] : memref<8x80x128xf32, #tpu.memory_space<vmem>>, vector<1x64x128xf32>
    %111 = vector.shape_cast %110 : vector<1x64x128xf32> to vector<64x128xf32>
    %112 = arith.truncf %111 : vector<64x128xf32> to vector<64x128xbf16>
    %c0_82 = arith.constant 0 : index
    %c256 = arith.constant 256 : index
    %113 = vector.load %arg12[%c0_82, %c256] : memref<128x1152xbf16, #tpu.memory_space<vmem>>, vector<64x128xbf16>
    tpu.vector_store %arg12[%c0_82, %c256], %112 {strides = array<i32>} : memref<128x1152xbf16, #tpu.memory_space<vmem>>, vector<64x128xbf16>,
    %c7_83 = arith.constant 7 : index
    %c8_84 = arith.constant 8 : index
    %c0_85 = arith.constant 0 : index
    %114 = vector.load %arg10[%c7_83, %c8_84, %c0_85] : memref<8x80x128xf32, #tpu.memory_space<vmem>>, vector<1x64x128xf32>
    %115 = vector.shape_cast %114 : vector<1x64x128xf32> to vector<64x128xf32>
    %116 = arith.truncf %115 : vector<64x128xf32> to vector<64x128xbf16>
    %c64_86 = arith.constant 64 : index
    %c256_87 = arith.constant 256 : index
    %117 = vector.load %arg12[%c64_86, %c256_87] : memref<128x1152xbf16, #tpu.memory_space<vmem>>, vector<64x128xbf16>
    tpu.vector_store %arg12[%c64_86, %c256_87], %116 {strides = array<i32>} : memref<128x1152xbf16, #tpu.memory_space<vmem>>, vector<64x128xbf16>,
    %c1_88 = arith.constant 1 : index
    %c15 = arith.constant 15 : index
    %c0_89 = arith.constant 0 : index
    %118 = vector.load %arg10[%c1_88, %c15, %c0_89] : memref<8x80x128xf32, #tpu.memory_space<vmem>>, vector<1x64x128xf32>
    %119 = vector.shape_cast %118 : vector<1x64x128xf32> to vector<64x128xf32>
    %cst_90 = arith.constant 0.000000e+00 : f32
    %120 = vector.broadcast %cst_90 : f32 to vector<64x128xf32>
    %121 = arith.select %87, %119, %120 : vector<64x128xi1>, vector<64x128xf32>
    %122 = arith.truncf %121 : vector<64x128xf32> to vector<64x128xbf16>
    %c0_91 = arith.constant 0 : index
    %c384 = arith.constant 384 : index
    %123 = vector.load %arg12[%c0_91, %c384] : memref<128x1152xbf16, #tpu.memory_space<vmem>>, vector<64x128xbf16>
    tpu.vector_store %arg12[%c0_91, %c384], %122 {strides = array<i32>} : memref<128x1152xbf16, #tpu.memory_space<vmem>>, vector<64x128xbf16>,
    %c5_92 = arith.constant 5 : index
    %c15_93 = arith.constant 15 : index
    %c0_94 = arith.constant 0 : index
    %124 = vector.load %arg10[%c5_92, %c15_93, %c0_94] : memref<8x80x128xf32, #tpu.memory_space<vmem>>, vector<1x64x128xf32>
    %125 = vector.shape_cast %124 : vector<1x64x128xf32> to vector<64x128xf32>
    %cst_95 = arith.constant 0.000000e+00 : f32
    %126 = vector.broadcast %cst_95 : f32 to vector<64x128xf32>
    %127 = arith.select %87, %125, %126 : vector<64x128xi1>, vector<64x128xf32>
    %128 = arith.truncf %127 : vector<64x128xf32> to vector<64x128xbf16>
    %c64_96 = arith.constant 64 : index
    %c384_97 = arith.constant 384 : index
    %129 = vector.load %arg12[%c64_96, %c384_97] : memref<128x1152xbf16, #tpu.memory_space<vmem>>, vector<64x128xbf16>
    tpu.vector_store %arg12[%c64_96, %c384_97], %128 {strides = array<i32>} : memref<128x1152xbf16, #tpu.memory_space<vmem>>, vector<64x128xbf16>,
    %c0_98 = arith.constant 0 : index
    %c16_99 = arith.constant 16 : index
    %c0_100 = arith.constant 0 : index
    %130 = vector.load %arg10[%c0_98, %c16_99, %c0_100] : memref<8x80x128xf32, #tpu.memory_space<vmem>>, vector<1x64x128xf32>
    %131 = vector.shape_cast %130 : vector<1x64x128xf32> to vector<64x128xf32>
    %132 = arith.truncf %131 : vector<64x128xf32> to vector<64x128xbf16>
    %c0_101 = arith.constant 0 : index
    %c512 = arith.constant 512 : index
    %133 = vector.load %arg12[%c0_101, %c512] : memref<128x1152xbf16, #tpu.memory_space<vmem>>, vector<64x128xbf16>
    tpu.vector_store %arg12[%c0_101, %c512], %132 {strides = array<i32>} : memref<128x1152xbf16, #tpu.memory_space<vmem>>, vector<64x128xbf16>,
    %c4_102 = arith.constant 4 : index
    %c16_103 = arith.constant 16 : index
    %c0_104 = arith.constant 0 : index
    %134 = vector.load %arg10[%c4_102, %c16_103, %c0_104] : memref<8x80x128xf32, #tpu.memory_space<vmem>>, vector<1x64x128xf32>
    %135 = vector.shape_cast %134 : vector<1x64x128xf32> to vector<64x128xf32>
    %136 = arith.truncf %135 : vector<64x128xf32> to vector<64x128xbf16>
    %c64_105 = arith.constant 64 : index
    %c512_106 = arith.constant 512 : index
    %137 = vector.load %arg12[%c64_105, %c512_106] : memref<128x1152xbf16, #tpu.memory_space<vmem>>, vector<64x128xbf16>
    tpu.vector_store %arg12[%c64_105, %c512_106], %136 {strides = array<i32>} : memref<128x1152xbf16, #tpu.memory_space<vmem>>, vector<64x128xbf16>,
    %c1_107 = arith.constant 1 : index
    %c16_108 = arith.constant 16 : index
    %c0_109 = arith.constant 0 : index
    %138 = vector.load %arg10[%c1_107, %c16_108, %c0_109] : memref<8x80x128xf32, #tpu.memory_space<vmem>>, vector<1x64x128xf32>
    %139 = vector.shape_cast %138 : vector<1x64x128xf32> to vector<64x128xf32>
    %140 = arith.truncf %139 : vector<64x128xf32> to vector<64x128xbf16>
    %c0_110 = arith.constant 0 : index
    %c640 = arith.constant 640 : index
    %141 = vector.load %arg12[%c0_110, %c640] : memref<128x1152xbf16, #tpu.memory_space<vmem>>, vector<64x128xbf16>
    tpu.vector_store %arg12[%c0_110, %c640], %140 {strides = array<i32>} : memref<128x1152xbf16, #tpu.memory_space<vmem>>, vector<64x128xbf16>,
    %c5_111 = arith.constant 5 : index
    %c16_112 = arith.constant 16 : index
    %c0_113 = arith.constant 0 : index
    %142 = vector.load %arg10[%c5_111, %c16_112, %c0_113] : memref<8x80x128xf32, #tpu.memory_space<vmem>>, vector<1x64x128xf32>
    %143 = vector.shape_cast %142 : vector<1x64x128xf32> to vector<64x128xf32>
    %144 = arith.truncf %143 : vector<64x128xf32> to vector<64x128xbf16>
    %c64_114 = arith.constant 64 : index
    %c640_115 = arith.constant 640 : index
    %145 = vector.load %arg12[%c64_114, %c640_115] : memref<128x1152xbf16, #tpu.memory_space<vmem>>, vector<64x128xbf16>
    tpu.vector_store %arg12[%c64_114, %c640_115], %144 {strides = array<i32>} : memref<128x1152xbf16, #tpu.memory_space<vmem>>, vector<64x128xbf16>,
    %c3_116 = arith.constant 3 : index
    %c15_117 = arith.constant 15 : index
    %c0_118 = arith.constant 0 : index
    %146 = vector.load %arg10[%c3_116, %c15_117, %c0_118] : memref<8x80x128xf32, #tpu.memory_space<vmem>>, vector<1x64x128xf32>
    %147 = vector.shape_cast %146 : vector<1x64x128xf32> to vector<64x128xf32>
    %cst_119 = arith.constant 0.000000e+00 : f32
    %148 = vector.broadcast %cst_119 : f32 to vector<64x128xf32>
    %149 = arith.select %87, %147, %148 : vector<64x128xi1>, vector<64x128xf32>
    %150 = arith.truncf %149 : vector<64x128xf32> to vector<64x128xbf16>
    %c0_120 = arith.constant 0 : index
    %c768 = arith.constant 768 : index
    %151 = vector.load %arg12[%c0_120, %c768] : memref<128x1152xbf16, #tpu.memory_space<vmem>>, vector<64x128xbf16>
    tpu.vector_store %arg12[%c0_120, %c768], %150 {strides = array<i32>} : memref<128x1152xbf16, #tpu.memory_space<vmem>>, vector<64x128xbf16>,
    %c7_121 = arith.constant 7 : index
    %c15_122 = arith.constant 15 : index
    %c0_123 = arith.constant 0 : index
    %152 = vector.load %arg10[%c7_121, %c15_122, %c0_123] : memref<8x80x128xf32, #tpu.memory_space<vmem>>, vector<1x64x128xf32>
    %153 = vector.shape_cast %152 : vector<1x64x128xf32> to vector<64x128xf32>
    %cst_124 = arith.constant 0.000000e+00 : f32
    %154 = vector.broadcast %cst_124 : f32 to vector<64x128xf32>
    %155 = arith.select %87, %153, %154 : vector<64x128xi1>, vector<64x128xf32>
    %156 = arith.truncf %155 : vector<64x128xf32> to vector<64x128xbf16>
    %c64_125 = arith.constant 64 : index
    %c768_126 = arith.constant 768 : index
    %157 = vector.load %arg12[%c64_125, %c768_126] : memref<128x1152xbf16, #tpu.memory_space<vmem>>, vector<64x128xbf16>
    tpu.vector_store %arg12[%c64_125, %c768_126], %156 {strides = array<i32>} : memref<128x1152xbf16, #tpu.memory_space<vmem>>, vector<64x128xbf16>,
    %c2_127 = arith.constant 2 : index
    %c16_128 = arith.constant 16 : index
    %c0_129 = arith.constant 0 : index
    %158 = vector.load %arg10[%c2_127, %c16_128, %c0_129] : memref<8x80x128xf32, #tpu.memory_space<vmem>>, vector<1x64x128xf32>
    %159 = vector.shape_cast %158 : vector<1x64x128xf32> to vector<64x128xf32>
    %160 = arith.truncf %159 : vector<64x128xf32> to vector<64x128xbf16>
    %c0_130 = arith.constant 0 : index
    %c896 = arith.constant 896 : index
    %161 = vector.load %arg12[%c0_130, %c896] : memref<128x1152xbf16, #tpu.memory_space<vmem>>, vector<64x128xbf16>
    tpu.vector_store %arg12[%c0_130, %c896], %160 {strides = array<i32>} : memref<128x1152xbf16, #tpu.memory_space<vmem>>, vector<64x128xbf16>,
    %c6_131 = arith.constant 6 : index
    %c16_132 = arith.constant 16 : index
    %c0_133 = arith.constant 0 : index
    %162 = vector.load %arg10[%c6_131, %c16_132, %c0_133] : memref<8x80x128xf32, #tpu.memory_space<vmem>>, vector<1x64x128xf32>
    %163 = vector.shape_cast %162 : vector<1x64x128xf32> to vector<64x128xf32>
    %164 = arith.truncf %163 : vector<64x128xf32> to vector<64x128xbf16>
    %c64_134 = arith.constant 64 : index
    %c896_135 = arith.constant 896 : index
    %165 = vector.load %arg12[%c64_134, %c896_135] : memref<128x1152xbf16, #tpu.memory_space<vmem>>, vector<64x128xbf16>
    tpu.vector_store %arg12[%c64_134, %c896_135], %164 {strides = array<i32>} : memref<128x1152xbf16, #tpu.memory_space<vmem>>, vector<64x128xbf16>,
    %c3_136 = arith.constant 3 : index
    %c16_137 = arith.constant 16 : index
    %c0_138 = arith.constant 0 : index
    %166 = vector.load %arg10[%c3_136, %c16_137, %c0_138] : memref<8x80x128xf32, #tpu.memory_space<vmem>>, vector<1x64x128xf32>
    %167 = vector.shape_cast %166 : vector<1x64x128xf32> to vector<64x128xf32>
    %168 = arith.truncf %167 : vector<64x128xf32> to vector<64x128xbf16>
    %c0_139 = arith.constant 0 : index
    %c1024 = arith.constant 1024 : index
    %169 = vector.load %arg12[%c0_139, %c1024] : memref<128x1152xbf16, #tpu.memory_space<vmem>>, vector<64x128xbf16>
    tpu.vector_store %arg12[%c0_139, %c1024], %168 {strides = array<i32>} : memref<128x1152xbf16, #tpu.memory_space<vmem>>, vector<64x128xbf16>,
    %c7_140 = arith.constant 7 : index
    %c16_141 = arith.constant 16 : index
    %c0_142 = arith.constant 0 : index
    %170 = vector.load %arg10[%c7_140, %c16_141, %c0_142] : memref<8x80x128xf32, #tpu.memory_space<vmem>>, vector<1x64x128xf32>
    %171 = vector.shape_cast %170 : vector<1x64x128xf32> to vector<64x128xf32>
    %172 = arith.truncf %171 : vector<64x128xf32> to vector<64x128xbf16>
    %c64_143 = arith.constant 64 : index
    %c1024_144 = arith.constant 1024 : index
    %173 = vector.load %arg12[%c64_143, %c1024_144] : memref<128x1152xbf16, #tpu.memory_space<vmem>>, vector<64x128xbf16>
    tpu.vector_store %arg12[%c64_143, %c1024_144], %172 {strides = array<i32>} : memref<128x1152xbf16, #tpu.memory_space<vmem>>, vector<64x128xbf16>,
    %c0_145 = arith.constant 0 : index
    %c0_146 = arith.constant 0 : index
    %174 = vector.load %arg12[%c0_145, %c0_146] : memref<128x1152xbf16, #tpu.memory_space<vmem>>, vector<128x1152xbf16>
    %c0_147 = arith.constant 0 : index
    %c0_148 = arith.constant 0 : index
    %175 = vector.load %arg3[%c0_147, %c0_148] : memref<1152x128xbf16, #tpu.memory_space<vmem>>, vector<1152x128xbf16>
    %cst_149 = arith.constant dense<0.000000e+00> : vector<128x128xf32>
    %176 = tpu.matmul %174, %175, %cst_149 {dimension_numbers = #tpu.dot_dimension_numbers<[1], [0], [0], [1], [0, 0, 1, 1], [], []>} : vector<128x1152xbf16>, vector<1152x128xbf16>, vector<128x128xf32> -> vector<128x128xf32>
    %177 = vector.broadcast %2 : vector<1x128xf32> to vector<128x128xf32>
    %178 = arith.addf %176, %177 : vector<128x128xf32>
    %cst_150 = arith.constant 1.000000e-01 : f32
    %179 = vector.broadcast %cst_150 : f32 to vector<128x128xf32>
    %180 = arith.mulf %179, %178 : vector<128x128xf32>
    %181 = arith.maximumf %178, %180 : vector<128x128xf32>
    %182 = vector.extract_strided_slice %181 {offsets = [0, 0], sizes = [64, 128], strides = [1, 1]} : vector<128x128xf32> to vector<64x128xf32>
    %c0_151 = arith.constant 0 : index
    %c16_152 = arith.constant 16 : index
    %c0_153 = arith.constant 0 : index
    %183 = vector.load %arg11[%c0_151, %c16_152, %c0_153] : memref<2x96x128xf32, #tpu.memory_space<vmem>>, vector<1x64x128xf32>
    %184 = vector.shape_cast %183 : vector<1x64x128xf32> to vector<64x128xf32>
    %185 = vector.shape_cast %182 : vector<64x128xf32> to vector<1x64x128xf32>
    tpu.vector_store %arg11[%c0_151, %c16_152, %c0_153], %185 {strides = array<i32>} : memref<2x96x128xf32, #tpu.memory_space<vmem>>, vector<1x64x128xf32>,
    %186 = vector.extract_strided_slice %181 {offsets = [64, 0], sizes = [64, 128], strides = [1, 1]} : vector<128x128xf32> to vector<64x128xf32>
    %c1_154 = arith.constant 1 : index
    %c16_155 = arith.constant 16 : index
    %c0_156 = arith.constant 0 : index
    %187 = vector.load %arg11[%c1_154, %c16_155, %c0_156] : memref<2x96x128xf32, #tpu.memory_space<vmem>>, vector<1x64x128xf32>
    %188 = vector.shape_cast %187 : vector<1x64x128xf32> to vector<64x128xf32>
    %189 = vector.shape_cast %186 : vector<64x128xf32> to vector<1x64x128xf32>
    tpu.vector_store %arg11[%c1_154, %c16_155, %c0_156], %189 {strides = array<i32>} : memref<2x96x128xf32, #tpu.memory_space<vmem>>, vector<1x64x128xf32>,
    %c0_157 = arith.constant 0 : index
    %c7_158 = arith.constant 7 : index
    %c0_159 = arith.constant 0 : index
    %190 = vector.load %arg11[%c0_157, %c7_158, %c0_159] : memref<2x96x128xf32, #tpu.memory_space<vmem>>, vector<1x64x128xf32>
    %191 = vector.shape_cast %190 : vector<1x64x128xf32> to vector<64x128xf32>
    %cst_160 = arith.constant 0.000000e+00 : f32
    %192 = vector.broadcast %cst_160 : f32 to vector<64x128xf32>
    %193 = arith.select %87, %191, %192 : vector<64x128xi1>, vector<64x128xf32>
    %194 = arith.truncf %193 : vector<64x128xf32> to vector<64x128xbf16>
    %c0_161 = arith.constant 0 : index
    %c0_162 = arith.constant 0 : index
    %195 = vector.load %arg12[%c0_161, %c0_162] : memref<128x1152xbf16, #tpu.memory_space<vmem>>, vector<64x128xbf16>
    tpu.vector_store %arg12[%c0_161, %c0_162], %194 {strides = array<i32>} : memref<128x1152xbf16, #tpu.memory_space<vmem>>, vector<64x128xbf16>,
    %c1_163 = arith.constant 1 : index
    %c7_164 = arith.constant 7 : index
    %c0_165 = arith.constant 0 : index
    %196 = vector.load %arg11[%c1_163, %c7_164, %c0_165] : memref<2x96x128xf32, #tpu.memory_space<vmem>>, vector<1x64x128xf32>
    %197 = vector.shape_cast %196 : vector<1x64x128xf32> to vector<64x128xf32>
    %cst_166 = arith.constant 0.000000e+00 : f32
    %198 = vector.broadcast %cst_166 : f32 to vector<64x128xf32>
    %199 = arith.select %87, %197, %198 : vector<64x128xi1>, vector<64x128xf32>
    %200 = arith.truncf %199 : vector<64x128xf32> to vector<64x128xbf16>
    %c64_167 = arith.constant 64 : index
    %c0_168 = arith.constant 0 : index
    %201 = vector.load %arg12[%c64_167, %c0_168] : memref<128x1152xbf16, #tpu.memory_space<vmem>>, vector<64x128xbf16>
    tpu.vector_store %arg12[%c64_167, %c0_168], %200 {strides = array<i32>} : memref<128x1152xbf16, #tpu.memory_space<vmem>>, vector<64x128xbf16>,
    %c0_169 = arith.constant 0 : index
    %c8_170 = arith.constant 8 : index
    %c0_171 = arith.constant 0 : index
    %202 = vector.load %arg11[%c0_169, %c8_170, %c0_171] : memref<2x96x128xf32, #tpu.memory_space<vmem>>, vector<1x64x128xf32>
    %203 = vector.shape_cast %202 : vector<1x64x128xf32> to vector<64x128xf32>
    %204 = arith.truncf %203 : vector<64x128xf32> to vector<64x128xbf16>
    %c0_172 = arith.constant 0 : index
    %c128_173 = arith.constant 128 : index
    %205 = vector.load %arg12[%c0_172, %c128_173] : memref<128x1152xbf16, #tpu.memory_space<vmem>>, vector<64x128xbf16>
    tpu.vector_store %arg12[%c0_172, %c128_173], %204 {strides = array<i32>} : memref<128x1152xbf16, #tpu.memory_space<vmem>>, vector<64x128xbf16>,
    %c1_174 = arith.constant 1 : index
    %c8_175 = arith.constant 8 : index
    %c0_176 = arith.constant 0 : index
    %206 = vector.load %arg11[%c1_174, %c8_175, %c0_176] : memref<2x96x128xf32, #tpu.memory_space<vmem>>, vector<1x64x128xf32>
    %207 = vector.shape_cast %206 : vector<1x64x128xf32> to vector<64x128xf32>
    %208 = arith.truncf %207 : vector<64x128xf32> to vector<64x128xbf16>
    %c64_177 = arith.constant 64 : index
    %c128_178 = arith.constant 128 : index
    %209 = vector.load %arg12[%c64_177, %c128_178] : memref<128x1152xbf16, #tpu.memory_space<vmem>>, vector<64x128xbf16>
    tpu.vector_store %arg12[%c64_177, %c128_178], %208 {strides = array<i32>} : memref<128x1152xbf16, #tpu.memory_space<vmem>>, vector<64x128xbf16>,
    %c0_179 = arith.constant 0 : index
    %c9 = arith.constant 9 : index
    %c0_180 = arith.constant 0 : index
    %210 = vector.load %arg11[%c0_179, %c9, %c0_180] : memref<2x96x128xf32, #tpu.memory_space<vmem>>, vector<1x64x128xf32>
    %211 = vector.shape_cast %210 : vector<1x64x128xf32> to vector<64x128xf32>
    %cst_181 = arith.constant 0.000000e+00 : f32
    %212 = vector.broadcast %cst_181 : f32 to vector<64x128xf32>
    %213 = arith.select %89, %211, %212 : vector<64x128xi1>, vector<64x128xf32>
    %214 = arith.truncf %213 : vector<64x128xf32> to vector<64x128xbf16>
    %c0_182 = arith.constant 0 : index
    %c256_183 = arith.constant 256 : index
    %215 = vector.load %arg12[%c0_182, %c256_183] : memref<128x1152xbf16, #tpu.memory_space<vmem>>, vector<64x128xbf16>
    tpu.vector_store %arg12[%c0_182, %c256_183], %214 {strides = array<i32>} : memref<128x1152xbf16, #tpu.memory_space<vmem>>, vector<64x128xbf16>,
    %c1_184 = arith.constant 1 : index
    %c9_185 = arith.constant 9 : index
    %c0_186 = arith.constant 0 : index
    %216 = vector.load %arg11[%c1_184, %c9_185, %c0_186] : memref<2x96x128xf32, #tpu.memory_space<vmem>>, vector<1x64x128xf32>
    %217 = vector.shape_cast %216 : vector<1x64x128xf32> to vector<64x128xf32>
    %cst_187 = arith.constant 0.000000e+00 : f32
    %218 = vector.broadcast %cst_187 : f32 to vector<64x128xf32>
    %219 = arith.select %89, %217, %218 : vector<64x128xi1>, vector<64x128xf32>
    %220 = arith.truncf %219 : vector<64x128xf32> to vector<64x128xbf16>
    %c64_188 = arith.constant 64 : index
    %c256_189 = arith.constant 256 : index
    %221 = vector.load %arg12[%c64_188, %c256_189] : memref<128x1152xbf16, #tpu.memory_space<vmem>>, vector<64x128xbf16>
    tpu.vector_store %arg12[%c64_188, %c256_189], %220 {strides = array<i32>} : memref<128x1152xbf16, #tpu.memory_space<vmem>>, vector<64x128xbf16>,
    %c0_190 = arith.constant 0 : index
    %c15_191 = arith.constant 15 : index
    %c0_192 = arith.constant 0 : index
    %222 = vector.load %arg11[%c0_190, %c15_191, %c0_192] : memref<2x96x128xf32, #tpu.memory_space<vmem>>, vector<1x64x128xf32>
    %223 = vector.shape_cast %222 : vector<1x64x128xf32> to vector<64x128xf32>
    %cst_193 = arith.constant 0.000000e+00 : f32
    %224 = vector.broadcast %cst_193 : f32 to vector<64x128xf32>
    %225 = arith.select %87, %223, %224 : vector<64x128xi1>, vector<64x128xf32>
    %226 = arith.truncf %225 : vector<64x128xf32> to vector<64x128xbf16>
    %c0_194 = arith.constant 0 : index
    %c384_195 = arith.constant 384 : index
    %227 = vector.load %arg12[%c0_194, %c384_195] : memref<128x1152xbf16, #tpu.memory_space<vmem>>, vector<64x128xbf16>
    tpu.vector_store %arg12[%c0_194, %c384_195], %226 {strides = array<i32>} : memref<128x1152xbf16, #tpu.memory_space<vmem>>, vector<64x128xbf16>,
    %c1_196 = arith.constant 1 : index
    %c15_197 = arith.constant 15 : index
    %c0_198 = arith.constant 0 : index
    %228 = vector.load %arg11[%c1_196, %c15_197, %c0_198] : memref<2x96x128xf32, #tpu.memory_space<vmem>>, vector<1x64x128xf32>
    %229 = vector.shape_cast %228 : vector<1x64x128xf32> to vector<64x128xf32>
    %cst_199 = arith.constant 0.000000e+00 : f32
    %230 = vector.broadcast %cst_199 : f32 to vector<64x128xf32>
    %231 = arith.select %87, %229, %230 : vector<64x128xi1>, vector<64x128xf32>
    %232 = arith.truncf %231 : vector<64x128xf32> to vector<64x128xbf16>
    %c64_200 = arith.constant 64 : index
    %c384_201 = arith.constant 384 : index
    %233 = vector.load %arg12[%c64_200, %c384_201] : memref<128x1152xbf16, #tpu.memory_space<vmem>>, vector<64x128xbf16>
    tpu.vector_store %arg12[%c64_200, %c384_201], %232 {strides = array<i32>} : memref<128x1152xbf16, #tpu.memory_space<vmem>>, vector<64x128xbf16>,
    %c0_202 = arith.constant 0 : index
    %c16_203 = arith.constant 16 : index
    %c0_204 = arith.constant 0 : index
    %234 = vector.load %arg11[%c0_202, %c16_203, %c0_204] : memref<2x96x128xf32, #tpu.memory_space<vmem>>, vector<1x64x128xf32>
    %235 = vector.shape_cast %234 : vector<1x64x128xf32> to vector<64x128xf32>
    %236 = arith.truncf %235 : vector<64x128xf32> to vector<64x128xbf16>
    %c0_205 = arith.constant 0 : index
    %c512_206 = arith.constant 512 : index
    %237 = vector.load %arg12[%c0_205, %c512_206] : memref<128x1152xbf16, #tpu.memory_space<vmem>>, vector<64x128xbf16>
    tpu.vector_store %arg12[%c0_205, %c512_206], %236 {strides = array<i32>} : memref<128x1152xbf16, #tpu.memory_space<vmem>>, vector<64x128xbf16>,
    %c1_207 = arith.constant 1 : index
    %c16_208 = arith.constant 16 : index
    %c0_209 = arith.constant 0 : index
    %238 = vector.load %arg11[%c1_207, %c16_208, %c0_209] : memref<2x96x128xf32, #tpu.memory_space<vmem>>, vector<1x64x128xf32>
    %239 = vector.shape_cast %238 : vector<1x64x128xf32> to vector<64x128xf32>
    %240 = arith.truncf %239 : vector<64x128xf32> to vector<64x128xbf16>
    %c64_210 = arith.constant 64 : index
    %c512_211 = arith.constant 512 : index
    %241 = vector.load %arg12[%c64_210, %c512_211] : memref<128x1152xbf16, #tpu.memory_space<vmem>>, vector<64x128xbf16>
    tpu.vector_store %arg12[%c64_210, %c512_211], %240 {strides = array<i32>} : memref<128x1152xbf16, #tpu.memory_space<vmem>>, vector<64x128xbf16>,
    %c0_212 = arith.constant 0 : index
    %c17 = arith.constant 17 : index
    %c0_213 = arith.constant 0 : index
    %242 = vector.load %arg11[%c0_212, %c17, %c0_213] : memref<2x96x128xf32, #tpu.memory_space<vmem>>, vector<1x64x128xf32>
    %243 = vector.shape_cast %242 : vector<1x64x128xf32> to vector<64x128xf32>
    %cst_214 = arith.constant 0.000000e+00 : f32
    %244 = vector.broadcast %cst_214 : f32 to vector<64x128xf32>
    %245 = arith.select %89, %243, %244 : vector<64x128xi1>, vector<64x128xf32>
    %246 = arith.truncf %245 : vector<64x128xf32> to vector<64x128xbf16>
    %c0_215 = arith.constant 0 : index
    %c640_216 = arith.constant 640 : index
    %247 = vector.load %arg12[%c0_215, %c640_216] : memref<128x1152xbf16, #tpu.memory_space<vmem>>, vector<64x128xbf16>
    tpu.vector_store %arg12[%c0_215, %c640_216], %246 {strides = array<i32>} : memref<128x1152xbf16, #tpu.memory_space<vmem>>, vector<64x128xbf16>,
    %c1_217 = arith.constant 1 : index
    %c17_218 = arith.constant 17 : index
    %c0_219 = arith.constant 0 : index
    %248 = vector.load %arg11[%c1_217, %c17_218, %c0_219] : memref<2x96x128xf32, #tpu.memory_space<vmem>>, vector<1x64x128xf32>
    %249 = vector.shape_cast %248 : vector<1x64x128xf32> to vector<64x128xf32>
    %cst_220 = arith.constant 0.000000e+00 : f32
    %250 = vector.broadcast %cst_220 : f32 to vector<64x128xf32>
    %251 = arith.select %89, %249, %250 : vector<64x128xi1>, vector<64x128xf32>
    %252 = arith.truncf %251 : vector<64x128xf32> to vector<64x128xbf16>
    %c64_221 = arith.constant 64 : index
    %c640_222 = arith.constant 640 : index
    %253 = vector.load %arg12[%c64_221, %c640_222] : memref<128x1152xbf16, #tpu.memory_space<vmem>>, vector<64x128xbf16>
    tpu.vector_store %arg12[%c64_221, %c640_222], %252 {strides = array<i32>} : memref<128x1152xbf16, #tpu.memory_space<vmem>>, vector<64x128xbf16>,
    %c0_223 = arith.constant 0 : index
    %c23 = arith.constant 23 : index
    %c0_224 = arith.constant 0 : index
    %254 = vector.load %arg11[%c0_223, %c23, %c0_224] : memref<2x96x128xf32, #tpu.memory_space<vmem>>, vector<1x64x128xf32>
    %255 = vector.shape_cast %254 : vector<1x64x128xf32> to vector<64x128xf32>
    %cst_225 = arith.constant 0.000000e+00 : f32
    %256 = vector.broadcast %cst_225 : f32 to vector<64x128xf32>
    %257 = arith.select %87, %255, %256 : vector<64x128xi1>, vector<64x128xf32>
    %258 = arith.truncf %257 : vector<64x128xf32> to vector<64x128xbf16>
    %c0_226 = arith.constant 0 : index
    %c768_227 = arith.constant 768 : index
    %259 = vector.load %arg12[%c0_226, %c768_227] : memref<128x1152xbf16, #tpu.memory_space<vmem>>, vector<64x128xbf16>
    tpu.vector_store %arg12[%c0_226, %c768_227], %258 {strides = array<i32>} : memref<128x1152xbf16, #tpu.memory_space<vmem>>, vector<64x128xbf16>,
    %c1_228 = arith.constant 1 : index
    %c23_229 = arith.constant 23 : index
    %c0_230 = arith.constant 0 : index
    %260 = vector.load %arg11[%c1_228, %c23_229, %c0_230] : memref<2x96x128xf32, #tpu.memory_space<vmem>>, vector<1x64x128xf32>
    %261 = vector.shape_cast %260 : vector<1x64x128xf32> to vector<64x128xf32>
    %cst_231 = arith.constant 0.000000e+00 : f32
    %262 = vector.broadcast %cst_231 : f32 to vector<64x128xf32>
    %263 = arith.select %87, %261, %262 : vector<64x128xi1>, vector<64x128xf32>
    %264 = arith.truncf %263 : vector<64x128xf32> to vector<64x128xbf16>
    %c64_232 = arith.constant 64 : index
    %c768_233 = arith.constant 768 : index
    %265 = vector.load %arg12[%c64_232, %c768_233] : memref<128x1152xbf16, #tpu.memory_space<vmem>>, vector<64x128xbf16>
    tpu.vector_store %arg12[%c64_232, %c768_233], %264 {strides = array<i32>} : memref<128x1152xbf16, #tpu.memory_space<vmem>>, vector<64x128xbf16>,
    %c0_234 = arith.constant 0 : index
    %c24 = arith.constant 24 : index
    %c0_235 = arith.constant 0 : index
    %266 = vector.load %arg11[%c0_234, %c24, %c0_235] : memref<2x96x128xf32, #tpu.memory_space<vmem>>, vector<1x64x128xf32>
    %267 = vector.shape_cast %266 : vector<1x64x128xf32> to vector<64x128xf32>
    %268 = arith.truncf %267 : vector<64x128xf32> to vector<64x128xbf16>
    %c0_236 = arith.constant 0 : index
    %c896_237 = arith.constant 896 : index
    %269 = vector.load %arg12[%c0_236, %c896_237] : memref<128x1152xbf16, #tpu.memory_space<vmem>>, vector<64x128xbf16>
    tpu.vector_store %arg12[%c0_236, %c896_237], %268 {strides = array<i32>} : memref<128x1152xbf16, #tpu.memory_space<vmem>>, vector<64x128xbf16>,
    %c1_238 = arith.constant 1 : index
    %c24_239 = arith.constant 24 : index
    %c0_240 = arith.constant 0 : index
    %270 = vector.load %arg11[%c1_238, %c24_239, %c0_240] : memref<2x96x128xf32, #tpu.memory_space<vmem>>, vector<1x64x128xf32>
    %271 = vector.shape_cast %270 : vector<1x64x128xf32> to vector<64x128xf32>
    %272 = arith.truncf %271 : vector<64x128xf32> to vector<64x128xbf16>
    %c64_241 = arith.constant 64 : index
    %c896_242 = arith.constant 896 : index
    %273 = vector.load %arg12[%c64_241, %c896_242] : memref<128x1152xbf16, #tpu.memory_space<vmem>>, vector<64x128xbf16>
    tpu.vector_store %arg12[%c64_241, %c896_242], %272 {strides = array<i32>} : memref<128x1152xbf16, #tpu.memory_space<vmem>>, vector<64x128xbf16>,
    %c0_243 = arith.constant 0 : index
    %c25 = arith.constant 25 : index
    %c0_244 = arith.constant 0 : index
    %274 = vector.load %arg11[%c0_243, %c25, %c0_244] : memref<2x96x128xf32, #tpu.memory_space<vmem>>, vector<1x64x128xf32>
    %275 = vector.shape_cast %274 : vector<1x64x128xf32> to vector<64x128xf32>
    %cst_245 = arith.constant 0.000000e+00 : f32
    %276 = vector.broadcast %cst_245 : f32 to vector<64x128xf32>
    %277 = arith.select %89, %275, %276 : vector<64x128xi1>, vector<64x128xf32>
    %278 = arith.truncf %277 : vector<64x128xf32> to vector<64x128xbf16>
    %c0_246 = arith.constant 0 : index
    %c1024_247 = arith.constant 1024 : index
    %279 = vector.load %arg12[%c0_246, %c1024_247] : memref<128x1152xbf16, #tpu.memory_space<vmem>>, vector<64x128xbf16>
    tpu.vector_store %arg12[%c0_246, %c1024_247], %278 {strides = array<i32>} : memref<128x1152xbf16, #tpu.memory_space<vmem>>, vector<64x128xbf16>,
    %c1_248 = arith.constant 1 : index
    %c25_249 = arith.constant 25 : index
    %c0_250 = arith.constant 0 : index
    %280 = vector.load %arg11[%c1_248, %c25_249, %c0_250] : memref<2x96x128xf32, #tpu.memory_space<vmem>>, vector<1x64x128xf32>
    %281 = vector.shape_cast %280 : vector<1x64x128xf32> to vector<64x128xf32>
    %cst_251 = arith.constant 0.000000e+00 : f32
    %282 = vector.broadcast %cst_251 : f32 to vector<64x128xf32>
    %283 = arith.select %89, %281, %282 : vector<64x128xi1>, vector<64x128xf32>
    %284 = arith.truncf %283 : vector<64x128xf32> to vector<64x128xbf16>
    %c64_252 = arith.constant 64 : index
    %c1024_253 = arith.constant 1024 : index
    %285 = vector.load %arg12[%c64_252, %c1024_253] : memref<128x1152xbf16, #tpu.memory_space<vmem>>, vector<64x128xbf16>
    tpu.vector_store %arg12[%c64_252, %c1024_253], %284 {strides = array<i32>} : memref<128x1152xbf16, #tpu.memory_space<vmem>>, vector<64x128xbf16>,
    %c0_254 = arith.constant 0 : index
    %c0_255 = arith.constant 0 : index
    %286 = vector.load %arg12[%c0_254, %c0_255] : memref<128x1152xbf16, #tpu.memory_space<vmem>>, vector<128x1152xbf16>
    %c0_256 = arith.constant 0 : index
    %c0_257 = arith.constant 0 : index
    %287 = vector.load %arg4[%c0_256, %c0_257] : memref<1152x128xbf16, #tpu.memory_space<vmem>>, vector<1152x128xbf16>
    %cst_258 = arith.constant dense<0.000000e+00> : vector<128x128xf32>
    %288 = tpu.matmul %286, %287, %cst_258 {dimension_numbers = #tpu.dot_dimension_numbers<[1], [0], [0], [1], [0, 0, 1, 1], [], []>} : vector<128x1152xbf16>, vector<1152x128xbf16>, vector<128x128xf32> -> vector<128x128xf32>
    %289 = vector.broadcast %3 : vector<1x128xf32> to vector<128x128xf32>
    %290 = arith.addf %288, %289 : vector<128x128xf32>
    %cst_259 = arith.constant 1.000000e-01 : f32
    %291 = vector.broadcast %cst_259 : f32 to vector<128x128xf32>
    %292 = arith.mulf %291, %290 : vector<128x128xf32>
    %293 = arith.maximumf %290, %292 : vector<128x128xf32>
    %294 = arith.truncf %293 : vector<128x128xf32> to vector<128x128xbf16>
    %c0_260 = arith.constant 0 : index
    %c0_261 = arith.constant 0 : index
    %295 = vector.load %arg5[%c0_260, %c0_261] : memref<128x128xbf16, #tpu.memory_space<vmem>>, vector<128x128xbf16>
    %cst_262 = arith.constant dense<0.000000e+00> : vector<128x128xf32>
    %296 = tpu.matmul %294, %295, %cst_262 {dimension_numbers = #tpu.dot_dimension_numbers<[1], [0], [0], [1], [0, 0, 1, 1], [], []>} : vector<128x128xbf16>, vector<128x128xbf16>, vector<128x128xf32> -> vector<128x128xf32>
    %297 = vector.broadcast %4 : vector<1x128xf32> to vector<128x128xf32>
    %298 = arith.addf %296, %297 : vector<128x128xf32>
    %c0_263 = arith.constant 0 : index
    %c0_264 = arith.constant 0 : index
    %299 = vector.load %arg7[%c0_263, %c0_264] : memref<8x128xf32, #tpu.memory_space<vmem>>, vector<8x128xf32>
    %300 = vector.extract_strided_slice %299 {offsets = [0, 0], sizes = [1, 128], strides = [1, 1]} : vector<8x128xf32> to vector<1x128xf32>
    %cst_265 = arith.constant 5.000000e-01 : f32
    %301 = vector.broadcast %cst_265 : f32 to vector<1x128xf32>
    %302 = arith.cmpf ogt, %300, %301 : vector<1x128xf32>
    %303 = vector.extract_strided_slice %299 {offsets = [1, 0], sizes = [1, 128], strides = [1, 1]} : vector<8x128xf32> to vector<1x128xf32>
    %cst_266 = arith.constant 5.000000e-01 : f32
    %304 = vector.broadcast %cst_266 : f32 to vector<1x128xf32>
    %305 = arith.cmpf ogt, %303, %304 : vector<1x128xf32>
    %306 = vector.extract_strided_slice %299 {offsets = [2, 0], sizes = [1, 128], strides = [1, 1]} : vector<8x128xf32> to vector<1x128xf32>
    %307 = arith.negf %298 : vector<128x128xf32>
    %308 = math.exp %307 : vector<128x128xf32>
    %cst_267 = arith.constant 1.000000e+00 : f32
    %309 = vector.broadcast %cst_267 : f32 to vector<128x128xf32>
    %310 = arith.addf %309, %308 : vector<128x128xf32>
    %311 = arith.divf %309, %310 : vector<128x128xf32>
    %cst_268 = arith.constant 2.000000e+00 : f32
    %312 = vector.broadcast %cst_268 : f32 to vector<128x128xf32>
    %313 = arith.mulf %311, %312 : vector<128x128xf32>
    %c0_269 = arith.constant 0 : index
    %c0_270 = arith.constant 0 : index
    %314 = vector.load %arg8[%c0_269, %c0_270] : memref<128x128xf32, #tpu.memory_space<vmem>>, vector<128x128xf32>
    %315 = arith.addf %313, %314 : vector<128x128xf32>
    %cst_271 = arith.constant 0.000000e+00 : f32
    %316 = vector.shape_cast %305 : vector<1x128xi1> to vector<1x128xi1>
    %317 = vector.broadcast %316 : vector<1x128xi1> to vector<128x128xi1>
    %318 = vector.broadcast %cst_271 : f32 to vector<128x128xf32>
    %319 = arith.select %317, %298, %318 : vector<128x128xi1>, vector<128x128xf32>
    %320 = math.exp %319 : vector<128x128xf32>
    %321 = vector.broadcast %306 : vector<1x128xf32> to vector<128x128xf32>
    %322 = arith.mulf %320, %321 : vector<128x128xf32>
    %323 = vector.shape_cast %305 : vector<1x128xi1> to vector<1x128xi1>
    %324 = vector.broadcast %323 : vector<1x128xi1> to vector<128x128xi1>
    %325 = arith.select %324, %322, %311 : vector<128x128xi1>, vector<128x128xf32>
    %326 = vector.shape_cast %302 : vector<1x128xi1> to vector<1x128xi1>
    %327 = vector.broadcast %326 : vector<1x128xi1> to vector<128x128xi1>
    %328 = arith.select %327, %315, %325 : vector<128x128xi1>, vector<128x128xf32>
    %c0_272 = arith.constant 0 : index
    %c0_273 = arith.constant 0 : index
    %c0_274 = arith.constant 0 : index
    %329 = vector.load %arg9[%c0_272, %c0_273, %c0_274] : memref<1x128x128xf32, #tpu.memory_space<vmem>>, vector<1x128x128xf32>
    %330 = vector.shape_cast %329 : vector<1x128x128xf32> to vector<128x128xf32>
    %331 = vector.shape_cast %328 : vector<128x128xf32> to vector<1x128x128xf32>
    tpu.vector_store %arg9[%c0_272, %c0_273, %c0_274], %331 {strides = array<i32>} : memref<1x128x128xf32, #tpu.memory_space<vmem>>, vector<1x128x128xf32>,
    return
  }
  func.func @transform_0(%arg0: i32) -> (i32, i32, i32) {
    %c0_i32 = arith.constant 0 : i32
    %c0_i32_0 = arith.constant 0 : i32
    %c0_i32_1 = arith.constant 0 : i32
    return %arg0, %c0_i32, %c0_i32_0 : i32, i32, i32
  }
  func.func @transform_1(%arg0: i32) -> (i32, i32) {
    %c0_i32 = arith.constant 0 : i32
    %c0_i32_0 = arith.constant 0 : i32
    %c0_i32_1 = arith.constant 0 : i32
    return %c0_i32, %c0_i32_0 : i32, i32
  }
  func.func @transform_2(%arg0: i32) -> (i32, i32) {
    %c0_i32 = arith.constant 0 : i32
    %c0_i32_0 = arith.constant 0 : i32
    %c0_i32_1 = arith.constant 0 : i32
    return %c0_i32, %c0_i32_0 : i32, i32
  }
  func.func @transform_3(%arg0: i32) -> (i32, i32) {
    %c0_i32 = arith.constant 0 : i32
    %c0_i32_0 = arith.constant 0 : i32
    %c0_i32_1 = arith.constant 0 : i32
    return %c0_i32, %c0_i32_0 : i32, i32
  }
  func.func @transform_4(%arg0: i32) -> (i32, i32) {
    %c0_i32 = arith.constant 0 : i32
    %c0_i32_0 = arith.constant 0 : i32
    %c0_i32_1 = arith.constant 0 : i32
    return %c0_i32, %c0_i32_0 : i32, i32
  }
  func.func @transform_5(%arg0: i32) -> (i32, i32) {
    %c0_i32 = arith.constant 0 : i32
    %c0_i32_0 = arith.constant 0 : i32
    %c0_i32_1 = arith.constant 0 : i32
    return %c0_i32, %c0_i32_0 : i32, i32
  }
  func.func @transform_6(%arg0: i32) -> (i32, i32) {
    %c0_i32 = arith.constant 0 : i32
    %c0_i32_0 = arith.constant 0 : i32
    %c0_i32_1 = arith.constant 0 : i32
    return %c0_i32, %c0_i32_0 : i32, i32
  }
  func.func @transform_7(%arg0: i32) -> (i32, i32) {
    %c0_i32 = arith.constant 0 : i32
    %c0_i32_0 = arith.constant 0 : i32
    %c0_i32_1 = arith.constant 0 : i32
    return %c0_i32, %c0_i32_0 : i32, i32
  }
  func.func @transform_8(%arg0: i32) -> (i32, i32, i32) {
    %c0_i32 = arith.constant 0 : i32
    %c0_i32_0 = arith.constant 0 : i32
    %c0_i32_1 = arith.constant 0 : i32
    return %arg0, %c0_i32, %c0_i32_0 : i32, i32, i32
  }
}

</mosaic_0001>

<bundles_post_ra>
// kernel: yolov3_forward.1
= control target key start
LH: loop header
LB: loop body
LE: loop exit
PB: predicated region body
PF: predicated region fallthrough
CT: control target
= control target key end

     0   :  { %s6327_s27 = smov 0   ;;  %s8342_s0 = inlined_call_operand.vmem [shape: bf16[2,512,128], index: 0, kind: input, shape index: {}]   ;;  %s8343_s1 = inlined_call_operand.vmem [shape: bf16[128,128], index: 1, kind: input, shape index: {}]   ;;  %s8344_s2 = inlined_call_operand.vmem [shape: bf16[1152,128], index: 2, kind: input, shape index: {}]   ;;  %s8345_s3 = inlined_call_operand.vmem [shape: bf16[1152,128], index: 3, kind: input, shape index: {}]   ;;  %s8346_s4 = inlined_call_operand.vmem [shape: bf16[128,128], index: 4, kind: input, shape index: {}]   ;;  %s8347_s5 = inlined_call_operand.vmem [shape: f32[8,128], index: 5, kind: input, shape index: {}]   ;;  %s8348_s6 = inlined_call_operand.vmem [shape: f32[8,128], index: 6, kind: input, shape index: {}]   ;;  %s8349_s7 = inlined_call_operand.vmem [shape: f32[128,128], index: 7, kind: input, shape index: {}]   ;;  %s8350_s8 = inlined_call_operand.vmem [shape: f32[2,128,128], index: 8, kind: output, shape index: {}]  }
   0x1 LB: > { %s4741_s28 = sadd.s32 4294967295, %s6278_s27   ;;  %p4745_p0 = scmp.ge.s32.totalorder %s6278_s27, 1  ;;  %s6278_s27 = sphi %s6327_s27, %s18_s27  }
   0x2   : > { %p262_p1 = scmp.lt.s32.totalorder %s6278_s27, 3 }
   0x4   : > { %p263_p2 = pnand %p4745_p0, %p262_p1 }
   0x6   : > { %266 = sbr.rel (%p263_p2) target bundleno = 1359 (0x54f), region = 52 }
   0xd   : > { %v5980_v0 = vld [vmem:[%s8343_s1] sm:$0xff]   ;;  %p296_p3 = scmp.lt.s32.totalorder %s4741_s28, 1  ;;  %v5981_v1 = vld [vmem:[%s8343_s1 + $0x8] sm:$0xff]   ;;  %v5982_v2 = vld [vmem:[%s8343_s1 + $0x10] sm:$0xff]   ;;  %v6280_v55 = vmov 0.0  }
   0xe   : > { %5778 = vmatprep.subr.bf16.mxu0 %v5980_v0  ;;  %v5983_v3 = vld [vmem:[%s8343_s1 + $0x18] sm:$0xff]   ;;  %v5984_v5 = vld [vmem:[%s8343_s1 + $0x20] sm:$0xff]   ;;  %v5985_v6 = vld [vmem:[%s8343_s1 + $0x28] sm:$0xff]   ;;  %308 = vst [vmem:[#allocation2 + $0x8] sm:$0xff] %v6280_v55 }
   0xf   : > { %s8454_s28 = smov (!%p296_p3, %s4741_s28), 1  ;;  %5779 = vmatpush3.bf16.msra.mxu0 %v5980_v0  ;;  %v5986_v7 = vld [vmem:[%s8343_s1 + $0x30] sm:$0xff]   ;;  %v5987_v8 = vld [vmem:[%s8343_s1 + $0x38] sm:$0xff]   ;;  %v6020_v31 = vld [vmem:[%s8344_s2 + $0x140] sm:$0xff]   ;;  %310 = vst [vmem:[#allocation2 + $0x58] sm:$0xff] %v6280_v55 }
  0x10   : > { %5780 = vmatprep.subr.bf16.mxu0 %v5981_v1  ;;  %s4960_s13 = sshll.u32 %s8454_s28, 8  ;;  %v6021_v32 = vld [vmem:[%s8344_s2 + $0x100] sm:$0xff]   ;;  %v6022_v34 = vld [vmem:[%s8344_s2 + $0x148] sm:$0xff]   ;;  %v6024_v37 = vld [vmem:[%s8344_s2 + $0x150] sm:$0xff]   ;;  %314 = vst [vmem:[#allocation2 + $0xf8] sm:$0xff] %v6280_v55  ;;  %s4961_s21 = sshll.u32 %s8454_s28, 7 }
  0x11   : > { %s6350_s16 = scalar_lea.vmem %s8342_s0, %s4960_s13  ;;  %v6023_v36 = vld [vmem:[%s8344_s2 + $0x108] sm:$0xff]   ;;  %v6025_v38 = vld [vmem:[%s8344_s2 + $0x110] sm:$0xff]   ;;  %v6026_v40 = vld [vmem:[%s8344_s2 + $0x158] sm:$0xff]   ;;  %318 = vst [vmem:[#allocation2 + $0x198] sm:$0xff] %v6280_v55  ;;  %s8170_s29 = scalar_lea.vmem %s8350_s8, %s4961_s21 }
  0x12   : > { %v5988_v4 = vld [vmem:[%s6350_s16] sm:$0xff]   ;;  %v5989_v9 = vld [vmem:[%s6350_s16 + $0x8] sm:$0xff]   ;;  %v5990_v10 = vld [vmem:[%s6350_s16 + $0x10] sm:$0xff]   ;;  %322 = vst [vmem:[#allocation2 + $0x238] sm:$0xff] %v6280_v55 }
  0x13   : > { %5781 = vmatpush3.bf16.msra.mxu0 %v5981_v1  ;;  %5794 = vmatprep.mubr.bf16.mxu0 %v5988_v4  ;;  %v5991_v11 = vld [vmem:[%s6350_s16 + $0x18] sm:$0xff]   ;;  %v5992_v12 = vld [vmem:[%s6350_s16 + $0x20] sm:$0xff]   ;;  %v5993_v13 = vld [vmem:[%s6350_s16 + $0x28] sm:$0xff]   ;;  %323 = vst [vmem:[#allocation3 + $0x8] sm:$0xff] %v6280_v55 }
  0x14   : > { %5782 = vmatprep.subr.bf16.mxu0 %v5982_v2  ;;  %v5994_v14 = vld [vmem:[%s6350_s16 + $0x30] sm:$0xff]   ;;  %v5995_v15 = vld [vmem:[%s6350_s16 + $0x38] sm:$0xff]   ;;  %v5996_v16 = vld [vmem:[%s6350_s16 + $0x40] sm:$0xff]   ;;  %324 = vst [vmem:[#allocation3 + $0x50] sm:$0xff] %v6280_v55 }
  0x15   : > { %v5997_v17 = vld [vmem:[%s6350_s16 + $0x48] sm:$0xff]   ;;  %v5998_v18 = vld [vmem:[%s6350_s16 + $0x50] sm:$0xff]   ;;  %v5999_v19 = vld [vmem:[%s6350_s16 + $0x58] sm:$0xff]   ;;  %326 = vst [vmem:[#allocation3 + $0x68] sm:$0xff] %v6280_v55 }
  0x16   : > { %v6000_v20 = vld [vmem:[%s6350_s16 + $0x60] sm:$0xff]   ;;  %v6001_v21 = vld [vmem:[%s6350_s16 + $0x68] sm:$0xff]   ;;  %v6002_v22 = vld [vmem:[%s6350_s16 + $0x70] sm:$0xff]   ;;  %327 = vst [vmem:[#allocation3 + $0xb0] sm:$0xff] %v6280_v55 }
  0x17   : > { %5783 = vmatpush3.bf16.msra.mxu0 %v5982_v2  ;;  %v6003_v23 = vld [vmem:[%s6350_s16 + $0x78] sm:$0xff]   ;;  %v6004_v24 = vld [vmem:[%s6350_s16 + $0x80] sm:$0xff]   ;;  %v6005_v25 = vld [vmem:[%s6350_s16 + $0x88] sm:$0xff]  }
  0x18   : > { %5784 = vmatprep.subr.bf16.mxu0 %v5983_v3  ;;  %v6006_v26 = vld [vmem:[%s6350_s16 + $0x90] sm:$0xff]   ;;  %v6007_v27 = vld [vmem:[%s6350_s16 + $0x98] sm:$0xff]   ;;  %v6008_v28 = vld [vmem:[%s6350_s16 + $0xa0] sm:$0xff]  }
  0x19   : > { %v6009_v29 = vld [vmem:[%s6350_s16 + $0xa8] sm:$0xff]   ;;  %v6010_v30 = vld [vmem:[%s6350_s16 + $0xb0] sm:$0xff]   ;;  %v6011_v33 = vld [vmem:[%s6350_s16 + $0xb8] sm:$0xff]  }
  0x1a   : > { %v6012_v35 = vld [vmem:[%s6350_s16 + $0xc0] sm:$0xff]   ;;  %v6013_v39 = vld [vmem:[%s6350_s16 + $0xc8] sm:$0xff]   ;;  %v6014_v41 = vld [vmem:[%s6350_s16 + $0xd0] sm:$0xff]  }
  0x1b   : > { %5785 = vmatpush3.bf16.msra.mxu0 %v5983_v3  ;;  %v6027_v42 = vld [vmem:[%s8344_s2 + $0x118] sm:$0xff]   ;;  %v6028_v43 = vld [vmem:[%s8344_s2 + $0x160] sm:$0xff]   ;;  %v6030_v46 = vld [vmem:[%s8344_s2 + $0x168] sm:$0xff]  }
  0x1c   : > { %5786 = vmatprep.subr.bf16.mxu0 %v5984_v5  ;;  %v6029_v44 = vld [vmem:[%s8344_s2 + $0x120] sm:$0xff]   ;;  %v6015_v45 = vld [vmem:[%s6350_s16 + $0xd8] sm:$0xff]   ;;  %v6031_v48 = vld [vmem:[%s8344_s2 + $0x128] sm:$0xff]  }
  0x1d   : > { %v6016_v47 = vld [vmem:[%s6350_s16 + $0xe0] sm:$0xff]   ;;  %v6032_v49 = vld [vmem:[%s8344_s2 + $0x170] sm:$0xff]   ;;  %v6017_v51 = vld [vmem:[%s6350_s16 + $0xe8] sm:$0xff]  }
  0x1e   : > { %v6033_v50 = vld [vmem:[%s8344_s2 + $0x130] sm:$0xff]   ;;  %v6034_v52 = vld [vmem:[%s8344_s2 + $0x178] sm:$0xff]   ;;  %v6035_v56 = vld [vmem:[%s8344_s2 + $0x40] sm:$0xff]  }
  0x1f   : > { %5787 = vmatpush3.bf16.msra.mxu0 %v5984_v5  ;;  %v6018_v53 = vld [vmem:[%s6350_s16 + $0xf0] sm:$0xff]   ;;  %v6036_v54 = vld [vmem:[%s8344_s2 + $0x138] sm:$0xff]   ;;  %v6037_v58 = vld [vmem:[%s8344_s2] sm:$0xff]   ;;  %5218 = vmatprep.subr.bf16.mxu1 %v6035_v56 }
  0x20   : > { %5788 = vmatprep.subr.bf16.mxu0 %v5985_v6  ;;  %v6019_v57 = vld [vmem:[%s6350_s16 + $0xf8] sm:$0xff]   ;;  %5219 = vmatpush3.bf16.msra.mxu1 %v6037_v58  ;;  %v6038_v59 = vld [vmem:[%s8344_s2 + $0x48] sm:$0xff]   ;;  %v6040_v61 = vld [vmem:[%s8344_s2 + $0x50] sm:$0xff]  }
  0x21   : > { %v6039_v60 = vld [vmem:[%s8344_s2 + $0x8] sm:$0xff]   ;;  %5220 = vmatprep.subr.bf16.mxu1 %v6038_v59  ;;  %v6041_v62 = vld [vmem:[%s8344_s2 + $0x10] sm:$0xff]   ;;  %v6042_v63 = vld [vmem:[%s8344_s2 + $0x58] sm:$0xff]  }
  0x22   : > { %v6043_v0 = vld [vmem:[%s8344_s2 + $0x18] sm:$0xff]   ;;  %v6044_v1 = vld [vmem:[%s8344_s2 + $0x60] sm:$0xff]   ;;  %v6046_v3 = vld [vmem:[%s8344_s2 + $0x68] sm:$0xff]  }
  0x23   : > { %5789 = vmatpush3.bf16.msra.mxu0 %v5985_v6  ;;  %v6045_v2 = vld [vmem:[%s8344_s2 + $0x20] sm:$0xff]   ;;  %v6047_v4 = vld [vmem:[%s8344_s2 + $0x28] sm:$0xff]   ;;  %v6048_v5 = vld [vmem:[%s8344_s2 + $0x70] sm:$0xff]  }
  0x24   : > { %5790 = vmatprep.subr.bf16.mxu0 %v5986_v7  ;;  %5221 = vmatpush3.bf16.msra.mxu1 %v6039_v60  ;;  %v6049_v6 = vld [vmem:[%s8344_s2 + $0x30] sm:$0xff]  }
  0x25   : > { %5222 = vmatprep.subr.bf16.mxu1 %v6040_v61 }
  0x27   : > { %5791 = vmatpush3.bf16.msra.mxu0 %v5986_v7  ;;  %v6050_v7 = vld [vmem:[%s8344_s2 + $0x78] sm:$0xff]  }
  0x28   : > { %5792 = vmatprep.subr.bf16.mxu0 %v5987_v8  ;;  %5223 = vmatpush3.bf16.msra.mxu1 %v6041_v62 }
  0x29   : > { %5224 = vmatprep.subr.bf16.mxu1 %v6042_v63 }
  0x2b   : > { %5793 = vmatpush3.bf16.msra.mxu0 %v5987_v8  ;;  %v6051_v8 = vld [vmem:[%s8344_s2 + $0x38] sm:$0xff]  }
  0x2c   : > { %5346 = vmatprep.subr.bf16.mxu0 %v6020_v31  ;;  %5225 = vmatpush3.bf16.msra.mxu1 %v6043_v0 }
  0x2d   : > { %5226 = vmatprep.subr.bf16.mxu1 %v6044_v1 }
  0x2e   : > { %5795 = vmatmul.mubr.bf16.vlgmr.msra.gmra.mrb[0].mxu0 %v5989_v9  ;;  %v6507_v9 = vld [vmem:[%s8344_s2 + $0x200] sm:$0xff]  }
  0x2f   : > { %5798 = vmatprep.mubr.bf16.mxu0 %v5990_v10  ;;  %5347 = vmatpush3.bf16.msra.mxu0 %v6021_v32  ;;  %v6052_v10 = vld [vmem:[%s8344_s2 + $0xc0] sm:$0xff]  }
  0x30   : > { %5348 = vmatprep.subr.bf16.mxu0 %v6022_v34  ;;  %5227 = vmatpush3.bf16.msra.mxu1 %v6045_v2 }
  0x31   : > { %5228 = vmatprep.subr.bf16.mxu1 %v6046_v3 }
  0x33   : > { %5349 = vmatpush3.bf16.msra.mxu0 %v6023_v36 }
  0x34   : > { %5350 = vmatprep.subr.bf16.mxu0 %v6024_v37  ;;  %5229 = vmatpush3.bf16.msra.mxu1 %v6047_v4 }
  0x35   : > { %5230 = vmatprep.subr.bf16.mxu1 %v6048_v5 }
  0x36   : > { %5799 = vmatmul.mubr.bf16.gmra.mrb[4].mxu0 %v5991_v11  ;;  %v408_v11 = vlaneseq }
  0x37   : > { %5802 = vmatprep.mubr.bf16.mxu0 %v5992_v12  ;;  %5351 = vmatpush3.bf16.msra.mxu0 %v6025_v38 }
  0x38   : > { %5352 = vmatprep.subr.bf16.mxu0 %v6026_v40  ;;  %5231 = vmatpush3.bf16.msra.mxu1 %v6049_v6  ;;  %v6513_v12 = vshrl.u32 %v408_v11, 7 }
  0x39   : > { %5232 = vmatprep.subr.bf16.mxu1 %v6050_v7 }
  0x3a   : > { %8370 = vst [vmem:[#allocation5_spill] sm:$0xff] %v6513_v12 }
  0x3b   : > { %5353 = vmatpush3.bf16.msra.mxu0 %v6027_v42 }
  0x3c   : > { %5354 = vmatprep.subr.bf16.mxu0 %v6028_v43  ;;  %5233 = vmatpush3.bf16.msra.mxu1 %v6051_v8 }
  0x3d   : > { %5282 = vmatprep.subr.bf16.mxu1 %v6052_v10 }
  0x3e   : > { %5803 = vmatmul.mubr.bf16.gmra.mrb[8].mxu0 %v5993_v13  ;;  %v8351_v13 = vsub.s32 0, %v6513_v12 }
  0x3f   : > { %5806 = vmatprep.mubr.bf16.mxu0 %v5994_v14  ;;  %5355 = vmatpush3.bf16.msra.mxu0 %v6029_v44  ;;  %v307_v14 = vld [vmem:[%s8347_s5] sm:$0xff] }
  0x40   : > { %5356 = vmatprep.subr.bf16.mxu0 %v6030_v46 }
  0x43   : > { %5357 = vmatpush3.bf16.msra.mxu0 %v6031_v48 }
  0x44   : > { %5358 = vmatprep.subr.bf16.mxu0 %v6032_v49 }
  0x46   : > { %5807 = vmatmul.mubr.bf16.gmra.mrb[12].mxu0 %v5995_v15  ;;  %v6521_v15 = vrot.slane %v307_v14, %v8351_v13 }
  0x47   : > { %5810 = vmatprep.mubr.bf16.mxu0 %v5996_v16  ;;  %5359 = vmatpush3.bf16.msra.mxu0 %v6033_v50 }
  0x48   : > { %5360 = vmatprep.subr.bf16.mxu0 %v6034_v52 }
  0x4b   : > { %5361 = vmatpush3.bf16.msra.mxu0 %v6036_v54 }
  0x4c   : > { %5858 = vmatprep.subr.bf16.mxu0 %v6507_v9 }
  0x4e   : > { %5811 = vmatmul.mubr.bf16.gmra.mrb[16].mxu0 %v5997_v17 }
  0x4f   : > { %5814 = vmatprep.mubr.bf16.mxu0 %v5998_v18 }
  0x56   : > { %5815 = vmatmul.mubr.bf16.gmra.mrb[20].mxu0 %v5999_v19 }
  0x57   : > { %5818 = vmatprep.mubr.bf16.mxu0 %v6000_v20 }
  0x5e   : > { %5819 = vmatmul.mubr.bf16.gmra.mrb[24].mxu0 %v6001_v21 }
  0x5f   : > { %5822 = vmatprep.mubr.bf16.mxu0 %v6002_v22 }
  0x66   : > { %5823 = vmatmul.mubr.bf16.gmra.mrb[28].mxu0 %v6003_v23 }
  0x67   : > { %5826 = vmatprep.mubr.bf16.mxu0 %v6004_v24 }
  0x6e   : > { %5827 = vmatmul.mubr.bf16.gmra.mrb[32].mxu0 %v6005_v25 }
  0x6f   : > { %5830 = vmatprep.mubr.bf16.mxu0 %v6006_v26 }
  0x76   : > { %5831 = vmatmul.mubr.bf16.gmra.mrb[36].mxu0 %v6007_v27 }
  0x77   : > { %5834 = vmatprep.mubr.bf16.mxu0 %v6008_v28 }
  0x7e   : > { %5835 = vmatmul.mubr.bf16.gmra.mrb[40].mxu0 %v6009_v29 }
  0x7f   : > { %5838 = vmatprep.mubr.bf16.mxu0 %v6010_v30 }
  0x86   : > { %5839 = vmatmul.mubr.bf16.gmra.mrb[44].mxu0 %v6011_v33 }
  0x87   : > { %5842 = vmatprep.mubr.bf16.mxu0 %v6012_v35 }
  0x8e   : > { %5843 = vmatmul.mubr.bf16.gmra.mrb[48].mxu0 %v6013_v39 }
  0x8f   : > { %5846 = vmatprep.mubr.bf16.mxu0 %v6014_v41 }
  0x96   : > { %5847 = vmatmul.mubr.bf16.gmra.mrb[52].mxu0 %v6015_v45 }
  0x97   : > { %5850 = vmatprep.mubr.bf16.mxu0 %v6016_v47 }
  0x9e   : > { %5851 = vmatmul.mubr.bf16.gmra.mrb[56].mxu0 %v6017_v51 }
  0x9f   : > { %5854 = vmatprep.mubr.bf16.mxu0 %v6018_v53 }
  0xa6   : > { %5855 = vmatmul.mubr.bf16.gmra.mrb[60].mxu0 %v6019_v57 }
 0x101   : > { %v5796_v16 = vpop.f32.mrb[0].mxu0 }
 0x102   : > { %v695_v17 = vadd.f32 %v5796_v16, %v6521_v15  ;;  %v686_v18 = vpop.f32.mrb[1].mxu0 }
 0x103   : > { %v687_v19 = vadd.f32 %v686_v18, %v6521_v15  ;;  %v5797_v20 = vpop.f32.mrb[2].mxu0 }
 0x104   : > { %v943_v21 = vmul.f32 0.1, %v695_v17  ;;  %v698_v22 = vadd.f32 %v5797_v20, %v6521_v15  ;;  %v689_v23 = vpop.f32.mrb[3].mxu0 }
 0x105   : > { %v941_v24 = vmul.f32 0.1, %v687_v19  ;;  %v690_v25 = vadd.f32 %v689_v23, %v6521_v15 }
 0x106   : > { %v1007_v26 = vmax.f32 %v695_v17, %v943_v21  ;;  %v944_v27 = vmul.f32 0.1, %v698_v22 }
 0x107   : > { %v1005_v28 = vmax.f32 %v687_v19, %v941_v24  ;;  %v942_v29 = vmul.f32 0.1, %v690_v25  ;;  %v6056_v19 = vld [vmem:[%s8344_s2 + $0x208] sm:$0xff]  }
 0x108   : > { %v1008_v30 = vmax.f32 %v698_v22, %v944_v27  ;;  %v6058_v27 = vld [vmem:[%s8344_s2 + $0x210] sm:$0xff]  }
 0x109   : > { %v1006_v31 = vmax.f32 %v690_v25, %v942_v29  ;;  %v5800_v32 = vpop.f32.mrb[4].mxu0 }
 0x10a   : > { %v711_v33 = vadd.f32 %v5800_v32, %v6521_v15  ;;  %v702_v34 = vpop.f32.mrb[5].mxu0  ;;  %v6528_v35 = vpack.c.bf16 %v1008_v30, %v1007_v26 }
 0x10b   : > { %v703_v36 = vadd.f32 %v702_v34, %v6521_v15  ;;  %v5801_v37 = vpop.f32.mrb[6].mxu0  ;;  %v1334_v38 = vpack.c.bf16 %v1006_v31, %v1005_v28 }
 0x10c   : > { %v947_v39 = vmul.f32 0.1, %v711_v33  ;;  %v714_v40 = vadd.f32 %v5801_v37, %v6521_v15  ;;  %v705_v41 = vpop.f32.mrb[7].mxu0 }
 0x10d   : > { %v945_v42 = vmul.f32 0.1, %v703_v36  ;;  %v706_v43 = vadd.f32 %v705_v41, %v6521_v15 }
 0x10e   : > { %v1011_v44 = vmax.f32 %v711_v33, %v947_v39  ;;  %v948_v45 = vmul.f32 0.1, %v714_v40  ;;  %v6060_v39 = vld [vmem:[%s8344_s2 + $0x218] sm:$0xff]  }
 0x10f   : > { %v1009_v46 = vmax.f32 %v703_v36, %v945_v42  ;;  %v946_v47 = vmul.f32 0.1, %v706_v43 }
 0x110   : > { %v1012_v48 = vmax.f32 %v714_v40, %v948_v45 }
 0x111   : > { %v1010_v49 = vmax.f32 %v706_v43, %v946_v47  ;;  %v5804_v50 = vpop.f32.mrb[8].mxu0  ;;  %v6062_v47 = vld [vmem:[%s8344_s2 + $0x220] sm:$0xff]  }
 0x112   : > { %v727_v51 = vadd.f32 %v5804_v50, %v6521_v15  ;;  %v718_v52 = vpop.f32.mrb[9].mxu0  ;;  %v6534_v53 = vpack.c.bf16 %v1012_v48, %v1011_v44 }
 0x113   : > { %v719_v54 = vadd.f32 %v718_v52, %v6521_v15  ;;  %v5805_v56 = vpop.f32.mrb[10].mxu0  ;;  %v6537_v57 = vpack.c.bf16 %v1010_v49, %v1009_v46 }
 0x114   : > { %v951_v58 = vmul.f32 0.1, %v727_v51  ;;  %v730_v59 = vadd.f32 %v5805_v56, %v6521_v15  ;;  %v721_v60 = vpop.f32.mrb[11].mxu0 }
 0x115   : > { %v949_v61 = vmul.f32 0.1, %v719_v54  ;;  %v722_v62 = vadd.f32 %v721_v60, %v6521_v15 }
 0x116   : > { %v1015_v63 = vmax.f32 %v727_v51, %v951_v58  ;;  %v952_v0 = vmul.f32 0.1, %v730_v59 }
 0x117   : > { %v1013_v1 = vmax.f32 %v719_v54, %v949_v61  ;;  %v950_v2 = vmul.f32 0.1, %v722_v62  ;;  %v6064_v61 = vld [vmem:[%s8344_s2 + $0x228] sm:$0xff]  }
 0x118   : > { %1079 = vst [vmem:[#allocation2 + $0x70] sm:$0xff] %v1015_v63  ;;  %v1016_v3 = vmax.f32 %v730_v59, %v952_v0 }
 0x119   : > { %1077 = vst [vmem:[#allocation2 + $0x60] sm:$0xff] %v1013_v1  ;;  %v1014_v4 = vmax.f32 %v722_v62, %v950_v2  ;;  %v5808_v5 = vpop.f32.mrb[12].mxu0 }
 0x11a   : > { %1080 = vst [vmem:[#allocation2 + $0x78] sm:$0xff] %v1016_v3  ;;  %v743_v6 = vadd.f32 %v5808_v5, %v6521_v15  ;;  %v734_v7 = vpop.f32.mrb[13].mxu0  ;;  %v1367_v8 = vpack.c.bf16 %v1016_v3, %v1015_v63  ;;  %v6066_v5 = vld [vmem:[%s8344_s2 + $0x230] sm:$0xff]  }
 0x11b   : > { %1078 = vst [vmem:[#allocation2 + $0x68] sm:$0xff] %v1014_v4  ;;  %v735_v10 = vadd.f32 %v734_v7, %v6521_v15  ;;  %v5809_v11 = vpop.f32.mrb[14].mxu0  ;;  %v1366_v14 = vpack.c.bf16 %v1014_v4, %v1013_v1 }
 0x11c   : > { %v955_v16 = vmul.f32 0.1, %v743_v6  ;;  %v746_v17 = vadd.f32 %v5809_v11, %v6521_v15  ;;  %v737_v18 = vpop.f32.mrb[15].mxu0 }
 0x11d   : > { %v953_v20 = vmul.f32 0.1, %v735_v10  ;;  %v738_v21 = vadd.f32 %v737_v18, %v6521_v15  ;;  %2380 = vmatprep.mubr.bf16.mxu0 %v1366_v14 }
 0x11e   : > { %v6548_v22 = vmax.f32 %v743_v6, %v955_v16  ;;  %v956_v23 = vmul.f32 0.1, %v746_v17  ;;  %2381 = vmatmul.mubr.bf16.vlgmr.msra.gmra.mrb[64].mxu0 %v1334_v38 }
 0x11f   : > { %v1017_v24 = vmax.f32 %v735_v10, %v953_v20  ;;  %v954_v25 = vmul.f32 0.1, %v738_v21  ;;  %2388 = vmatprep.mubr.bf16.mxu0 %v1367_v8  ;;  %5859 = vmatpush3.bf16.msra.mxu0 %v6507_v9  ;;  %v6607_v20 = vadd.s32 8, %v6513_v12 }
 0x120   : > { %1083 = vst [vmem:[#allocation2 + $0x90] sm:$0xff] %v6548_v22  ;;  %v1020_v26 = vmax.f32 %v746_v17, %v956_v23  ;;  %5860 = vmatprep.subr.bf16.mxu0 %v6056_v19 }
 0x121   : > { %1081 = vst [vmem:[#allocation2 + $0x80] sm:$0xff] %v1017_v24  ;;  %v1018_v28 = vmax.f32 %v738_v21, %v954_v25  ;;  %v5812_v29 = vpop.f32.mrb[16].mxu0  ;;  %v6068_v21 = vld [vmem:[%s8344_s2 + $0x238] sm:$0xff]  }
 0x122   : > { %1084 = vst [vmem:[#allocation2 + $0x98] sm:$0xff] %v1020_v26  ;;  %v759_v30 = vadd.f32 %v5812_v29, %v6521_v15  ;;  %v750_v31 = vpop.f32.mrb[17].mxu0  ;;  %v1369_v32 = vpack.c.bf16 %v1020_v26, %v6548_v22  ;;  %v8359_v29 = vand.u32 7, %v6513_v12 }
 0x123   : > { %1082 = vst [vmem:[#allocation2 + $0x88] sm:$0xff] %v1018_v28  ;;  %v751_v9 = vadd.f32 %v750_v31, %v6521_v15  ;;  %v5813_v33 = vpop.f32.mrb[18].mxu0  ;;  %v1368_v34 = vpack.c.bf16 %v1018_v28, %v1017_v24  ;;  %5861 = vmatpush3.bf16.msra.mxu0 %v6056_v19 }
 0x124   : > { %v959_v36 = vmul.f32 0.1, %v759_v30  ;;  %v762_v37 = vadd.f32 %v5813_v33, %v6521_v15  ;;  %v753_v38 = vpop.f32.mrb[19].mxu0  ;;  %5862 = vmatprep.subr.bf16.mxu0 %v6058_v27  ;;  %vm1150_vm0 = vcmp.ne.s32.totalorder %v8359_v29, 0 }
 0x125   : > { %v957_v40 = vmul.f32 0.1, %v751_v9  ;;  %v754_v41 = vadd.f32 %v753_v38, %v6521_v15 }
 0x126   : > { %v6563_v42 = vmax.f32 %v759_v30, %v959_v36  ;;  %v960_v43 = vmul.f32 0.1, %v762_v37  ;;  %2389 = vmatmul.mubr.bf16.gmra.mrb[68].mxu0 %v6528_v35  ;;  %v8358_v30 = vand.u32 7, %v6607_v20 }
 0x127   : > { %v1021_v44 = vmax.f32 %v751_v9, %v957_v40  ;;  %v958_v45 = vmul.f32 0.1, %v754_v41  ;;  %2396 = vmatprep.mubr.bf16.mxu0 %v1368_v34  ;;  %5863 = vmatpush3.bf16.msra.mxu0 %v6058_v27 }
 0x128   : > { %1087 = vst [vmem:[#allocation2 + $0xc0] sm:$0xff] %v6563_v42  ;;  %v6567_v46 = vmax.f32 %v762_v37, %v960_v43  ;;  %5864 = vmatprep.subr.bf16.mxu0 %v6060_v39  ;;  %vm1151_vm1 = vcmp.ne.s32.totalorder %v8358_v30, 0 }
 0x129   : > { %1085 = vst [vmem:[#allocation2 + $0xb0] sm:$0xff] %v1021_v44  ;;  %v6572_v48 = vmax.f32 %v754_v41, %v958_v45  ;;  %v5816_v49 = vpop.f32.mrb[20].mxu0  ;;  %v1222_v50 = vpack.c.bf16 %v1021_v44, %v6280_v55  ;;  %v6641_v44 = vadd.s32 16, %v6513_v12  ;;  %v6644_v45 = vadd.s32 24, %v6513_v12  ;;  %vm6653_vm2 = vmpackc.low %vm1151_vm1, %vm1150_vm0 }
 0x12a   : > { %1088 = vst [vmem:[#allocation2 + $0xc8] sm:$0xff] %v6567_v46  ;;  %v775_v35 = vadd.f32 %v5816_v49, %v6521_v15  ;;  %v766_v51 = vpop.f32.mrb[21].mxu0 }
 0x12b   : > { %1086 = vst [vmem:[#allocation2 + $0xb8] sm:$0xff] %v6572_v48  ;;  %v767_v52 = vadd.f32 %v766_v51, %v6521_v15  ;;  %v5817_v54 = vpop.f32.mrb[22].mxu0  ;;  %2186 = vmatprep.mubr.bf16.mxu1 %v1222_v50  ;;  %v1223_v56 = vpack.c.bf16 %v6563_v42, %v6572_v48  ;;  %5865 = vmatpush3.bf16.msra.mxu0 %v6060_v39  ;;  %v1166_v50 = vld [vmem:[#allocation2 + $0xf7] sm:$0xff] }
 0x12c   : > { %v963_v58 = vmul.f32 0.1, %v775_v35  ;;  %v778_v59 = vadd.f32 %v5817_v54, %v6521_v15  ;;  %v769_v60 = vpop.f32.mrb[23].mxu0  ;;  %5866 = vmatprep.subr.bf16.mxu0 %v6062_v47  ;;  %v6059_v42 = vld [vmem:[%s8344_s2 + $0xd0] sm:$0xff]  }
 0x12d   : > { %v961_v62 = vmul.f32 0.1, %v767_v52  ;;  %v770_v63 = vadd.f32 %v769_v60, %v6521_v15 }
 0x12e   : > { %v6586_v0 = vmax.f32 %v775_v35, %v963_v58  ;;  %v964_v1 = vmul.f32 0.1, %v778_v59  ;;  %2397 = vmatmul.mubr.bf16.gmra.mrb[72].mxu0 %v6537_v57 }
 0x12f   : > { %v6589_v2 = vmax.f32 %v767_v52, %v961_v62  ;;  %v962_v3 = vmul.f32 0.1, %v770_v63  ;;  %2404 = vmatprep.mubr.bf16.mxu0 %v1369_v32  ;;  %5867 = vmatpush3.bf16.msra.mxu0 %v6062_v47 }
 0x130   : > { %1091 = vst [vmem:[#allocation2 + $0xe0] sm:$0xff] %v6586_v0  ;;  %v1028_v4 = vmax.f32 %v778_v59, %v964_v1  ;;  %5868 = vmatprep.subr.bf16.mxu0 %v6064_v61  ;;  %v6053_v59 = vld [vmem:[%s8344_s2 + $0x80] sm:$0xff]   ;;  %v8356_v1 = vand.u32 7, %v6644_v45 }
 0x131   : > { %1089 = vst [vmem:[#allocation2 + $0xd0] sm:$0xff] %v6589_v2  ;;  %v6596_v6 = vmax.f32 %v770_v63, %v962_v3  ;;  %v5820_v7 = vpop.f32.mrb[24].mxu0  ;;  %v1224_v57 = vpack.c.bf16 %v6589_v2, %v6567_v46  ;;  %v8357_v63 = vand.u32 7, %v6641_v44  ;;  %v6754_v46 = vadd.s32 48, %v6513_v12 }
 0x132   : > { %1092 = vst [vmem:[#allocation2 + $0xe8] sm:$0xff] %v1028_v4  ;;  %v791_v8 = vadd.f32 %v5820_v7, %v6521_v15  ;;  %v782_v10 = vpop.f32.mrb[25].mxu0  ;;  %v6055_v4 = vld [vmem:[%s8344_s2 + $0xc8] sm:$0xff]   ;;  %vm1153_vm4 = vcmp.ne.s32.totalorder %v8356_v1, 0  ;;  %v6757_v2 = vadd.s32 56, %v6513_v12 }
 0x133   : > { %1090 = vst [vmem:[#allocation2 + $0xd8] sm:$0xff] %v6596_v6  ;;  %v783_v11 = vadd.f32 %v782_v10, %v6521_v15  ;;  %v5821_v14 = vpop.f32.mrb[26].mxu0  ;;  %v1225_v16 = vpack.c.bf16 %v6586_v0, %v6596_v6  ;;  %5869 = vmatpush3.bf16.msra.mxu0 %v6064_v61  ;;  %vm1152_vm3 = vcmp.ne.s32.totalorder %v8357_v63, 0  ;;  %8378 = vst [vmem:[#allocation7_spill] sm:$0xff] %v6754_v46  ;;  %v6072_v0 = vld [vmem:[%s8344_s2 + $0xf0] sm:$0xff]  }
 0x134   : > { %v967_v17 = vmul.f32 0.1, %v791_v8  ;;  %v794_v18 = vadd.f32 %v5821_v14, %v6521_v15  ;;  %v785_v19 = vpop.f32.mrb[27].mxu0  ;;  %5870 = vmatprep.subr.bf16.mxu0 %v6066_v5  ;;  %vm6709_vm5 = vmpackc.low %vm1153_vm4, %vm1152_vm3  ;;  %8379 = vst [vmem:[#allocation8_spill] sm:$0xff] %v6757_v2 }
 0x135   : > { %v965_v22 = vmul.f32 0.1, %v783_v11  ;;  %v786_v23 = vadd.f32 %v785_v19, %v6521_v15 }
 0x136   : > { %v6613_v24 = vmax.f32 %v791_v8, %v967_v17  ;;  %v968_v25 = vmul.f32 0.1, %v794_v18  ;;  %2405 = vmatmul.mubr.bf16.gmra.mrb[76].mxu0 %v6534_v53  ;;  %v6681_v17 = vadd.s32 32, %v6513_v12 }
 0x137   : > { %v6616_v26 = vmax.f32 %v783_v11, %v965_v22  ;;  %v966_v27 = vmul.f32 0.1, %v786_v23  ;;  %5871 = vmatpush3.bf16.msra.mxu0 %v6066_v5 }
 0x138   : > { %1095 = vst [vmem:[#allocation2 + $0x110] sm:$0xff] %v6613_v24  ;;  %v6619_v28 = vmax.f32 %v794_v18, %v968_v25  ;;  %5872 = vmatprep.subr.bf16.mxu0 %v6068_v21  ;;  %v6692_v25 = vadd.s32 40, %v6513_v12 }
 0x139   : > { %1093 = vst [vmem:[#allocation2 + $0x100] sm:$0xff] %v6616_v26  ;;  %v6624_v31 = vmax.f32 %v786_v23, %v966_v27  ;;  %v5824_v32 = vpop.f32.mrb[28].mxu0  ;;  %v6057_v27 = vld [vmem:[%s8344_s2 + $0x88] sm:$0xff]  }
 0x13a   : > { %1096 = vst [vmem:[#allocation2 + $0x118] sm:$0xff] %v6619_v28  ;;  %v807_v53 = vadd.f32 %v5824_v32, %v6521_v15  ;;  %v798_v9 = vpop.f32.mrb[29].mxu0  ;;  %v1479_v33 = vpack.c.bf16 %v6619_v28, %v6613_v24  ;;  %8373 = vst [vmem:[#allocation6_spill] sm:$0xff] %v6692_v25 }
 0x13b   : > { %1094 = vst [vmem:[#allocation2 + $0x108] sm:$0xff] %v6624_v31  ;;  %v799_v34 = vadd.f32 %v798_v9, %v6521_v15  ;;  %v5825_v36 = vpop.f32.mrb[30].mxu0  ;;  %v1478_v37 = vpack.c.bf16 %v6624_v31, %v6616_v26  ;;  %5873 = vmatpush3.bf16.msra.mxu0 %v6068_v21 }
 0x13c   : > { %v971_v38 = vmul.f32 0.1, %v807_v53  ;;  %v810_v39 = vadd.f32 %v5825_v36, %v6521_v15  ;;  %v801_v40 = vpop.f32.mrb[31].mxu0 }
 0x13d   : > { %v969_v41 = vmul.f32 0.1, %v799_v34  ;;  %v802_v43 = vadd.f32 %v801_v40, %v6521_v15 }
 0x13e   : > { %v6646_v47 = vmax.f32 %v807_v53, %v971_v38  ;;  %v972_v49 = vmul.f32 0.1, %v810_v39 }
 0x13f   : > { %v6648_v35 = vmax.f32 %v799_v34, %v969_v41  ;;  %v970_v51 = vmul.f32 0.1, %v802_v43  ;;  %v8355_v41 = vand.u32 7, %v6681_v17 }
 0x140   : > { %1099 = vst [vmem:[#allocation2 + $0x130] sm:$0xff] %v6646_v47  ;;  %v6651_v52 = vmax.f32 %v810_v39, %v972_v49  ;;  %v1167_v54 = vld [vmem:[#allocation2 + $0xff] sm:$0xff]  ;;  %v6061_v49 = vld [vmem:[%s8344_s2 + $0x90] sm:$0xff]  }
 0x141   : > { %1097 = vst [vmem:[#allocation2 + $0x120] sm:$0xff] %v6648_v35  ;;  %v6661_v60 = vmax.f32 %v802_v43, %v970_v51  ;;  %v5828_v61 = vpop.f32.mrb[32].mxu0  ;;  %v4963_v62 = vpack.c.bf16 %v1167_v54, %v1166_v50  ;;  %v6665_v3 = vld [vmem:[#allocation2 + $0x117] sm:$0xff]  ;;  %v8354_v43 = vand.u32 7, %v6692_v25  ;;  %vm6743_vm6 = vcmp.ne.s32.totalorder %v8355_v41, 0 }
 0x142   : > { %1100 = vst [vmem:[#allocation2 + $0x138] sm:$0xff] %v6651_v52  ;;  %v823_v5 = vadd.f32 %v5828_v61, %v6521_v15  ;;  %v814_v7 = vpop.f32.mrb[33].mxu0  ;;  %v6672_v8 = vld [vmem:[#allocation2 + $0x10f] sm:$0xff]  ;;  %v1481_v10 = vpack.c.bf16 %v6651_v52, %v6646_v47  ;;  %v6707_v34 = vld [vmem:[#allocation2 + $0x107] sm:$0xff] }
 0x143   : > { %1098 = vst [vmem:[#allocation2 + $0x128] sm:$0xff] %v6661_v60  ;;  %v815_v11 = vadd.f32 %v814_v7, %v6521_v15  ;;  %v5829_v14 = vpop.f32.mrb[34].mxu0  ;;  %4964 = vmatmul.mubr.msk.bf16.vlgmr.msra.gmra.mrb[0].mxu1 %vm6653_vm2, %v4963_v62  ;;  %v1480_v18 = vpack.c.bf16 %v6661_v60, %v6648_v35  ;;  %v1257_v19 = vpack.c.bf16 %v6646_v47, %v6661_v60  ;;  %vm1155_vm7 = vcmp.ne.s32.totalorder %v8354_v43, 0 }
 0x144   : > { %v975_v21 = vmul.f32 0.1, %v823_v5  ;;  %v826_v22 = vadd.f32 %v5829_v14, %v6521_v15  ;;  %v817_v23 = vpop.f32.mrb[35].mxu0  ;;  %2194 = vmatprep.mubr.bf16.mxu1 %v1223_v56  ;;  %5283 = vmatpush3.bf16.msra.mxu1 %v6053_v59  ;;  %v5014_v32 = vpack.c.bf16 %v6665_v3, %v6672_v8  ;;  %v4966_v54 = vpack.c.bf16 %v6672_v8, %v6707_v34  ;;  %v6063_v59 = vld [vmem:[%s8344_s2 + $0xd8] sm:$0xff]   ;;  %vm6764_vm8 = vmpackc.low %vm1155_vm7, %vm6743_vm6 }
 0x145   : > { %v973_v53 = vmul.f32 0.1, %v815_v11  ;;  %v818_v9 = vadd.f32 %v817_v23, %v6521_v15  ;;  %5284 = vmatprep.subr.bf16.mxu1 %v6055_v4 }
 0x146   : > { %v1039_v48 = vmax.f32 %v823_v5, %v975_v21  ;;  %v976_v56 = vmul.f32 0.1, %v826_v22 }
 0x147   : > { %v1037_v36 = vmax.f32 %v815_v11, %v973_v53  ;;  %v974_v38 = vmul.f32 0.1, %v818_v9 }
 0x148   : > { %v1040_v39 = vmax.f32 %v826_v22, %v976_v56  ;;  %5285 = vmatpush3.bf16.msra.mxu1 %v6057_v27  ;;  %v6724_v4 = vld [vmem:[#allocation2 + $0x11f] sm:$0xff] }
 0x149   : > { %v1038_v50 = vmax.f32 %v818_v9, %v974_v38  ;;  %v5832_v51 = vpop.f32.mrb[36].mxu0  ;;  %5286 = vmatprep.subr.bf16.mxu1 %v6059_v42  ;;  %v6065_v42 = vld [vmem:[%s8344_s2 + $0x98] sm:$0xff]  }
 0x14a   : > { %v839_v61 = vadd.f32 %v5832_v51, %v6521_v15  ;;  %v830_v62 = vpop.f32.mrb[37].mxu0  ;;  %v6726_v5 = vld [vmem:[#allocation2 + $0x127] sm:$0xff]  ;;  %v6728_v7 = vpack.c.bf16 %v1040_v39, %v1039_v48  ;;  %v8380_v51 = vmov 0 }
 0x14b   : > { %v831_v11 = vadd.f32 %v830_v62, %v6521_v15  ;;  %v5833_v14 = vpop.f32.mrb[38].mxu0  ;;  %4967 = vmatmul.mubr.msk.bf16.gmra.mrb[4].mxu1 %vm6709_vm5, %v4966_v54  ;;  %v6733_v21 = vpack.c.bf16 %v1038_v50, %v1037_v36  ;;  %v5017_v22 = vpack.c.bf16 %v6726_v5, %v6724_v4  ;;  %v8381_v51 = vsel %vm6764_vm8, 4294967295, %v8380_v51  ;;  %v6069_v54 = vld [vmem:[%s8344_s2 + $0xa0] sm:$0xff]  }
 0x14c   : > { %v979_v23 = vmul.f32 0.1, %v839_v61  ;;  %v842_v27 = vadd.f32 %v5833_v14, %v6521_v15  ;;  %v833_v53 = vpop.f32.mrb[39].mxu0  ;;  %2202 = vmatprep.mubr.bf16.mxu1 %v1224_v57  ;;  %5287 = vmatpush3.bf16.msra.mxu1 %v6061_v49  ;;  %v6067_v57 = vld [vmem:[%s8344_s2 + $0xe0] sm:$0xff]   ;;  %8382 = vst [vmem:[#allocation9_spill] sm:$0xff] %v8381_v51  ;;  %v8352_v14 = vand.u32 7, %v6757_v2 }
 0x14d   : > { %v977_v48 = vmul.f32 0.1, %v831_v11  ;;  %v834_v56 = vadd.f32 %v833_v53, %v6521_v15  ;;  %5288 = vmatprep.subr.bf16.mxu1 %v6063_v59 }
 0x14e   : > { %v1043_v36 = vmax.f32 %v839_v61, %v979_v23  ;;  %v980_v38 = vmul.f32 0.1, %v842_v27  ;;  %v4969_v61 = vpack.c.bf16 %v6724_v4, %v6665_v3  ;;  %v6070_v23 = vld [vmem:[%s8344_s2 + $0xe8] sm:$0xff]   ;;  %vm1157_vm10 = vcmp.ne.s32.totalorder %v8352_v14, 0  ;;  %v6075_v14 = vld [vmem:[%s8344_s2 + $0xb8] sm:$0xff]  }
 0x14f   : > { %v1041_v39 = vmax.f32 %v831_v11, %v977_v48  ;;  %v978_v49 = vmul.f32 0.1, %v834_v56  ;;  %v8353_v11 = vand.u32 7, %v6754_v46 }
 0x150   : > { %v1044_v50 = vmax.f32 %v842_v27, %v980_v38  ;;  %5289 = vmatpush3.bf16.msra.mxu1 %v6065_v42 }
 0x151   : > { %v1042_v59 = vmax.f32 %v834_v56, %v978_v49  ;;  %v5836_v62 = vpop.f32.mrb[40].mxu0  ;;  %5290 = vmatprep.subr.bf16.mxu1 %v6067_v57  ;;  %vm1156_vm9 = vcmp.ne.s32.totalorder %v8353_v11, 0 }
 0x152   : > { %v855_v27 = vadd.f32 %v5836_v62, %v6521_v15  ;;  %v846_v53 = vpop.f32.mrb[41].mxu0  ;;  %v6779_v9 = vpack.c.bf16 %v1044_v50, %v1043_v36  ;;  %v6071_v36 = vld [vmem:[%s8344_s2 + $0xa8] sm:$0xff]   ;;  %vm6803_vm11 = vmpackc.low %vm1157_vm10, %vm1156_vm9 }
 0x153   : > { %v847_v42 = vadd.f32 %v846_v53, %v6521_v15  ;;  %v5837_v48 = vpop.f32.mrb[42].mxu0  ;;  %4970 = vmatmul.mubr.msk.bf16.gmra.mrb[8].mxu1 %vm6764_vm8, %v4969_v61  ;;  %v6784_v56 = vpack.c.bf16 %v1042_v59, %v1041_v39  ;;  %v6801_v39 = vld [vmem:[#allocation2 + $0x12f] sm:$0xff]  ;;  %v8383_v53 = vmov 0 }
 0x154   : > { %v983_v38 = vmul.f32 0.1, %v855_v27  ;;  %v858_v57 = vadd.f32 %v5837_v48, %v6521_v15  ;;  %v849_v49 = vpop.f32.mrb[43].mxu0  ;;  %2210 = vmatprep.mubr.bf16.mxu1 %v1225_v16  ;;  %5291 = vmatpush3.bf16.msra.mxu1 %v6069_v54  ;;  %v8384_v53 = vsel %vm6803_vm11, 4294967295, %v8383_v53 }
 0x155   : > { %v981_v50 = vmul.f32 0.1, %v847_v42  ;;  %v850_v62 = vadd.f32 %v849_v49, %v6521_v15  ;;  %5292 = vmatprep.subr.bf16.mxu1 %v6070_v23  ;;  %8385 = vst [vmem:[#allocation10_spill] sm:$0xff] %v8384_v53  ;;  %v6073_v23 = vld [vmem:[%s8344_s2 + $0xb0] sm:$0xff]  }
 0x156   : > { %v1047_v6 = vmax.f32 %v855_v27, %v983_v38  ;;  %v984_v16 = vmul.f32 0.1, %v858_v57  ;;  %v4972_v27 = vpack.c.bf16 %v6801_v39, %v6726_v5 }
 0x157   : > { %v1045_v54 = vmax.f32 %v847_v42, %v981_v50  ;;  %v982_v59 = vmul.f32 0.1, %v850_v62  ;;  %v6074_v42 = vld [vmem:[%s8344_s2 + $0xf8] sm:$0xff]  }
 0x158   : > { %1111 = vst [vmem:[#allocation2 + $0x1b0] sm:$0xff] %v1047_v6  ;;  %v1048_v61 = vmax.f32 %v858_v57, %v984_v16  ;;  %5293 = vmatpush3.bf16.msra.mxu1 %v6071_v36 }
 0x159   : > { %1109 = vst [vmem:[#allocation2 + $0x1a0] sm:$0xff] %v1045_v54  ;;  %v1046_v48 = vmax.f32 %v850_v62, %v982_v59  ;;  %v5840_v49 = vpop.f32.mrb[44].mxu0  ;;  %5294 = vmatprep.subr.bf16.mxu1 %v6072_v0 }
 0x15a   : > { %1112 = vst [vmem:[#allocation2 + $0x1b8] sm:$0xff] %v1048_v61  ;;  %v871_v38 = vadd.f32 %v5840_v49, %v6521_v15  ;;  %v862_v57 = vpop.f32.mrb[45].mxu0  ;;  %v1383_v36 = vpack.c.bf16 %v1048_v61, %v1047_v6  ;;  %v6076_v61 = vld [vmem:[%s8344_s2 + $0x1c0] sm:$0xff]  }
 0x15b   : > { %1110 = vst [vmem:[#allocation2 + $0x1a8] sm:$0xff] %v1046_v48  ;;  %v863_v50 = vadd.f32 %v862_v57, %v6521_v15  ;;  %v5841_v16 = vpop.f32.mrb[46].mxu0  ;;  %4973 = vmatmul.mubr.msk.bf16.gmra.mrb[12].mxu1 %vm6803_vm11, %v4972_v27  ;;  %v1382_v62 = vpack.c.bf16 %v1046_v48, %v1045_v54 }
 0x15c   : > { %v987_v59 = vmul.f32 0.1, %v871_v38  ;;  %v874_v0 = vadd.f32 %v5841_v16, %v6521_v15  ;;  %v865_v13 = vpop.f32.mrb[47].mxu0  ;;  %5295 = vmatpush3.bf16.msra.mxu1 %v6073_v23 }
 0x15d   : > { %v985_v49 = vmul.f32 0.1, %v863_v50  ;;  %v866_v6 = vadd.f32 %v865_v13, %v6521_v15  ;;  %2412 = vmatprep.mubr.bf16.mxu0 %v1382_v62  ;;  %5296 = vmatprep.subr.bf16.mxu1 %v6074_v42 }
 0x15e   : > { %v1051_v27 = vmax.f32 %v871_v38, %v987_v59  ;;  %v988_v54 = vmul.f32 0.1, %v874_v0  ;;  %2413 = vmatmul.mubr.bf16.gmra.mrb[80].mxu0 %v6733_v21 }
 0x15f   : > { %v1049_v48 = vmax.f32 %v863_v50, %v985_v49  ;;  %v986_v57 = vmul.f32 0.1, %v866_v6  ;;  %2420 = vmatprep.mubr.bf16.mxu0 %v1383_v36 }
 0x160   : > { %1115 = vst [vmem:[#allocation2 + $0x1d0] sm:$0xff] %v1051_v27  ;;  %v1052_v23 = vmax.f32 %v874_v0, %v988_v54  ;;  %5297 = vmatpush3.bf16.msra.mxu1 %v6075_v14 }
 0x161   : > { %1113 = vst [vmem:[#allocation2 + $0x1c0] sm:$0xff] %v1049_v48  ;;  %v1050_v16 = vmax.f32 %v866_v6, %v986_v57  ;;  %v5844_v11 = vpop.f32.mrb[48].mxu0  ;;  %5410 = vmatprep.subr.bf16.mxu1 %v6076_v61 }
 0x162   : > { %1116 = vst [vmem:[#allocation2 + $0x1d8] sm:$0xff] %v1052_v23  ;;  %v887_v13 = vadd.f32 %v5844_v11, %v6521_v15  ;;  %v878_v42 = vpop.f32.mrb[49].mxu0  ;;  %v1385_v62 = vpack.c.bf16 %v1052_v23, %v1051_v27 }
 0x163   : > { %1114 = vst [vmem:[#allocation2 + $0x1c8] sm:$0xff] %v1050_v16  ;;  %v879_v38 = vadd.f32 %v878_v42, %v6521_v15  ;;  %v5845_v59 = vpop.f32.mrb[50].mxu0  ;;  %v1384_v21 = vpack.c.bf16 %v1050_v16, %v1049_v48 }
 0x164   : > { %v991_v50 = vmul.f32 0.1, %v887_v13  ;;  %v890_v36 = vadd.f32 %v5845_v59, %v6521_v15  ;;  %v881_v49 = vpop.f32.mrb[51].mxu0 }
 0x165   : > { %v989_v0 = vmul.f32 0.1, %v879_v38  ;;  %v882_v14 = vadd.f32 %v881_v49, %v6521_v15 }
 0x166   : > { %v6832_v6 = vmax.f32 %v887_v13, %v991_v50  ;;  %v992_v61 = vmul.f32 0.1, %v890_v36  ;;  %2421 = vmatmul.mubr.bf16.gmra.mrb[84].mxu0 %v6728_v7 }
 0x167   : > { %v6835_v11 = vmax.f32 %v879_v38, %v989_v0  ;;  %v990_v27 = vmul.f32 0.1, %v882_v14  ;;  %2428 = vmatprep.mubr.bf16.mxu0 %v1384_v21 }
 0x168   : > { %v6837_v54 = vmax.f32 %v890_v36, %v992_v61  ;;  %v1306_v60 = vld [vmem:[#allocation2 + $0x1bf] sm:$0xff] }
 0x169   : > { %v6839_v57 = vmax.f32 %v882_v14, %v990_v27  ;;  %v5848_v48 = vpop.f32.mrb[52].mxu0  ;;  %v1238_v23 = vpack.c.bf16 %v6835_v11, %v6280_v55 }
 0x16a   : > { %v903_v16 = vadd.f32 %v5848_v48, %v6521_v15  ;;  %v894_v42 = vpop.f32.mrb[53].mxu0  ;;  %v1307_v47 = vld [vmem:[#allocation2 + $0x1c7] sm:$0xff] }
 0x16b   : > { %v895_v7 = vadd.f32 %v894_v42, %v6521_v15  ;;  %v5849_v38 = vpop.f32.mrb[54].mxu0  ;;  %2218 = vmatprep.mubr.bf16.mxu1 %v1238_v23  ;;  %v1239_v59 = vpack.c.bf16 %v6832_v6, %v6839_v57  ;;  %v8386_v5 = vpack.c.bf16 %v6839_v57, %v6835_v11 }
 0x16c   : > { %v995_v21 = vmul.f32 0.1, %v903_v16  ;;  %v906_v50 = vadd.f32 %v5849_v38, %v6521_v15  ;;  %v897_v36 = vpop.f32.mrb[55].mxu0 }
 0x16d   : > { %v993_v49 = vmul.f32 0.1, %v895_v7  ;;  %v898_v0 = vadd.f32 %v897_v36, %v6521_v15 }
 0x16e   : > { %v6853_v14 = vmax.f32 %v903_v16, %v995_v21  ;;  %v996_v61 = vmul.f32 0.1, %v906_v50  ;;  %2429 = vmatmul.mubr.bf16.gmra.mrb[88].mxu0 %v6784_v56 }
 0x16f   : > { %v6856_v27 = vmax.f32 %v895_v7, %v993_v49  ;;  %v994_v48 = vmul.f32 0.1, %v898_v0  ;;  %2436 = vmatprep.mubr.bf16.mxu0 %v1385_v62  ;;  %v1190_v62 = vld [vmem:[#allocation2 + $0x237] sm:$0xff] }
 0x170   : > { %v1060_v23 = vmax.f32 %v906_v50, %v996_v61 }
 0x171   : > { %v6858_v42 = vmax.f32 %v898_v0, %v994_v48  ;;  %v5852_v38 = vpop.f32.mrb[56].mxu0  ;;  %v1240_v43 = vpack.c.bf16 %v6856_v27, %v6837_v54 }
 0x172   : > { %v919_v41 = vadd.f32 %v5852_v38, %v6521_v15  ;;  %v910_v1 = vpop.f32.mrb[57].mxu0  ;;  %v6864_v16 = vpack.c.bf16 %v1060_v23, %v6853_v14 }
 0x173   : > { %v911_v21 = vadd.f32 %v910_v1, %v6521_v15  ;;  %v5853_v56 = vpop.f32.mrb[58].mxu0  ;;  %v1241_v7 = vpack.c.bf16 %v6853_v14, %v6858_v42  ;;  %v6077_v14 = vld [vmem:[%s8344_s2 + $0x180] sm:$0xff]  }
 0x174   : > { %v999_v50 = vmul.f32 0.1, %v919_v41  ;;  %v922_v36 = vadd.f32 %v5853_v56, %v6521_v15  ;;  %v913_v49 = vpop.f32.mrb[59].mxu0 }
 0x175   : > { %v997_v0 = vmul.f32 0.1, %v911_v21  ;;  %v914_v61 = vadd.f32 %v913_v49, %v6521_v15 }
 0x176   : > { %v6873_v48 = vmax.f32 %v919_v41, %v999_v50  ;;  %v1000_v23 = vmul.f32 0.1, %v922_v36  ;;  %2437 = vmatmul.mubr.bf16.gmra.mrb[92].mxu0 %v6779_v9 }
 0x177   : > { %v6876_v1 = vmax.f32 %v911_v21, %v997_v0  ;;  %v998_v38 = vmul.f32 0.1, %v914_v61  ;;  %5874 = vmatprep.mubr.bf16.mxu0 %v1478_v37 }
 0x178   : > { %1127 = vst [vmem:[#allocation2 + $0x250] sm:$0xff] %v6873_v48  ;;  %v6882_v63 = vmax.f32 %v922_v36, %v1000_v23 }
 0x179   : > { %1125 = vst [vmem:[#allocation2 + $0x240] sm:$0xff] %v6876_v1  ;;  %v6885_v56 = vmax.f32 %v914_v61, %v998_v38  ;;  %v5856_v41 = vpop.f32.mrb[60].mxu0 }
 0x17a   : > { %1128 = vst [vmem:[#allocation2 + $0x258] sm:$0xff] %v6882_v63  ;;  %v935_v9 = vadd.f32 %v5856_v41, %v6521_v15  ;;  %v926_v21 = vpop.f32.mrb[61].mxu0  ;;  %v1495_v50 = vpack.c.bf16 %v6882_v63, %v6873_v48 }
 0x17b   : > { %1126 = vst [vmem:[#allocation2 + $0x248] sm:$0xff] %v6885_v56  ;;  %v927_v26 = vadd.f32 %v926_v21, %v6521_v15  ;;  %v5857_v37 = vpop.f32.mrb[62].mxu0  ;;  %v1494_v36 = vpack.c.bf16 %v6885_v56, %v6876_v1  ;;  %v1271_v49 = vpack.c.bf16 %v6873_v48, %v6885_v56  ;;  %v1441_v48 = vld [vmem:[#allocation2 + $0xc8] sm:$0xff]  ;;  %v1390_v56 = vld [vmem:[#allocation2 + $0xff] sm:$0xff] }
 0x17c   : > { %v1003_v0 = vmul.f32 0.1, %v935_v9  ;;  %v938_v61 = vadd.f32 %v5857_v37, %v6521_v15  ;;  %v929_v23 = vpop.f32.mrb[63].mxu0 }
 0x17d   : > { %v1001_v38 = vmul.f32 0.1, %v927_v26  ;;  %v930_v41 = vadd.f32 %v929_v23, %v6521_v15 }
 0x17e   : > { %v6899_v30 = vmax.f32 %v935_v9, %v1003_v0  ;;  %v1004_v29 = vmul.f32 0.1, %v938_v61  ;;  %5875 = vmatmul.mubr.bf16.vlgmr.msra.gmra.mrb[96].mxu0 %v1479_v33 }
 0x17f   : > { %v6904_v21 = vmax.f32 %v927_v26, %v1001_v38  ;;  %v1002_v13 = vmul.f32 0.1, %v930_v41  ;;  %5878 = vmatprep.mubr.bf16.mxu0 %v1480_v18 }
 0x180   : > { %1131 = vst [vmem:[#allocation2 + $0x270] sm:$0xff] %v6899_v30  ;;  %v1068_v37 = vmax.f32 %v938_v61, %v1004_v29  ;;  %v6910_v55 = vld [vmem:[#allocation2 + $0x23f] sm:$0xff] }
 0x181   : > { %1129 = vst [vmem:[#allocation2 + $0x260] sm:$0xff] %v6904_v21  ;;  %v6913_v15 = vmax.f32 %v930_v41, %v1002_v13  ;;  %v4975_v9 = vpack.c.bf16 %v6910_v55, %v1190_v62  ;;  %v6916_v24 = vld [vmem:[#allocation2 + $0x257] sm:$0xff]  ;;  %v1272_v28 = vpack.c.bf16 %v6904_v21, %v6882_v63 }
 0x182   : > { %1132 = vst [vmem:[#allocation2 + $0x278] sm:$0xff] %v1068_v37  ;;  %v6920_v33 = vld [vmem:[#allocation2 + $0x247] sm:$0xff]  ;;  %v6922_v18 = vld [vmem:[#allocation2 + $0x24f] sm:$0xff]  ;;  %v1497_v29 = vpack.c.bf16 %v1068_v37, %v6899_v30  ;;  %v1443_v63 = vld [vmem:[#allocation2 + $0xd8] sm:$0xff] }
 0x183   : > { %1130 = vst [vmem:[#allocation2 + $0x268] sm:$0xff] %v6913_v15  ;;  %4976 = vmatmul.mubr.msk.bf16.gmra.mrb[16].mxu1 %vm6653_vm2, %v4975_v9  ;;  %v1496_v13 = vpack.c.bf16 %v6913_v15, %v6904_v21  ;;  %v1273_v62 = vpack.c.bf16 %v6899_v30, %v6913_v15  ;;  %v5023_v26 = vpack.c.bf16 %v6920_v33, %v6910_v55  ;;  %v1247_v37 = vld [vmem:[#allocation2 + $0x100] sm:$0xff]  ;;  %v1280_v9 = vld [vmem:[#allocation2 + $0x6f] sm:$0xff] }
 0x184   : > { %2226 = vmatprep.mubr.bf16.mxu1 %v1239_v59  ;;  %v5026_v0 = vpack.c.bf16 %v6916_v24, %v6922_v18  ;;  %v4978_v61 = vpack.c.bf16 %v6922_v18, %v6920_v33  ;;  %v1442_v21 = vld [vmem:[#allocation2 + $0xd0] sm:$0xff]  ;;  %v1445_v30 = vld [vmem:[#allocation2 + $0xe8] sm:$0xff]  ;;  %v1444_v15 = vld [vmem:[#allocation2 + $0xe0] sm:$0xff] }
 0x186   : > { %5879 = vmatmul.mubr.bf16.gmra.mrb[100].mxu0 %v1481_v10 }
 0x187   : > { %5882 = vmatprep.mubr.bf16.mxu0 %v1494_v36  ;;  %v1279_v36 = vld [vmem:[#allocation2 + $0x67] sm:$0xff] }
 0x188   : > { %v6944_v23 = vld [vmem:[#allocation2 + $0x25f] sm:$0xff] }
 0x189   : > { %v4981_v52 = vpack.c.bf16 %v6944_v23, %v6916_v24 }
 0x18a   : > { %v6946_v38 = vld [vmem:[#allocation2 + $0x267] sm:$0xff]  ;;  %v6962_v10 = vld [vmem:[#allocation2 + $0x26f] sm:$0xff] }
 0x18b   : > { %4979 = vmatmul.mubr.msk.bf16.gmra.mrb[20].mxu1 %vm6709_vm5, %v4978_v61  ;;  %v5029_v59 = vpack.c.bf16 %v6946_v38, %v6944_v23  ;;  %v4984_v41 = vpack.c.bf16 %v6962_v10, %v6946_v38  ;;  %v6078_v61 = vld [vmem:[%s8344_s2 + $0x1c8] sm:$0xff]  }
 0x18c   : > { %2234 = vmatprep.mubr.bf16.mxu1 %v1240_v43  ;;  %v1278_v43 = vld [vmem:[#allocation2 + $0x5f] sm:$0xff] }
 0x18e   : > { %5883 = vmatmul.mubr.bf16.gmra.mrb[104].mxu0 %v1495_v50  ;;  %v4987_v50 = vpack.c.bf16 %v1279_v36, %v1278_v43  ;;  %v6079_v36 = vld [vmem:[%s8344_s2 + $0x188] sm:$0xff]   ;;  %v1249_v43 = vld [vmem:[#allocation2 + $0x110] sm:$0xff] }
 0x18f   : > { %5886 = vmatprep.mubr.bf16.mxu0 %v1496_v13  ;;  %v1281_v13 = vld [vmem:[#allocation2 + $0x77] sm:$0xff] }
 0x193   : > { %4982 = vmatmul.mubr.msk.bf16.gmra.mrb[24].mxu1 %vm6764_vm8, %v4981_v52  ;;  %v4990_v52 = vpack.c.bf16 %v1281_v13, %v1280_v9  ;;  %v1255_v9 = vpack.c.bf16 %v1249_v43, %v6624_v31  ;;  %v1282_v13 = vld [vmem:[#allocation2 + $0x7f] sm:$0xff] }
 0x194   : > { %2242 = vmatprep.mubr.bf16.mxu1 %v1241_v7  ;;  %v6973_v7 = vld [vmem:[#allocation2 + $0x8] sm:$0xff]  ;;  %v6084_v31 = vld [vmem:[%s8344_s2 + $0x1e0] sm:$0xff]  }
 0x195   : > { %v6085_v43 = vld [vmem:[%s8344_s2 + $0x1a0] sm:$0xff]  }
 0x196   : > { %5887 = vmatmul.mubr.bf16.gmra.mrb[108].mxu0 %v1497_v29  ;;  %v1254_v29 = vpack.c.bf16 %v1247_v37, %v6973_v7  ;;  %v6081_v37 = vld [vmem:[%s8344_s2 + $0x190] sm:$0xff]  }
 0x19b   : > { %4985 = vmatmul.mubr.msk.bf16.gmra.mrb[28].mxu1 %vm6803_vm11, %v4984_v41  ;;  %v6080_v41 = vld [vmem:[%s8344_s2 + $0x1d0] sm:$0xff]  }
 0x19c   : > { %4988 = vmatprep.mubr.msk.bf16.mxu1 %vm6653_vm2, %v4987_v50  ;;  %v1283_v50 = vld [vmem:[#allocation2 + $0x87] sm:$0xff] }
 0x1a3   : > { %2284 = vmatmul.mubr.bf16.vlgmr.msra.gmra.mrb[32].mxu1 %v1254_v29  ;;  %v4993_v29 = vpack.c.bf16 %v1283_v50, %v1282_v13  ;;  %v6087_v13 = vld [vmem:[%s8344_s2 + $0x1a8] sm:$0xff]  }
 0x1a4   : > { %5411 = vmatpush3.bf16.msra.mxu1 %v6077_v14  ;;  %4991 = vmatprep.mubr.msk.bf16.mxu1 %vm6709_vm5, %v4990_v52  ;;  %v6082_v14 = vld [vmem:[%s8344_s2 + $0x1d8] sm:$0xff]  }
 0x1a5   : > { %5412 = vmatprep.subr.bf16.mxu1 %v6078_v61  ;;  %v6083_v61 = vld [vmem:[%s8344_s2 + $0x198] sm:$0xff]  }
 0x1a6   : > { %v1250_v52 = vld [vmem:[#allocation2 + $0x118] sm:$0xff] }
 0x1a7   : > { %v1256_v50 = vpack.c.bf16 %v6648_v35, %v1250_v52  ;;  %v6088_v35 = vld [vmem:[%s8344_s2 + $0x1f0] sm:$0xff]  }
 0x1a8   : > { %5413 = vmatpush3.bf16.msra.mxu1 %v6079_v36  ;;  %v1284_v36 = vld [vmem:[#allocation2 + $0x8f] sm:$0xff] }
 0x1a9   : > { %5414 = vmatprep.subr.bf16.mxu1 %v6080_v41  ;;  %v1285_v41 = vld [vmem:[#allocation2 + $0x97] sm:$0xff] }
 0x1ab   : > { %2292 = vmatmul.mubr.bf16.gmra.mrb[36].mxu1 %v1255_v9  ;;  %v4996_v9 = vpack.c.bf16 %v1285_v41, %v1284_v36  ;;  %v6091_v36 = vld [vmem:[%s8344_s2 + $0x1b8] sm:$0xff]   ;;  %v1304_v41 = vld [vmem:[#allocation2 + $0x1af] sm:$0xff] }
 0x1ac   : > { %4994 = vmatprep.mubr.msk.bf16.mxu1 %vm6764_vm8, %v4993_v29  ;;  %5415 = vmatpush3.bf16.msra.mxu1 %v6081_v37  ;;  %v6086_v37 = vld [vmem:[%s8344_s2 + $0x1e8] sm:$0xff]   ;;  %v6089_v29 = vld [vmem:[%s8344_s2 + $0x1b0] sm:$0xff]  }
 0x1ad   : > { %5416 = vmatprep.subr.bf16.mxu1 %v6082_v14  ;;  %v1303_v14 = vld [vmem:[#allocation2 + $0x1a7] sm:$0xff] }
 0x1b0   : > { %5417 = vmatpush3.bf16.msra.mxu1 %v6083_v61  ;;  %v1302_v61 = vld [vmem:[#allocation2 + $0x19f] sm:$0xff] }
 0x1b1   : > { %5418 = vmatprep.subr.bf16.mxu1 %v6084_v31  ;;  %v6090_v31 = vld [vmem:[%s8344_s2 + $0x1f8] sm:$0xff]   ;;  %v4999_v52 = vpack.c.bf16 %v1303_v14, %v1302_v61  ;;  %v1438_v14 = vld [vmem:[#allocation2 + $0xb0] sm:$0xff]  ;;  %v1440_v61 = vld [vmem:[#allocation2 + $0xc0] sm:$0xff] }
 0x1b3   : > { %2300 = vmatmul.mubr.bf16.gmra.mrb[40].mxu1 %v1256_v50  ;;  %v1270_v50 = vpack.c.bf16 %v6876_v1, %v6973_v7  ;;  %v1439_v1 = vld [vmem:[#allocation2 + $0xb8] sm:$0xff] }
 0x1b4   : > { %4997 = vmatprep.mubr.msk.bf16.mxu1 %vm6803_vm11, %v4996_v9  ;;  %5419 = vmatpush3.bf16.msra.mxu1 %v6085_v43  ;;  %v1305_v43 = vld [vmem:[#allocation2 + $0x1b7] sm:$0xff]  ;;  %v1308_v9 = vld [vmem:[#allocation2 + $0x1cf] sm:$0xff] }
 0x1b5   : > { %5420 = vmatprep.subr.bf16.mxu1 %v6086_v37  ;;  %v5002_v37 = vpack.c.bf16 %v1305_v43, %v1304_v41 }
 0x1b8   : > { %5421 = vmatpush3.bf16.msra.mxu1 %v6087_v13  ;;  %v1309_v13 = vld [vmem:[#allocation2 + $0x1d7] sm:$0xff] }
 0x1b9   : > { %5422 = vmatprep.subr.bf16.mxu1 %v6088_v35  ;;  %v5008_v35 = vpack.c.bf16 %v1309_v13, %v1308_v9 }
 0x1bb   : > { %2308 = vmatmul.mubr.bf16.gmra.mrb[44].mxu1 %v1257_v19  ;;  %v5005_v19 = vpack.c.bf16 %v1307_v47, %v1306_v60 }
 0x1bc   : > { %5000 = vmatprep.mubr.msk.bf16.mxu1 %vm6653_vm2, %v4999_v52  ;;  %5423 = vmatpush3.bf16.msra.mxu1 %v6089_v29  ;;  %v1446_v29 = vpack.c.bf16 %v1439_v1, %v1438_v14 }
 0x1bd   : > { %5424 = vmatprep.subr.bf16.mxu1 %v6090_v31  ;;  %v1447_v31 = vpack.c.bf16 %v1441_v48, %v1440_v61  ;;  %v6097_v61 = vld [vmem:[%s8345_s3 + $0x10] sm:$0xff]  }
 0x1c0   : > { %5425 = vmatpush3.bf16.msra.mxu1 %v6091_v36 }
 0x1c3   : > { %2316 = vmatmul.mubr.bf16.gmra.mrb[48].mxu1 %v1270_v50 }
 0x1c4   : > { %5003 = vmatprep.mubr.msk.bf16.mxu1 %vm6709_vm5, %v5002_v37 }
 0x1cb   : > { %2324 = vmatmul.mubr.bf16.gmra.mrb[52].mxu1 %v1271_v49  ;;  %v5011_v49 = vpack.c.bf16 %v6707_v34, %v1390_v56  ;;  %v1449_v34 = vpack.c.bf16 %v1445_v30, %v1444_v15  ;;  %v6098_v15 = vld [vmem:[%s8345_s3 + $0x58] sm:$0xff]  }
 0x1cc   : > { %5006 = vmatprep.mubr.msk.bf16.mxu1 %vm6764_vm8, %v5005_v19 }
 0x1d3   : > { %2332 = vmatmul.mubr.bf16.gmra.mrb[56].mxu1 %v1272_v28  ;;  %v1448_v28 = vpack.c.bf16 %v1443_v63, %v1442_v21 }
 0x1d4   : > { %5009 = vmatprep.mubr.msk.bf16.mxu1 %vm6803_vm11, %v5008_v35  ;;  %v8387_v35 = vpack.c.bf16 %v6837_v54, %v6832_v6  ;;  %v6092_v54 = vld [vmem:[%s8345_s3 + $0x40] sm:$0xff]  }
 0x1d5   : > { %5490 = vmatprep.subr.bf16.mxu1 %v6092_v54  ;;  %v6106_v54 = vld [vmem:[%s8345_s3 + $0x88] sm:$0xff]  }
 0x1db   : > { %2340 = vmatmul.mubr.bf16.gmra.mrb[60].mxu1 %v1273_v62 }
 0x1dc   : > { %2477 = vmatprep.mubr.bf16.mxu1 %v1446_v29  ;;  %v6093_v29 = vld [vmem:[%s8345_s3] sm:$0xff]  }
 0x1e3   : > { %5012 = vmatmul.mubr.msk.bf16.vlgmr.msra.gmra.mrb[64].mxu1 %vm6653_vm2, %v5011_v49  ;;  %v6096_v49 = vld [vmem:[%s8345_s3 + $0x50] sm:$0xff]  }
 0x1e4   : > { %2485 = vmatprep.mubr.bf16.mxu1 %v1447_v31  ;;  %5491 = vmatpush3.bf16.msra.mxu1 %v6093_v29 }
 0x1eb   : > { %5015 = vmatmul.mubr.msk.bf16.gmra.mrb[68].mxu1 %vm6709_vm5, %v5014_v32  ;;  %v1397_v32 = vld [vmem:[#allocation2 + $0x137] sm:$0xff] }
 0x1ec   : > { %2493 = vmatprep.mubr.bf16.mxu1 %v1448_v28  ;;  %v5020_v43 = vpack.c.bf16 %v1397_v32, %v6801_v39 }
 0x1f1   : > { %v5362_v62 = vpop.f32.mrb[64].mxu0 }
 0x1f2   : > { %v5363_v52 = vpop.f32.mrb[65].mxu0 }
 0x1f3   : > { %5018 = vmatmul.mubr.msk.bf16.gmra.mrb[72].mxu1 %vm6764_vm8, %v5017_v22  ;;  %v7061_v36 = vadd.f32 %v5363_v52, %v5362_v62  ;;  %v5365_v41 = vpop.f32.mrb[66].mxu0  ;;  %v6099_v62 = vld [vmem:[%s8345_s3 + $0x18] sm:$0xff]  }
 0x1f4   : > { %2501 = vmatprep.mubr.bf16.mxu1 %v1449_v34  ;;  %v5366_v3 = vpop.f32.mrb[67].mxu0 }
 0x1f5   : > { %v7063_v8 = vadd.f32 %v5366_v3, %v5365_v41 }
 0x1f9   : > { %v5368_v50 = vpop.f32.mrb[68].mxu0 }
 0x1fa   : > { %v5369_v37 = vpop.f32.mrb[69].mxu0 }
 0x1fb   : > { %5021 = vmatmul.mubr.msk.bf16.gmra.mrb[76].mxu1 %vm6803_vm11, %v5020_v43  ;;  %v7068_v47 = vadd.f32 %v5369_v37, %v5368_v50  ;;  %v5371_v4 = vpop.f32.mrb[70].mxu0  ;;  %v6100_v50 = vld [vmem:[%s8345_s3 + $0x60] sm:$0xff]  }
 0x1fc   : > { %2509 = vmatprep.mubr.bf16.mxu1 %v8386_v5  ;;  %v5372_v22 = vpop.f32.mrb[71].mxu0  ;;  %v6101_v37 = vld [vmem:[%s8345_s3 + $0x20] sm:$0xff]  }
 0x1fd   : > { %v7073_v60 = vadd.f32 %v5372_v22, %v5371_v4  ;;  %v6102_v5 = vld [vmem:[%s8345_s3 + $0xc0] sm:$0xff]  }
 0x1fe   : > { %5554 = vmatprep.subr.bf16.mxu0 %v6102_v5  ;;  %v6113_v5 = vld [vmem:[%s8345_s3 + $0x30] sm:$0xff]  }
 0x201   : > { %v5374_v19 = vpop.f32.mrb[72].mxu0 }
 0x202   : > { %v5375_v9 = vpop.f32.mrb[73].mxu0 }
 0x203   : > { %5024 = vmatmul.mubr.msk.bf16.gmra.mrb[80].mxu1 %vm6653_vm2, %v5023_v26  ;;  %v7080_v39 = vadd.f32 %v5375_v9, %v5374_v19  ;;  %v5377_v13 = vpop.f32.mrb[74].mxu0  ;;  %v8388_v26 = vpack.c.bf16 %v6858_v42, %v6856_v27  ;;  %v6094_v27 = vld [vmem:[%s8345_s3 + $0x48] sm:$0xff]   ;;  %v6103_v19 = vld [vmem:[%s8345_s3 + $0x80] sm:$0xff]  }
 0x204   : > { %2517 = vmatprep.mubr.bf16.mxu1 %v8387_v35  ;;  %v5378_v11 = vpop.f32.mrb[75].mxu0  ;;  %v6095_v42 = vld [vmem:[%s8345_s3 + $0x8] sm:$0xff]   ;;  %5492 = vmatprep.subr.bf16.mxu1 %v6094_v27 }
 0x205   : > { %v7085_v57 = vadd.f32 %v5378_v11, %v5377_v13  ;;  %5493 = vmatpush3.bf16.msra.mxu1 %v6095_v42  ;;  %5555 = vmatpush3.bf16.msra.mxu0 %v6103_v19  ;;  %v6105_v27 = vld [vmem:[%s8345_s3 + $0x68] sm:$0xff]   ;;  %v6120_v19 = vld [vmem:[%s8345_s3 + $0xf0] sm:$0xff]  }
 0x206   : > { %5494 = vmatprep.subr.bf16.mxu1 %v6096_v49  ;;  %v6107_v42 = vld [vmem:[%s8345_s3 + $0x28] sm:$0xff]  }
 0x209   : > { %v5380_v1 = vpop.f32.mrb[76].mxu0  ;;  %5495 = vmatpush3.bf16.msra.mxu1 %v6097_v61 }
 0x20a   : > { %v5381_v14 = vpop.f32.mrb[77].mxu0  ;;  %5496 = vmatprep.subr.bf16.mxu1 %v6098_v15  ;;  %v6115_v15 = vld [vmem:[%s8345_s3 + $0xa0] sm:$0xff]  }
 0x20b   : > { %5027 = vmatmul.mubr.msk.bf16.gmra.mrb[84].mxu1 %vm6709_vm5, %v5026_v0  ;;  %v7092_v55 = vadd.f32 %v5381_v14, %v5380_v1  ;;  %v5383_v33 = vpop.f32.mrb[78].mxu0  ;;  %v1421_v0 = vld [vmem:[#allocation2 + $0x277] sm:$0xff] }
 0x20c   : > { %2525 = vmatprep.mubr.bf16.mxu1 %v8388_v26  ;;  %v5384_v6 = vpop.f32.mrb[79].mxu0 }
 0x20d   : > { %v7103_v24 = vadd.f32 %v5384_v6, %v5383_v33  ;;  %5497 = vmatpush3.bf16.msra.mxu1 %v6099_v62  ;;  %v6104_v33 = vld [vmem:[%s8345_s3 + $0xc8] sm:$0xff]  }
 0x20e   : > { %5498 = vmatprep.subr.bf16.mxu1 %v6100_v50  ;;  %5556 = vmatprep.subr.bf16.mxu0 %v6104_v33  ;;  %v6111_v50 = vld [vmem:[%s8345_s3 + $0x70] sm:$0xff]  }
 0x20f   : > { %5557 = vmatpush3.bf16.msra.mxu0 %v6106_v54 }
 0x211   : > { %5499 = vmatpush3.bf16.msra.mxu1 %v6101_v37  ;;  %v6118_v37 = vld [vmem:[%s8345_s3 + $0xa8] sm:$0xff]  }
 0x212   : > { %5500 = vmatprep.subr.bf16.mxu1 %v6105_v27  ;;  %v6123_v27 = vld [vmem:[%s8345_s3 + $0xb8] sm:$0xff]  }
 0x213   : > { %5030 = vmatmul.mubr.msk.bf16.gmra.mrb[88].mxu1 %vm6764_vm8, %v5029_v59  ;;  %v5032_v59 = vpack.c.bf16 %v1421_v0, %v6962_v10  ;;  %v6108_v0 = vld [vmem:[%s8345_s3 + $0xd0] sm:$0xff]  }
 0x214   : > { %2533 = vmatprep.mubr.bf16.mxu1 %v6864_v16  ;;  %5558 = vmatprep.subr.bf16.mxu0 %v6108_v0 }
 0x215   : > { %5501 = vmatpush3.bf16.msra.mxu1 %v6107_v42 }
 0x216   : > { %v5234_v18 = vpop.f32.mrb[0].mxu1  ;;  %5502 = vmatprep.subr.bf16.mxu1 %v6111_v50 }
 0x217   : > { %v5235_v48 = vpop.f32.mrb[1].mxu1 }
 0x218   : > { %v7117_v56 = vadd.f32 %v5235_v48, %v5234_v18  ;;  %v5237_v23 = vpop.f32.mrb[2].mxu1  ;;  %v6109_v48 = vld [vmem:[%s8345_s3 + $0x90] sm:$0xff]  }
 0x219   : > { %v5238_v38 = vpop.f32.mrb[3].mxu1  ;;  %5559 = vmatpush3.bf16.msra.mxu0 %v6109_v48  ;;  %5503 = vmatpush3.bf16.msra.mxu1 %v6113_v5 }
 0x21a   : > { %v7120_v16 = vadd.f32 %v5238_v38, %v5237_v23 }
 0x21b   : > { %5033 = vmatmul.mubr.msk.bf16.gmra.mrb[92].mxu1 %vm6803_vm11, %v5032_v59  ;;  %v6110_v59 = vld [vmem:[%s8345_s3 + $0xd8] sm:$0xff]  }
 0x21c   : > { %5560 = vmatprep.subr.bf16.mxu0 %v6110_v59 }
 0x21e   : > { %v5240_v31 = vpop.f32.mrb[4].mxu1 }
 0x21f   : > { %v5241_v63 = vpop.f32.mrb[5].mxu1 }
 0x220   : > { %v7130_v21 = vadd.f32 %v5241_v63, %v5240_v31  ;;  %v5243_v10 = vpop.f32.mrb[6].mxu1  ;;  %v6112_v31 = vld [vmem:[%s8345_s3 + $0x98] sm:$0xff]  }
 0x221   : > { %v5244_v28 = vpop.f32.mrb[7].mxu1  ;;  %5561 = vmatpush3.bf16.msra.mxu0 %v6112_v31 }
 0x222   : > { %v7132_v30 = vadd.f32 %v5244_v28, %v5243_v10  ;;  %v6114_v28 = vld [vmem:[%s8345_s3 + $0xe0] sm:$0xff]  }
 0x223   : > { %5562 = vmatprep.subr.bf16.mxu0 %v6114_v28 }
 0x225   : > { %5563 = vmatpush3.bf16.msra.mxu0 %v6115_v15 }
 0x226   : > { %v5246_v34 = vpop.f32.mrb[8].mxu1 }
 0x227   : > { %v5247_v52 = vpop.f32.mrb[9].mxu1 }
 0x228   : > { %v7140_v41 = vadd.f32 %v5247_v52, %v5246_v34  ;;  %v5249_v3 = vpop.f32.mrb[10].mxu1  ;;  %v6116_v52 = vld [vmem:[%s8345_s3 + $0xe8] sm:$0xff]  }
 0x229   : > { %v5250_v32 = vpop.f32.mrb[11].mxu1  ;;  %5564 = vmatprep.subr.bf16.mxu0 %v6116_v52 }
 0x22a   : > { %v7142_v43 = vadd.f32 %v5250_v32, %v5249_v3  ;;  %5565 = vmatpush3.bf16.msra.mxu0 %v6118_v37 }
 0x22b   : > { %5566 = vmatprep.subr.bf16.mxu0 %v6120_v19 }
 0x22e   : > { %v5252_v4 = vpop.f32.mrb[12].mxu1 }
 0x22f   : > { %v5253_v22 = vpop.f32.mrb[13].mxu1 }
 0x230   : > { %v7156_v9 = vadd.f32 %v5253_v22, %v5252_v4  ;;  %v5255_v13 = vpop.f32.mrb[14].mxu1 }
 0x231   : > { %v5256_v35 = vpop.f32.mrb[15].mxu1  ;;  %v5386_v11 = vpop.f32.mrb[80].mxu0 }
 0x232   : > { %v7158_v1 = vadd.f32 %v5256_v35, %v5255_v13  ;;  %v5387_v14 = vpop.f32.mrb[81].mxu0  ;;  %v6117_v13 = vld [vmem:[%s8345_s3 + $0x78] sm:$0xff]   ;;  %v6121_v35 = vld [vmem:[%s8345_s3 + $0xb0] sm:$0xff]  }
 0x233   : > { %v7163_v26 = vadd.f32 %v5387_v14, %v5386_v11  ;;  %v5389_v6 = vpop.f32.mrb[82].mxu0  ;;  %v6119_v11 = vld [vmem:[%s8345_s3 + $0x38] sm:$0xff]   ;;  %5504 = vmatprep.subr.bf16.mxu1 %v6117_v13  ;;  %5567 = vmatpush3.bf16.msra.mxu0 %v6121_v35 }
 0x234   : > { %v5390_v29 = vpop.f32.mrb[83].mxu0  ;;  %5505 = vmatpush3.bf16.msra.mxu1 %v6119_v11 }
 0x235   : > { %v7174_v18 = vadd.f32 %v5390_v29, %v5389_v6  ;;  %v6122_v6 = vld [vmem:[%s8345_s3 + $0xf8] sm:$0xff]  }
 0x236   : > { %5568 = vmatprep.subr.bf16.mxu0 %v6122_v6 }
 0x237   : > { %5569 = vmatpush3.bf16.msra.mxu0 %v6123_v27 }
 0x239   : > { %v5392_v23 = vpop.f32.mrb[84].mxu0 }
 0x23a   : > { %v5393_v38 = vpop.f32.mrb[85].mxu0 }
 0x23b   : > { %v7185_v49 = vadd.f32 %v5393_v38, %v5392_v23  ;;  %v5395_v61 = vpop.f32.mrb[86].mxu0 }
 0x23c   : > { %v5396_v63 = vpop.f32.mrb[87].mxu0 }
 0x23d   : > { %v7190_v10 = vadd.f32 %v5396_v63, %v5395_v61  ;;  %v6124_v61 = vld [vmem:[%s8345_s3 + $0x140] sm:$0xff]  }
 0x23e   : > { %5618 = vmatprep.subr.bf16.mxu1 %v6124_v61 }
 0x241   : > { %v5398_v62 = vpop.f32.mrb[88].mxu0 }
 0x242   : > { %v5399_v34 = vpop.f32.mrb[89].mxu0 }
 0x243   : > { %v7201_v3 = vadd.f32 %v5399_v34, %v5398_v62  ;;  %v5401_v32 = vpop.f32.mrb[90].mxu0 }
 0x244   : > { %v5402_v4 = vpop.f32.mrb[91].mxu0 }
 0x245   : > { %v7212_v22 = vadd.f32 %v5402_v4, %v5401_v32 }
 0x249   : > { %v5404_v14 = vpop.f32.mrb[92].mxu0 }
 0x24a   : > { %v5405_v33 = vpop.f32.mrb[93].mxu0 }
 0x24b   : > { %v7229_v54 = vadd.f32 %v5405_v33, %v5404_v14  ;;  %v5407_v29 = vpop.f32.mrb[94].mxu0 }
 0x24c   : > { %v5408_v42 = vpop.f32.mrb[95].mxu0 }
 0x24d   : > { %v7234_v0 = vadd.f32 %v5408_v42, %v5407_v29 }
 0x251   : > { %v7236_v48 = vpop.f32.mrb[96].mxu0 }
 0x252   : > { %v7238_v23 = vpop.f32.mrb[97].mxu0 }
 0x253   : > { %v7240_v38 = vpop.f32.mrb[98].mxu0 }
 0x254   : > { %v7242_v59 = vpop.f32.mrb[99].mxu0 }
 0x256   : > { %v5258_v31 = vpop.f32.mrb[16].mxu1 }
 0x257   : > { %v5259_v63 = vpop.f32.mrb[17].mxu1 }
 0x258   : > { %v7247_v28 = vadd.f32 %v5259_v63, %v5258_v31  ;;  %v5261_v15 = vpop.f32.mrb[18].mxu1 }
 0x259   : > { %v5262_v62 = vpop.f32.mrb[19].mxu1  ;;  %v7249_v34 = vpop.f32.mrb[100].mxu0 }
 0x25a   : > { %v7251_v52 = vadd.f32 %v5262_v62, %v5261_v15  ;;  %v7253_v32 = vpop.f32.mrb[101].mxu0 }
 0x25b   : > { %v7255_v50 = vpop.f32.mrb[102].mxu0 }
 0x25c   : > { %v7257_v37 = vpop.f32.mrb[103].mxu0 }
 0x25e   : > { %v5264_v4 = vpop.f32.mrb[20].mxu1 }
 0x25f   : > { %v5265_v5 = vpop.f32.mrb[21].mxu1 }
 0x260   : > { %v7259_v19 = vadd.f32 %v5265_v5, %v5264_v4  ;;  %v5267_v13 = vpop.f32.mrb[22].mxu1 }
 0x261   : > { %v5268_v35 = vpop.f32.mrb[23].mxu1  ;;  %v7261_v11 = vpop.f32.mrb[104].mxu0 }
 0x262   : > { %8389 = vst [vmem:[#allocation11_spill] sm:$0xff] %v7261_v11  ;;  %v7263_v14 = vadd.f32 %v5268_v35, %v5267_v13  ;;  %v7265_v33 = vpop.f32.mrb[105].mxu0 }
 0x263   : > { %8390 = vst [vmem:[#allocation12_spill] sm:$0xff] %v7265_v33  ;;  %v7267_v6 = vpop.f32.mrb[106].mxu0 }
 0x264   : > { %8391 = vst [vmem:[#allocation13_spill] sm:$0xff] %v7267_v6  ;;  %v7269_v29 = vpop.f32.mrb[107].mxu0  ;;  %v6132_v6 = vld [vmem:[%s8345_s3 + $0x1c0] sm:$0xff]  }
 0x265   : > { %8392 = vst [vmem:[#allocation14_spill] sm:$0xff] %v7269_v29  ;;  %5682 = vmatprep.subr.bf16.mxu0 %v6132_v6 }
 0x266   : > { %v5270_v27 = vpop.f32.mrb[24].mxu1 }
 0x267   : > { %v5271_v42 = vpop.f32.mrb[25].mxu1 }
 0x268   : > { %v7271_v61 = vadd.f32 %v5271_v42, %v5270_v27  ;;  %v5273_v31 = vpop.f32.mrb[26].mxu1  ;;  %v8366_v27 = vsub.s32 1, %v6513_v12 }
 0x269   : > { %v5274_v63 = vpop.f32.mrb[27].mxu1  ;;  %v7273_v15 = vpop.f32.mrb[108].mxu0 }
 0x26a   : > { %8393 = vst [vmem:[#allocation15_spill] sm:$0xff] %v7273_v15  ;;  %v7275_v62 = vadd.f32 %v5274_v63, %v5273_v31  ;;  %v7277_v4 = vpop.f32.mrb[109].mxu0 }
 0x26b   : > { %8394 = vst [vmem:[#allocation16_spill] sm:$0xff] %v7277_v4  ;;  %v7279_v5 = vpop.f32.mrb[110].mxu0 }
 0x26c   : > { %8395 = vst [vmem:[#allocation17_spill] sm:$0xff] %v7279_v5  ;;  %v7281_v13 = vpop.f32.mrb[111].mxu0  ;;  %v6269_v5 = vld [vmem:[%s8347_s5] sm:$0xff] }
 0x26d   : > { %8396 = vst [vmem:[#allocation18_spill] sm:$0xff] %v7281_v13  ;;  %v7296_v15 = vrot.slane %v6269_v5, %v8366_v27 }
 0x26e   : > { %v5276_v35 = vpop.f32.mrb[28].mxu1 }
 0x26f   : > { %v5277_v53 = vpop.f32.mrb[29].mxu1  ;;  %v2189_v2 = vadd.f32 %v7117_v56, %v7296_v15  ;;  %v2197_v56 = vadd.f32 %v7130_v21, %v7296_v15  ;;  %v2205_v21 = vadd.f32 %v7140_v41, %v7296_v15  ;;  %v2213_v41 = vadd.f32 %v7156_v9, %v7296_v15 }
 0x270   : > { %v7287_v42 = vadd.f32 %v5277_v53, %v5276_v35  ;;  %v5279_v11 = vpop.f32.mrb[30].mxu1  ;;  %v2221_v9 = vadd.f32 %v7247_v28, %v7296_v15  ;;  %v2229_v28 = vadd.f32 %v7259_v19, %v7296_v15  ;;  %v2237_v19 = vadd.f32 %v7271_v61, %v7296_v15 }
 0x271   : > { %v5280_v31 = vpop.f32.mrb[31].mxu1 }
 0x272   : > { %v7289_v63 = vadd.f32 %v5280_v31, %v5279_v11  ;;  %v2192_v11 = vadd.f32 %v7120_v16, %v7296_v15  ;;  %v2200_v16 = vadd.f32 %v7132_v30, %v7296_v15  ;;  %v2208_v30 = vadd.f32 %v7142_v43, %v7296_v15 }
 0x273   : > { %v2216_v43 = vadd.f32 %v7158_v1, %v7296_v15  ;;  %v2224_v1 = vadd.f32 %v7251_v52, %v7296_v15  ;;  %v2232_v52 = vadd.f32 %v7263_v14, %v7296_v15  ;;  %v2240_v14 = vadd.f32 %v7275_v62, %v7296_v15 }
 0x274   : > { %v2245_v61 = vadd.f32 %v7287_v42, %v7296_v15  ;;  %v2248_v62 = vadd.f32 %v7289_v63, %v7296_v15 }
 0x276   : > { %v5298_v13 = vpop.f32.mrb[32].mxu1 }
 0x277   : > { %v5299_v4 = vpop.f32.mrb[33].mxu1 }
 0x278   : > { %v5300_v53 = vadd.f32 %v5299_v4, %v5298_v13  ;;  %v5301_v35 = vpop.f32.mrb[34].mxu1 }
 0x279   : > { %v5302_v46 = vpop.f32.mrb[35].mxu1 }
 0x27a   : > { %v2286_v6 = vadd.f32 %v5300_v53, %v2189_v2  ;;  %v5303_v31 = vadd.f32 %v5302_v46, %v5301_v35 }
 0x27c   : > { %v2289_v29 = vadd.f32 %v5303_v31, %v2192_v11  ;;  %v7303_v51 = vadd.f32 %v7061_v36, %v2286_v6 }
 0x27e   : > { %v5304_v33 = vpop.f32.mrb[36].mxu1  ;;  %v7306_v5 = vadd.f32 %v7063_v8, %v2289_v29 }
 0x27f   : > { %v5305_v27 = vpop.f32.mrb[37].mxu1 }
 0x280   : > { %v5306_v4 = vadd.f32 %v5305_v27, %v5304_v33  ;;  %v5307_v13 = vpop.f32.mrb[38].mxu1 }
 0x281   : > { %v5308_v25 = vpop.f32.mrb[39].mxu1 }
 0x282   : > { %v2294_v2 = vadd.f32 %v5306_v4, %v2197_v56  ;;  %v5309_v46 = vadd.f32 %v5308_v25, %v5307_v13 }
 0x284   : > { %v2297_v53 = vadd.f32 %v5309_v46, %v2200_v16  ;;  %v7313_v36 = vadd.f32 %v7068_v47, %v2294_v2 }
 0x286   : > { %v5310_v35 = vpop.f32.mrb[40].mxu1  ;;  %v7316_v8 = vadd.f32 %v7073_v60, %v2297_v53 }
 0x287   : > { %v5311_v29 = vpop.f32.mrb[41].mxu1 }
 0x288   : > { %v5312_v33 = vadd.f32 %v5311_v29, %v5310_v35  ;;  %v5313_v27 = vpop.f32.mrb[42].mxu1 }
 0x289   : > { %v5314_v11 = vpop.f32.mrb[43].mxu1 }
 0x28a   : > { %v2302_v6 = vadd.f32 %v5312_v33, %v2205_v21  ;;  %v5315_v25 = vadd.f32 %v5314_v11, %v5313_v27 }
 0x28c   : > { %v2305_v31 = vadd.f32 %v5315_v25, %v2208_v30  ;;  %v7323_v47 = vadd.f32 %v7080_v39, %v2302_v6 }
 0x28e   : > { %v5316_v56 = vpop.f32.mrb[44].mxu1  ;;  %v7326_v60 = vadd.f32 %v7085_v57, %v2305_v31 }
 0x28f   : > { %v5317_v4 = vpop.f32.mrb[45].mxu1 }
 0x290   : > { %v5318_v13 = vadd.f32 %v5317_v4, %v5316_v56  ;;  %v5319_v16 = vpop.f32.mrb[46].mxu1 }
 0x291   : > { %v5320_v2 = vpop.f32.mrb[47].mxu1 }
 0x292   : > { %v2310_v46 = vadd.f32 %v5318_v13, %v2213_v41  ;;  %v5321_v53 = vadd.f32 %v5320_v2, %v5319_v16 }
 0x294   : > { %v2313_v35 = vadd.f32 %v5321_v53, %v2216_v43  ;;  %v7333_v39 = vadd.f32 %v7092_v55, %v2310_v46 }
 0x296   : > { %v5322_v29 = vpop.f32.mrb[48].mxu1  ;;  %v7336_v57 = vadd.f32 %v7103_v24, %v2313_v35 }
 0x297   : > { %v5323_v21 = vpop.f32.mrb[49].mxu1 }
 0x298   : > { %v5324_v33 = vadd.f32 %v5323_v21, %v5322_v29  ;;  %v5325_v27 = vpop.f32.mrb[50].mxu1 }
 0x299   : > { %v5326_v11 = vpop.f32.mrb[51].mxu1 }
 0x29a   : > { %v2318_v30 = vadd.f32 %v5324_v33, %v2221_v9  ;;  %v5327_v6 = vadd.f32 %v5326_v11, %v5325_v27 }
 0x29c   : > { %v2321_v25 = vadd.f32 %v5327_v6, %v2224_v1  ;;  %v7343_v55 = vadd.f32 %v7163_v26, %v2318_v30 }
 0x29e   : > { %v5328_v31 = vpop.f32.mrb[52].mxu1  ;;  %v7346_v24 = vadd.f32 %v7174_v18, %v2321_v25 }
 0x29f   : > { %v5329_v56 = vpop.f32.mrb[53].mxu1 }
 0x2a0   : > { %v5330_v4 = vadd.f32 %v5329_v56, %v5328_v31  ;;  %v5331_v41 = vpop.f32.mrb[54].mxu1 }
 0x2a1   : > { %v5332_v13 = vpop.f32.mrb[55].mxu1 }
 0x2a2   : > { %v2326_v16 = vadd.f32 %v5330_v4, %v2229_v28  ;;  %v5333_v2 = vadd.f32 %v5332_v13, %v5331_v41 }
 0x2a4   : > { %v2329_v43 = vadd.f32 %v5333_v2, %v2232_v52  ;;  %v7353_v26 = vadd.f32 %v7185_v49, %v2326_v16 }
 0x2a6   : > { %v5334_v46 = vpop.f32.mrb[56].mxu1  ;;  %v7356_v18 = vadd.f32 %v7190_v10, %v2329_v43 }
 0x2a7   : > { %v5335_v53 = vpop.f32.mrb[57].mxu1 }
 0x2a8   : > { %v5336_v35 = vadd.f32 %v5335_v53, %v5334_v46  ;;  %v5337_v29 = vpop.f32.mrb[58].mxu1 }
 0x2a9   : > { %v5338_v21 = vpop.f32.mrb[59].mxu1 }
 0x2aa   : > { %v2334_v9 = vadd.f32 %v5336_v35, %v2237_v19  ;;  %v5339_v33 = vadd.f32 %v5338_v21, %v5337_v29 }
 0x2ac   : > { %v2337_v27 = vadd.f32 %v5339_v33, %v2240_v14  ;;  %v7363_v49 = vadd.f32 %v7201_v3, %v2334_v9 }
 0x2ae   : > { %v5340_v11 = vpop.f32.mrb[60].mxu1  ;;  %v7366_v10 = vadd.f32 %v7212_v22, %v2337_v27 }
 0x2af   : > { %v5341_v1 = vpop.f32.mrb[61].mxu1 }
 0x2b0   : > { %v5342_v30 = vadd.f32 %v5341_v1, %v5340_v11  ;;  %v5343_v6 = vpop.f32.mrb[62].mxu1 }
 0x2b1   : > { %v5344_v25 = vpop.f32.mrb[63].mxu1 }
 0x2b2   : > { %v2342_v31 = vadd.f32 %v5342_v30, %v2245_v61  ;;  %v5345_v56 = vadd.f32 %v5344_v25, %v5343_v6 }
 0x2b4   : > { %v2345_v28 = vadd.f32 %v5345_v56, %v2248_v62  ;;  %v7373_v3 = vadd.f32 %v7229_v54, %v2342_v31 }
 0x2b6   : > { %v5426_v4 = vpop.f32.mrb[64].mxu1  ;;  %v7376_v22 = vadd.f32 %v7234_v0, %v2345_v28 }
 0x2b7   : > { %v5427_v41 = vpop.f32.mrb[65].mxu1 }
 0x2b8   : > { %v5428_v13 = vadd.f32 %v5427_v41, %v5426_v4  ;;  %v5429_v52 = vpop.f32.mrb[66].mxu1 }
 0x2b9   : > { %v5430_v42 = vpop.f32.mrb[67].mxu1 }
 0x2ba   : > { %v2480_v16 = vadd.f32 %v5428_v13, %v7303_v51  ;;  %v5431_v2 = vadd.f32 %v5430_v42, %v5429_v52  ;;  %v6126_v42 = vld [vmem:[%s8345_s3 + $0x148] sm:$0xff]  }
 0x2bc   : > { %v2577_v43 = vadd.f32 %v7238_v23, %v2480_v16  ;;  %v2483_v15 = vadd.f32 %v5431_v2, %v7306_v5 }
 0x2be   : > { %v2639_v63 = vmul.f32 0.1, %v2577_v43  ;;  %v2580_v46 = vadd.f32 %v7242_v59, %v2483_v15  ;;  %v5432_v54 = vpop.f32.mrb[68].mxu1 }
 0x2bf   : > { %v5433_v53 = vpop.f32.mrb[69].mxu1 }
 0x2c0   : > { %v7382_v19 = vmax.f32 %v2577_v43, %v2639_v63  ;;  %v2640_v0 = vmul.f32 0.1, %v2580_v46  ;;  %v5434_v35 = vadd.f32 %v5433_v53, %v5432_v54  ;;  %v5435_v29 = vpop.f32.mrb[70].mxu1  ;;  %v6136_v53 = vld [vmem:[%s8345_s3 + $0x1c8] sm:$0xff]  }
 0x2c1   : > { %v5436_v21 = vpop.f32.mrb[71].mxu1 }
 0x2c2   : > { %2671 = vst [vmem:[#allocation3 + $0x10] sm:$0xff] %v7382_v19  ;;  %v7385_v14 = vmax.f32 %v2580_v46, %v2640_v0  ;;  %v2488_v51 = vadd.f32 %v5434_v35, %v7313_v36  ;;  %v5437_v23 = vadd.f32 %v5436_v21, %v5435_v29  ;;  %v2743_v5 = vpack.c.bf16 %v7382_v19, %v6973_v7  ;;  %v2687_v36 = vld [vmem:[#allocation3 + $0x7] sm:$0xff] }
 0x2c3   : > { %v6165_v46 = vld [vmem:[%s8346_s4 + $0x8] sm:$0xff]  }
 0x2c4   : > { %2672 = vst [vmem:[#allocation3 + $0x18] sm:$0xff] %v7385_v14  ;;  %v2585_v59 = vadd.f32 %v7236_v48, %v2488_v51  ;;  %v2491_v9 = vadd.f32 %v5437_v23, %v7316_v8  ;;  %3755 = vmatprep.mubr.bf16.mxu1 %v2743_v5  ;;  %v6125_v48 = vld [vmem:[%s8345_s3 + $0x100] sm:$0xff]   ;;  %v8397_v8 = vand.u32 7, %v6513_v12  ;;  %v6128_v51 = vld [vmem:[%s8345_s3 + $0x150] sm:$0xff]  }
 0x2c6   : > { %v2641_v27 = vmul.f32 0.1, %v2585_v59  ;;  %v2588_v11 = vadd.f32 %v7240_v38, %v2491_v9  ;;  %v5438_v1 = vpop.f32.mrb[72].mxu1  ;;  %vm7403_vm12 = vcmp.ne.s32.totalorder %v8397_v8, 7  ;;  %v8400_v38 = vand.u32 7, %v6607_v20 }
 0x2c7   : > { %v5439_v61 = vpop.f32.mrb[73].mxu1 }
 0x2c8   : > { %v7396_v30 = vmax.f32 %v2585_v59, %v2641_v27  ;;  %v2642_v6 = vmul.f32 0.1, %v2588_v11  ;;  %v5440_v7 = vadd.f32 %v5439_v61, %v5438_v1  ;;  %v5441_v25 = vpop.f32.mrb[74].mxu1  ;;  %vm7409_vm13 = vcmp.ne.s32.totalorder %v8400_v38, 7  ;;  %v6138_v61 = vld [vmem:[%s8345_s3 + $0x168] sm:$0xff]  }
 0x2c9   : > { %v5442_v62 = vpop.f32.mrb[75].mxu1  ;;  %v2688_v31 = vld [vmem:[#allocation3 + $0xf] sm:$0xff]  ;;  %vm7435_vm14 = vmpackc.low %vm7409_vm13, %vm7403_vm12  ;;  %v8405_v1 = vand.u32 7, %v6641_v44 }
 0x2ca   : > { %2673 = vst [vmem:[#allocation3 + $0x20] sm:$0xff] %v7396_v30  ;;  %v7414_v4 = vmax.f32 %v2588_v11, %v2642_v6  ;;  %v2496_v41 = vadd.f32 %v5440_v7, %v7323_v47  ;;  %v5443_v13 = vadd.f32 %v5442_v62, %v5441_v25  ;;  %v5035_v52 = vpack.c.bf16 %v2688_v31, %v2687_v36  ;;  %v2767_v2 = vld [vmem:[#allocation3 + $0x9] sm:$0xff] }
 0x2cb   : > { %v2816_v16 = vld [vmem:[#allocation3 + $0x17] sm:$0xff]  ;;  %v7424_v20 = vpack.c.bf16 %v7396_v30, %v7385_v14  ;;  %vm7464_vm15 = vcmp.ne.s32.totalorder %v8405_v1, 7  ;;  %v8408_v36 = vand.u32 7, %v6644_v45 }
 0x2cc   : > { %v7420_v43 = vld [vmem:[#allocation3 + $0x11] sm:$0xff]  ;;  %2674 = vst [vmem:[#allocation3 + $0x28] sm:$0xff] %v7414_v4  ;;  %v2593_v15 = vadd.f32 %v7253_v32, %v2496_v41  ;;  %v2499_v47 = vadd.f32 %v5443_v13, %v7326_v60  ;;  %5036 = vmatmul.mubr.msk.bf16.vlgmr.msra.gmra.mrb[96].mxu1 %vm6653_vm2, %v5035_v52  ;;  %v5059_v63 = vpack.c.bf16 %v2816_v16, %v2688_v31  ;;  %v6133_v32 = vld [vmem:[%s8345_s3 + $0x180] sm:$0xff]   ;;  %v6127_v60 = vld [vmem:[%s8345_s3 + $0x108] sm:$0xff]  }
 0x2cd   : > { %v5062_v54 = vpack.c.bf16 %v7420_v43, %v2767_v2  ;;  %5619 = vmatpush3.bf16.msra.mxu1 %v6125_v48  ;;  %3763 = vmatprep.mubr.bf16.mxu1 %v7424_v20  ;;  %vm7470_vm0 = vcmp.ne.s32.totalorder %v8408_v36, 7  ;;  %v6129_v7 = vld [vmem:[%s8345_s3 + $0x110] sm:$0xff]   ;;  %v6130_v45 = vld [vmem:[%s8345_s3 + $0x158] sm:$0xff]  }
 0x2ce   : > { %v2643_v35 = vmul.f32 0.1, %v2593_v15  ;;  %v2596_v29 = vadd.f32 %v7257_v37, %v2499_v47  ;;  %v5444_v21 = vpop.f32.mrb[76].mxu1  ;;  %5060 = vmatprep.mubr.msk.bf16.mxu0 %vm6653_vm2, %v5059_v63  ;;  %5620 = vmatprep.subr.bf16.mxu1 %v6126_v42  ;;  %vm7504_vm1 = vmpackc.low %vm7470_vm0, %vm7464_vm15  ;;  %v6140_v42 = vld [vmem:[%s8345_s3 + $0x1d0] sm:$0xff]   ;;  %v6134_v63 = vld [vmem:[%s8345_s3 + $0x160] sm:$0xff]  }
 0x2cf   : > { %v5445_v23 = vpop.f32.mrb[77].mxu1  ;;  %5063 = vmatmul.mubr.msk.bf16.vlgmr.msra.gmra.mrb[112].mxu0 %vm7435_vm14, %v5062_v54  ;;  %v6167_v13 = vld [vmem:[%s8346_s4 + $0x18] sm:$0xff]  }
 0x2d0   : > { %v7460_v5 = vmax.f32 %v2593_v15, %v2643_v35  ;;  %v2644_v59 = vmul.f32 0.1, %v2596_v29  ;;  %v5446_v9 = vadd.f32 %v5445_v23, %v5444_v21  ;;  %v5447_v27 = vpop.f32.mrb[78].mxu1  ;;  %5683 = vmatpush3.bf16.msra.mxu0 %v6133_v32  ;;  %v8413_v21 = vand.u32 7, %v6681_v17  ;;  %v8416_v23 = vld [vmem:[#allocation6_spill] sm:$0xff] }
 0x2d1   : > { %v5448_v37 = vpop.f32.mrb[79].mxu1  ;;  %v2690_v11 = vld [vmem:[#allocation3 + $0x1f] sm:$0xff]  ;;  %5621 = vmatpush3.bf16.msra.mxu1 %v6127_v60  ;;  %5684 = vmatprep.subr.bf16.mxu0 %v6136_v53 }
 0x2d2   : > { %2675 = vst [vmem:[#allocation3 + $0x30] sm:$0xff] %v7460_v5  ;;  %v7478_v25 = vmax.f32 %v2596_v29, %v2644_v59  ;;  %v2504_v44 = vadd.f32 %v5446_v9, %v7333_v39  ;;  %v5449_v62 = vadd.f32 %v5448_v37, %v5447_v27  ;;  %v7481_v31 = vpack.c.bf16 %v2690_v11, %v2816_v16  ;;  %v7486_v8 = vld [vmem:[#allocation3 + $0x19] sm:$0xff] }
 0x2d3   : > { %5622 = vmatprep.subr.bf16.mxu1 %v6128_v51  ;;  %v2818_v48 = vld [vmem:[#allocation3 + $0x27] sm:$0xff]  ;;  %v7492_v38 = vpack.c.bf16 %v7460_v5, %v7414_v4  ;;  %vm7537_vm3 = vcmp.ne.s32.totalorder %v8413_v21, 7  ;;  %v8417_v59 = vand.u32 7, %v8416_v23  ;;  %v8425_v23 = vld [vmem:[#allocation7_spill] sm:$0xff] }
 0x2d4   : > { %v7488_v56 = vld [vmem:[#allocation3 + $0x21] sm:$0xff]  ;;  %2676 = vst [vmem:[#allocation3 + $0x38] sm:$0xff] %v7478_v25  ;;  %v2601_v39 = vadd.f32 %v7249_v34, %v2504_v44  ;;  %v2507_v28 = vadd.f32 %v5449_v62, %v7336_v57  ;;  %5039 = vmatmul.mubr.msk.bf16.gmra.mrb[100].mxu1 %vm6709_vm5, %v7481_v31  ;;  %v5065_v41 = vpack.c.bf16 %v2818_v48, %v2690_v11  ;;  %v6131_v57 = vld [vmem:[%s8345_s3 + $0x118] sm:$0xff]  }
 0x2d5   : > { %v7510_v52 = vpack.c.bf16 %v7488_v56, %v7486_v8  ;;  %v6137_v34 = vld [vmem:[%s8345_s3 + $0x188] sm:$0xff]   ;;  %3771 = vmatprep.mubr.bf16.mxu1 %v7492_v38  ;;  %5623 = vmatpush3.bf16.msra.mxu1 %v6129_v7  ;;  %vm7543_vm4 = vcmp.ne.s32.totalorder %v8417_v59, 7  ;;  %v6135_v27 = vld [vmem:[%s8345_s3 + $0x120] sm:$0xff]   ;;  %v8426_v59 = vand.u32 7, %v8425_v23 }
 0x2d6   : > { %v2645_v2 = vmul.f32 0.1, %v2601_v39  ;;  %v2604_v15 = vadd.f32 %v7255_v50, %v2507_v28  ;;  %v5450_v47 = vpop.f32.mrb[80].mxu1  ;;  %5066 = vmatprep.mubr.msk.bf16.mxu0 %vm6709_vm5, %v5065_v41  ;;  %5624 = vmatprep.subr.bf16.mxu1 %v6130_v45  ;;  %vm7577_vm6 = vmpackc.low %vm7543_vm4, %vm7537_vm3  ;;  %v8450_v28 = vld [vmem:[#allocation5_spill] sm:$0xff] }
 0x2d7   : > { %v5451_v54 = vpop.f32.mrb[81].mxu1  ;;  %5069 = vmatmul.mubr.msk.bf16.gmra.mrb[116].mxu0 %vm7504_vm1, %v7510_v52  ;;  %vm7610_vm7 = vcmp.ne.s32.totalorder %v8426_v59, 7  ;;  %v8437_v59 = vld [vmem:[#allocation13_spill] sm:$0xff] }
 0x2d8   : > { %v7533_v32 = vmax.f32 %v2601_v39, %v2645_v2  ;;  %v2646_v60 = vmul.f32 0.1, %v2604_v15  ;;  %v5452_v53 = vadd.f32 %v5451_v54, %v5450_v47  ;;  %v5453_v35 = vpop.f32.mrb[82].mxu1  ;;  %5685 = vmatpush3.bf16.msra.mxu0 %v6137_v34  ;;  %v6139_v34 = vld [vmem:[%s8345_s3 + $0x128] sm:$0xff]   ;;  %v6143_v54 = vld [vmem:[%s8345_s3 + $0x170] sm:$0xff]  }
 0x2d9   : > { %v5454_v50 = vpop.f32.mrb[83].mxu1  ;;  %v2692_v29 = vld [vmem:[#allocation3 + $0x2f] sm:$0xff]  ;;  %5625 = vmatpush3.bf16.msra.mxu1 %v6131_v57  ;;  %5686 = vmatprep.subr.bf16.mxu0 %v6140_v42  ;;  %v6142_v57 = vld [vmem:[%s8345_s3 + $0x1d8] sm:$0xff]  }
 0x2da   : > { %2677 = vst [vmem:[#allocation3 + $0x40] sm:$0xff] %v7533_v32  ;;  %v7551_v37 = vmax.f32 %v2604_v15, %v2646_v60  ;;  %v2512_v17 = vadd.f32 %v5452_v53, %v7343_v55  ;;  %v5455_v11 = vadd.f32 %v5454_v50, %v5453_v35  ;;  %v7554_v1 = vpack.c.bf16 %v2692_v29, %v2818_v48  ;;  %v7559_v6 = vld [vmem:[#allocation3 + $0x29] sm:$0xff]  ;;  %v8420_v55 = vld [vmem:[#allocation12_spill] sm:$0xff] }
 0x2db   : > { %5626 = vmatprep.subr.bf16.mxu1 %v6134_v63  ;;  %v2820_v36 = vld [vmem:[#allocation3 + $0x37] sm:$0xff]  ;;  %v7565_v44 = vpack.c.bf16 %v7533_v32, %v7478_v25  ;;  %v8424_v15 = vld [vmem:[#allocation14_spill] sm:$0xff] }
 0x2dc   : > { %v7561_v7 = vld [vmem:[#allocation3 + $0x31] sm:$0xff]  ;;  %2678 = vst [vmem:[#allocation3 + $0x48] sm:$0xff] %v7551_v37  ;;  %v2609_v62 = vadd.f32 %v8420_v55, %v2512_v17  ;;  %v2515_v45 = vadd.f32 %v5455_v11, %v7346_v24  ;;  %5042 = vmatmul.mubr.msk.bf16.gmra.mrb[104].mxu1 %vm6764_vm8, %v7554_v1  ;;  %v5071_v39 = vpack.c.bf16 %v2820_v36, %v2692_v29 }
 0x2dd   : > { %v7583_v41 = vpack.c.bf16 %v7561_v7, %v7559_v6  ;;  %v6141_v24 = vld [vmem:[%s8345_s3 + $0x190] sm:$0xff]   ;;  %3779 = vmatprep.mubr.bf16.mxu1 %v7565_v44  ;;  %5627 = vmatpush3.bf16.msra.mxu1 %v6135_v27  ;;  %v8429_v27 = vld [vmem:[#allocation8_spill] sm:$0xff] }
 0x2de   : > { %v2647_v2 = vmul.f32 0.1, %v2609_v62  ;;  %v2612_v47 = vadd.f32 %v8424_v15, %v2515_v45  ;;  %v5456_v63 = vpop.f32.mrb[84].mxu1  ;;  %5072 = vmatprep.mubr.msk.bf16.mxu0 %vm6764_vm8, %v5071_v39  ;;  %5628 = vmatprep.subr.bf16.mxu1 %v6138_v61  ;;  %v8430_v17 = vand.u32 7, %v8429_v27  ;;  %v6144_v61 = vld [vmem:[%s8345_s3 + $0x198] sm:$0xff]  }
 0x2df   : > { %v5457_v60 = vpop.f32.mrb[85].mxu1  ;;  %5075 = vmatmul.mubr.msk.bf16.gmra.mrb[120].mxu0 %vm7577_vm6, %v7583_v41  ;;  %v3030_v48 = vld [vmem:[#allocation3 + $0x51] sm:$0xff] }
 0x2e0   : > { %v7606_v53 = vmax.f32 %v2609_v62, %v2647_v2  ;;  %v2648_v35 = vmul.f32 0.1, %v2612_v47  ;;  %v5458_v50 = vadd.f32 %v5457_v60, %v5456_v63  ;;  %v5459_v29 = vpop.f32.mrb[86].mxu1  ;;  %5687 = vmatpush3.bf16.msra.mxu0 %v6141_v24  ;;  %vm7616_vm9 = vcmp.ne.s32.totalorder %v8430_v17, 7  ;;  %v6145_v24 = vld [vmem:[%s8345_s3 + $0x130] sm:$0xff]   ;;  %v6148_v17 = vld [vmem:[%s8345_s3 + $0x1e8] sm:$0xff]  }
 0x2e1   : > { %v5460_v21 = vpop.f32.mrb[87].mxu1  ;;  %v2694_v51 = vld [vmem:[#allocation3 + $0x3f] sm:$0xff]  ;;  %5629 = vmatpush3.bf16.msra.mxu1 %v6139_v34  ;;  %5688 = vmatprep.subr.bf16.mxu0 %v6142_v57  ;;  %vm7656_vm10 = vmpackc.low %vm7616_vm9, %vm7610_vm7 }
 0x2e2   : > { %2679 = vst [vmem:[#allocation3 + $0x70] sm:$0xff] %v7606_v53  ;;  %v7624_v55 = vmax.f32 %v2612_v47, %v2648_v35  ;;  %v2520_v62 = vadd.f32 %v5458_v50, %v7353_v26  ;;  %v5461_v45 = vadd.f32 %v5460_v21, %v5459_v29  ;;  %v7627_v39 = vpack.c.bf16 %v2694_v51, %v2820_v36  ;;  %v6146_v34 = vld [vmem:[%s8345_s3 + $0x1e0] sm:$0xff]   ;;  %v7641_v47 = vld [vmem:[#allocation2 + $0x8] sm:$0xff]  ;;  %v8433_v36 = vld [vmem:[#allocation11_spill] sm:$0xff] }
 0x2e3   : > { %5630 = vmatprep.subr.bf16.mxu1 %v6143_v54  ;;  %v7635_v57 = vld [vmem:[#allocation3 + $0x47] sm:$0xff]  ;;  %v7637_v2 = vld [vmem:[#allocation3 + $0x39] sm:$0xff]  ;;  %v2759_v26 = vpack.c.bf16 %v7606_v53, %v7641_v47  ;;  %v3289_v50 = vsub.s32 2, %v8450_v28 }
 0x2e4   : > { %v7639_v15 = vld [vmem:[#allocation3 + $0x41] sm:$0xff]  ;;  %2680 = vst [vmem:[#allocation3 + $0x78] sm:$0xff] %v7624_v55  ;;  %v2617_v63 = vadd.f32 %v8433_v36, %v2520_v62  ;;  %v2523_v54 = vadd.f32 %v5461_v45, %v7356_v18  ;;  %5045 = vmatmul.mubr.msk.bf16.gmra.mrb[108].mxu1 %vm6803_vm11, %v7627_v39  ;;  %v5077_v35 = vpack.c.bf16 %v7635_v57, %v2694_v51  ;;  %v6149_v18 = vld [vmem:[%s8345_s3 + $0x178] sm:$0xff]  }
 0x2e5   : > { %v7662_v29 = vpack.c.bf16 %v7639_v15, %v7637_v2  ;;  %3787 = vmatprep.mubr.bf16.mxu1 %v2759_v26  ;;  %5689 = vmatpush3.bf16.msra.mxu0 %v6144_v61  ;;  %v6147_v21 = vld [vmem:[%s8345_s3 + $0x1a0] sm:$0xff]   ;;  %v6151_v62 = vld [vmem:[%s8345_s3 + $0x138] sm:$0xff]  }
 0x2e6   : > { %v2649_v23 = vmul.f32 0.1, %v2617_v63  ;;  %v2620_v9 = vadd.f32 %v8437_v59, %v2523_v54  ;;  %v5462_v27 = vpop.f32.mrb[88].mxu1  ;;  %5078 = vmatprep.mubr.msk.bf16.mxu0 %vm6803_vm11, %v5077_v35  ;;  %5631 = vmatpush3.bf16.msra.mxu1 %v6145_v24  ;;  %v2711_v61 = vld [vmem:[#allocation3 + $0x67] sm:$0xff] }
 0x2e7   : > { %v5463_v11 = vpop.f32.mrb[89].mxu1  ;;  %5081 = vmatmul.mubr.msk.bf16.gmra.mrb[124].mxu0 %vm7656_vm10, %v7662_v29  ;;  %5690 = vmatprep.subr.bf16.mxu0 %v6146_v34  ;;  %v6150_v59 = vld [vmem:[%s8345_s3 + $0x1a8] sm:$0xff]   ;;  %v6164_v60 = vld [vmem:[%s8346_s4] sm:$0xff]  }
 0x2e8   : > { %v7684_v45 = vmax.f32 %v2617_v63, %v2649_v23  ;;  %v2650_v26 = vmul.f32 0.1, %v2620_v9  ;;  %v5464_v36 = vadd.f32 %v5463_v11, %v5462_v27  ;;  %v5465_v24 = vpop.f32.mrb[90].mxu1  ;;  %5632 = vmatprep.subr.bf16.mxu1 %v6149_v18  ;;  %v6152_v18 = vld [vmem:[%s8345_s3 + $0x1f0] sm:$0xff]  }
 0x2e9   : > { %v5466_v54 = vpop.f32.mrb[91].mxu1  ;;  %v2712_v35 = vld [vmem:[#allocation3 + $0x6f] sm:$0xff]  ;;  %5691 = vmatpush3.bf16.msra.mxu0 %v6147_v21  ;;  %v7699_v21 = vld [vmem:[%s8345_s3 + $0x200] sm:$0xff]  }
 0x2ea   : > { %2681 = vst [vmem:[#allocation3 + $0x80] sm:$0xff] %v7684_v45  ;;  %v7690_v34 = vmax.f32 %v2620_v9, %v2650_v26  ;;  %v2528_v51 = vadd.f32 %v5464_v36, %v7363_v49  ;;  %v5467_v42 = vadd.f32 %v5466_v54, %v5465_v24  ;;  %v5047_v63 = vpack.c.bf16 %v2712_v35, %v2711_v61  ;;  %v2791_v27 = vld [vmem:[#allocation3 + $0x69] sm:$0xff]  ;;  %v8438_v49 = vld [vmem:[#allocation16_spill] sm:$0xff] }
 0x2eb   : > { %5692 = vmatprep.subr.bf16.mxu0 %v6148_v17  ;;  %v2840_v23 = vld [vmem:[#allocation3 + $0x77] sm:$0xff]  ;;  %v7705_v9 = vpack.c.bf16 %v7684_v45, %v7624_v55  ;;  %5633 = vmatpush3.bf16.msra.mxu1 %v6151_v62 }
 0x2ec   : > { %v7701_v11 = vld [vmem:[#allocation3 + $0x71] sm:$0xff]  ;;  %2682 = vst [vmem:[#allocation3 + $0x88] sm:$0xff] %v7690_v34  ;;  %v2625_v17 = vadd.f32 %v8438_v49, %v2528_v51  ;;  %v2531_v61 = vadd.f32 %v5467_v42, %v7366_v10  ;;  %5048 = vmatmul.mubr.msk.bf16.gmra.mrb[112].mxu1 %vm6653_vm2, %v5047_v63  ;;  %v5083_v26 = vpack.c.bf16 %v2840_v23, %v2712_v35  ;;  %v8439_v51 = vld [vmem:[#allocation18_spill] sm:$0xff] }
 0x2ed   : > { %v5086_v36 = vpack.c.bf16 %v7701_v11, %v2791_v27  ;;  %3795 = vmatprep.mubr.bf16.mxu1 %v7705_v9  ;;  %5693 = vmatpush3.bf16.msra.mxu0 %v6150_v59  ;;  %v6153_v24 = vld [vmem:[%s8345_s3 + $0x1b0] sm:$0xff]   ;;  %v6154_v42 = vld [vmem:[%s8345_s3 + $0x1f8] sm:$0xff]  }
 0x2ee   : > { %v2651_v54 = vmul.f32 0.1, %v2625_v17  ;;  %v2628_v49 = vadd.f32 %v8439_v51, %v2531_v61  ;;  %v5468_v10 = vpop.f32.mrb[92].mxu1  ;;  %5084 = vmatprep.mubr.msk.bf16.mxu0 %vm6653_vm2, %v5083_v26  ;;  %5694 = vmatprep.subr.bf16.mxu0 %v6152_v18  ;;  %v6155_v18 = vld [vmem:[%s8345_s3 + $0x1b8] sm:$0xff]  }
 0x2ef   : > { %v5469_v35 = vpop.f32.mrb[93].mxu1  ;;  %5087 = vmatmul.mubr.msk.bf16.gmra.mrb[128].mxu0 %vm7435_vm14, %v5086_v36  ;;  %5890 = vmatprep.subr.bf16.mxu1 %v7699_v21 }
 0x2f0   : > { %v7728_v59 = vmax.f32 %v2625_v17, %v2651_v54  ;;  %v2652_v63 = vmul.f32 0.1, %v2628_v49  ;;  %v5470_v27 = vadd.f32 %v5469_v35, %v5468_v10  ;;  %v5471_v61 = vpop.f32.mrb[94].mxu1  ;;  %v8440_v35 = vld [vmem:[#allocation15_spill] sm:$0xff] }
 0x2f1   : > { %v5472_v51 = vpop.f32.mrb[95].mxu1  ;;  %v2714_v62 = vld [vmem:[#allocation3 + $0x7f] sm:$0xff]  ;;  %5695 = vmatpush3.bf16.msra.mxu0 %v6153_v24 }
 0x2f2   : > { %2683 = vst [vmem:[#allocation3 + $0x90] sm:$0xff] %v7728_v59  ;;  %v7734_v26 = vmax.f32 %v2628_v49, %v2652_v63  ;;  %v2536_v36 = vadd.f32 %v5470_v27, %v7373_v3  ;;  %v5473_v16 = vadd.f32 %v5472_v51, %v5471_v61  ;;  %v7737_v0 = vpack.c.bf16 %v2714_v62, %v2840_v23  ;;  %v7739_v54 = vld [vmem:[#allocation3 + $0x79] sm:$0xff] }
 0x2f3   : > { %5696 = vmatprep.subr.bf16.mxu0 %v6154_v42  ;;  %v2842_v17 = vld [vmem:[#allocation3 + $0x87] sm:$0xff]  ;;  %v7745_v24 = vpack.c.bf16 %v7728_v59, %v7690_v34  ;;  %v5107_v42 = vpack.c.bf16 %v7486_v8, %v7420_v43  ;;  %v5110_v8 = vpack.c.bf16 %v7559_v6, %v7488_v56  ;;  %v8443_v56 = vpack.c.bf16 %v7414_v4, %v7396_v30 }
 0x2f4   : > { %v7741_v10 = vld [vmem:[#allocation3 + $0x81] sm:$0xff]  ;;  %2684 = vst [vmem:[#allocation3 + $0x98] sm:$0xff] %v7734_v26  ;;  %v2633_v49 = vadd.f32 %v8440_v35, %v2536_v36  ;;  %v2539_v63 = vadd.f32 %v5473_v16, %v7376_v22  ;;  %5051 = vmatmul.mubr.msk.bf16.gmra.mrb[116].mxu1 %vm6709_vm5, %v7737_v0  ;;  %v5089_v3 = vpack.c.bf16 %v2842_v17, %v2714_v62 }
 0x2f5   : > { %v7755_v23 = vpack.c.bf16 %v7741_v10, %v7739_v54  ;;  %3803 = vmatprep.mubr.bf16.mxu1 %v7745_v24  ;;  %5697 = vmatpush3.bf16.msra.mxu0 %v6155_v18  ;;  %v8441_v61 = vld [vmem:[#allocation17_spill] sm:$0xff]  ;;  %v6157_v43 = vld [vmem:[%s8345_s3 + $0x208] sm:$0xff]   ;;  %v8444_v6 = vpack.c.bf16 %v7478_v25, %v7460_v5  ;;  %v6163_v25 = vld [vmem:[%s8345_s3 + $0x238] sm:$0xff]  }
 0x2f6   : > { %v2653_v27 = vmul.f32 0.1, %v2633_v49  ;;  %v2636_v51 = vadd.f32 %v8441_v61, %v2539_v63  ;;  %5090 = vmatprep.mubr.msk.bf16.mxu0 %vm6709_vm5, %v5089_v3  ;;  %v6161_v30 = vld [vmem:[%s8345_s3 + $0x228] sm:$0xff]   ;;  %5922 = vmatprep.subr.bf16.mxu0 %v6164_v60 }
 0x2f7   : > { %5093 = vmatmul.mubr.msk.bf16.gmra.mrb[132].mxu0 %vm7504_vm1, %v7755_v23  ;;  %v2950_v5 = vld [vmem:[#allocation3 + $0x4f] sm:$0xff] }
 0x2f8   : > { %v7766_v22 = vmax.f32 %v2633_v49, %v2653_v27  ;;  %v2654_v16 = vmul.f32 0.1, %v2636_v51 }
 0x2f9   : > { %v2716_v62 = vld [vmem:[#allocation3 + $0x8f] sm:$0xff] }
 0x2fa   : > { %2685 = vst [vmem:[#allocation3 + $0xa0] sm:$0xff] %v7766_v22  ;;  %v7769_v18 = vmax.f32 %v2636_v51, %v2654_v16  ;;  %v7771_v36 = vpack.c.bf16 %v2716_v62, %v2842_v17  ;;  %v7775_v35 = vpack.c.bf16 %v7766_v22, %v7734_v26  ;;  %v7777_v3 = vld [vmem:[#allocation3 + $0x89] sm:$0xff] }
 0x2fb   : > { %v2844_v63 = vld [vmem:[#allocation3 + $0x97] sm:$0xff] }
 0x2fc   : > { %v7779_v61 = vld [vmem:[#allocation3 + $0x91] sm:$0xff]  ;;  %2686 = vst [vmem:[#allocation3 + $0xa8] sm:$0xff] %v7769_v18  ;;  %5054 = vmatmul.mubr.msk.bf16.gmra.mrb[120].mxu1 %vm6764_vm8, %v7771_v36  ;;  %v5095_v49 = vpack.c.bf16 %v2844_v63, %v2716_v62 }
 0x2fd   : > { %v7787_v17 = vpack.c.bf16 %v7779_v61, %v7777_v3  ;;  %3811 = vmatprep.mubr.bf16.mxu1 %v7775_v35 }
 0x2fe   : > { %5096 = vmatprep.mubr.msk.bf16.mxu0 %vm6764_vm8, %v5095_v49 }
 0x2ff   : > { %5099 = vmatmul.mubr.msk.bf16.gmra.mrb[136].mxu0 %vm7577_vm6, %v7787_v17 }
 0x301   : > { %v2718_v51 = vld [vmem:[#allocation3 + $0x9f] sm:$0xff] }
 0x302   : > { %v7797_v16 = vpack.c.bf16 %v2718_v51, %v2844_v63  ;;  %v7803_v33 = vld [vmem:[#allocation3 + $0x99] sm:$0xff]  ;;  %v8442_v63 = vpack.c.bf16 %v7385_v14, %v7382_v19  ;;  %v5113_v14 = vpack.c.bf16 %v7637_v2, %v7561_v7  ;;  %v6162_v7 = vld [vmem:[%s8345_s3 + $0x230] sm:$0xff]   ;;  %v8445_v2 = vpack.c.bf16 %v7551_v37, %v7533_v32 }
 0x303   : > { %v7799_v62 = vld [vmem:[#allocation3 + $0xa7] sm:$0xff]  ;;  %v6159_v19 = vld [vmem:[%s8345_s3 + $0x218] sm:$0xff]   ;;  %v8446_v32 = vpack.c.bf16 %v7624_v55, %v7606_v53  ;;  %v8448_v53 = vpack.c.bf16 %v7734_v26, %v7728_v59  ;;  %v2974_v40 = vld [vmem:[#allocation3 + $0xaf] sm:$0xff]  ;;  %v8449_v55 = vpack.c.bf16 %v7769_v18, %v7766_v22 }
 0x304   : > { %v7805_v27 = vld [vmem:[#allocation3 + $0xa1] sm:$0xff]  ;;  %5057 = vmatmul.mubr.msk.bf16.gmra.mrb[124].mxu1 %vm6803_vm11, %v7797_v16  ;;  %v5101_v49 = vpack.c.bf16 %v7799_v62, %v2718_v51  ;;  %v2926_v58 = vld [vmem:[#allocation3 + $0xa9] sm:$0xff] }
 0x305   : > { %v7813_v12 = vpack.c.bf16 %v7805_v27, %v7803_v33  ;;  %5108 = vmatprep.mubr.msk.bf16.mxu1 %vm7435_vm14, %v5107_v42  ;;  %v6169_v59 = vld [vmem:[%s8346_s4 + $0x28] sm:$0xff]  }
 0x306   : > { %5102 = vmatprep.mubr.msk.bf16.mxu0 %vm6803_vm11, %v5101_v49  ;;  %v6171_v49 = vld [vmem:[%s8346_s4 + $0x38] sm:$0xff]  }
 0x307   : > { %5105 = vmatmul.mubr.msk.bf16.gmra.mrb[140].mxu0 %vm7656_vm10, %v7813_v12 }
 0x308   : > { %4046 = vmatprep.mubr.bf16.mxu0 %v7424_v20  ;;  %v6158_v20 = vld [vmem:[%s8345_s3 + $0x210] sm:$0xff]  }
 0x30c   : > { %3950 = vmatmul.mubr.bf16.vlgmr.msra.gmra.mrb[128].mxu1 %v8442_v63 }
 0x30d   : > { %5891 = vmatpush3.bf16.msra.mxu1 %v7699_v21  ;;  %5111 = vmatprep.mubr.msk.bf16.mxu1 %vm7504_vm1, %v5110_v8  ;;  %v7969_v21 = vld [vmem:[%s8347_s5] sm:$0xff] }
 0x30e   : > { %5892 = vmatprep.subr.bf16.mxu1 %v6157_v43 }
 0x30f   : > { %5132 = vmatmul.mubr.msk.bf16.vlgmr.msra.gmra.mrb[144].mxu0 %vm6653_vm2, %v7481_v31  ;;  %v6160_v31 = vld [vmem:[%s8345_s3 + $0x220] sm:$0xff]  }
 0x310   : > { %4054 = vmatprep.mubr.bf16.mxu0 %v7492_v38  ;;  %v2902_v38 = vld [vmem:[#allocation3 + $0x49] sm:$0xff]  ;;  %5923 = vmatpush3.bf16.msra.mxu0 %v6164_v60 }
 0x311   : > { %5893 = vmatpush3.bf16.msra.mxu1 %v6157_v43  ;;  %v5116_v4 = vpack.c.bf16 %v2902_v38, %v7639_v15  ;;  %v5122_v15 = vpack.c.bf16 %v7777_v3, %v7741_v10  ;;  %5924 = vmatprep.subr.bf16.mxu0 %v6165_v46 }
 0x312   : > { %5894 = vmatprep.subr.bf16.mxu1 %v6158_v20 }
 0x314   : > { %3958 = vmatmul.mubr.bf16.gmra.mrb[132].mxu1 %v8443_v56  ;;  %5925 = vmatpush3.bf16.msra.mxu0 %v6165_v46 }
 0x315   : > { %5114 = vmatprep.mubr.msk.bf16.mxu1 %vm7577_vm6, %v5113_v14  ;;  %5895 = vmatpush3.bf16.msra.mxu1 %v6158_v20 }
 0x316   : > { %5896 = vmatprep.subr.bf16.mxu1 %v6159_v19 }
 0x317   : > { %5135 = vmatmul.mubr.msk.bf16.gmra.mrb[148].mxu0 %vm6709_vm5, %v7554_v1  ;;  %v3002_v1 = vpack.c.bf16 %v7641_v47, %v7551_v37  ;;  %v5125_v37 = vpack.c.bf16 %v7803_v33, %v7779_v61  ;;  %v3018_v33 = vpack.c.bf16 %v7641_v47, %v7769_v18  ;;  %v5164_v47 = vpack.c.bf16 %v3030_v48, %v2902_v38 }
 0x318   : > { %4062 = vmatprep.mubr.bf16.mxu0 %v7565_v44  ;;  %v5119_v44 = vpack.c.bf16 %v7739_v54, %v7701_v11  ;;  %v7974_v11 = vrot.slane %v7969_v21, %v3289_v50 }
 0x319   : > { %5897 = vmatpush3.bf16.msra.mxu1 %v6159_v19 }
 0x31a   : > { %5898 = vmatprep.subr.bf16.mxu1 %v6160_v31 }
 0x31c   : > { %3966 = vmatmul.mubr.bf16.gmra.mrb[136].mxu1 %v8444_v6 }
 0x31d   : > { %5117 = vmatprep.mubr.msk.bf16.mxu1 %vm7656_vm10, %v5116_v4  ;;  %5899 = vmatpush3.bf16.msra.mxu1 %v6160_v31 }
 0x31e   : > { %5900 = vmatprep.subr.bf16.mxu1 %v6161_v30 }
 0x31f   : > { %5138 = vmatmul.mubr.msk.bf16.gmra.mrb[152].mxu0 %vm6764_vm8, %v7627_v39  ;;  %v5140_v39 = vpack.c.bf16 %v2950_v5, %v7635_v57  ;;  %v8447_v57 = vpack.c.bf16 %v7690_v34, %v7684_v45  ;;  %v5152_v45 = vpack.c.bf16 %v2974_v40, %v7799_v62 }
 0x320   : > { %4070 = vmatprep.mubr.bf16.mxu0 %v3002_v1 }
 0x321   : > { %5901 = vmatpush3.bf16.msra.mxu1 %v6161_v30 }
 0x322   : > { %5902 = vmatprep.subr.bf16.mxu1 %v6162_v7 }
 0x324   : > { %3974 = vmatmul.mubr.bf16.gmra.mrb[140].mxu1 %v8445_v2 }
 0x325   : > { %5120 = vmatprep.mubr.msk.bf16.mxu1 %vm7435_vm14, %v5119_v44  ;;  %5903 = vmatpush3.bf16.msra.mxu1 %v6162_v7 }
 0x326   : > { %5904 = vmatprep.subr.bf16.mxu1 %v6163_v25 }
 0x327   : > { %5141 = vmatmul.mubr.msk.bf16.gmra.mrb[156].mxu0 %vm6803_vm11, %v5140_v39 }
 0x328   : > { %4078 = vmatprep.mubr.bf16.mxu0 %v7705_v9 }
 0x329   : > { %5905 = vmatpush3.bf16.msra.mxu1 %v6163_v25 }
 0x32a   : > { %5954 = vmatprep.subr.bf16.mxu1 %v6164_v60 }
 0x32c   : > { %3982 = vmatmul.mubr.bf16.gmra.mrb[144].mxu1 %v8446_v32 }
 0x32d   : > { %5123 = vmatprep.mubr.msk.bf16.mxu1 %vm7504_vm1, %v5122_v15 }
 0x32f   : > { %5144 = vmatmul.mubr.msk.bf16.gmra.mrb[160].mxu0 %vm6653_vm2, %v7737_v0  ;;  %v5128_v0 = vpack.c.bf16 %v2926_v58, %v7805_v27 }
 0x330   : > { %4086 = vmatprep.mubr.bf16.mxu0 %v7745_v24 }
 0x334   : > { %3990 = vmatmul.mubr.bf16.gmra.mrb[148].mxu1 %v8447_v57 }
 0x335   : > { %5126 = vmatprep.mubr.msk.bf16.mxu1 %vm7577_vm6, %v5125_v37 }
 0x337   : > { %5147 = vmatmul.mubr.msk.bf16.gmra.mrb[164].mxu0 %vm6709_vm5, %v7771_v36 }
 0x338   : > { %4094 = vmatprep.mubr.bf16.mxu0 %v7775_v35  ;;  %v6170_v35 = vld [vmem:[%s8346_s4 + $0x30] sm:$0xff]  }
 0x33c   : > { %3998 = vmatmul.mubr.bf16.gmra.mrb[152].mxu1 %v8448_v53 }
 0x33d   : > { %5129 = vmatprep.mubr.msk.bf16.mxu1 %vm7656_vm10, %v5128_v0 }
 0x33f   : > { %5150 = vmatmul.mubr.msk.bf16.gmra.mrb[168].mxu0 %vm6764_vm8, %v7797_v16 }
 0x340   : > { %4102 = vmatprep.mubr.bf16.mxu0 %v3018_v33 }
 0x344   : > { %4006 = vmatmul.mubr.bf16.gmra.mrb[156].mxu1 %v8449_v55 }
 0x345   : > { %5906 = vmatprep.mubr.msk.bf16.mxu1 %vm7435_vm14, %v7510_v52  ;;  %v3054_v52 = vld [vmem:[#allocation3 + $0xb1] sm:$0xff] }
 0x347   : > { %5153 = vmatmul.mubr.msk.bf16.gmra.mrb[172].mxu0 %vm6803_vm11, %v5152_v45 }
 0x34c   : > { %5907 = vmatmul.mubr.msk.bf16.vlgmr.msra.gmra.mrb[160].mxu1 %vm7504_vm1, %v7583_v41  ;;  %v5176_v41 = vpack.c.bf16 %v3054_v52, %v2926_v58 }
 0x34d   : > { %5910 = vmatprep.mubr.msk.bf16.mxu1 %vm7577_vm6, %v7662_v29  ;;  %5962 = vmatpush3.bf16.msra.mxu1 %v6164_v60  ;;  %v6168_v29 = vld [vmem:[%s8346_s4 + $0x20] sm:$0xff]  }
 0x34e   : > { %5955 = vmatprep.subr.bf16.mxu1 %v6165_v46 }
 0x351   : > { %5963 = vmatpush3.bf16.msra.mxu1 %v6165_v46 }
 0x354   : > { %5911 = vmatmul.mubr.msk.bf16.gmra.mrb[164].mxu1 %vm7656_vm10, %v5164_v47 }
 0x355   : > { %5914 = vmatprep.mubr.msk.bf16.mxu1 %vm7435_vm14, %v7755_v23 }
 0x35c   : > { %5915 = vmatmul.mubr.msk.bf16.gmra.mrb[168].mxu1 %vm7504_vm1, %v7787_v17 }
 0x35d   : > { %5918 = vmatprep.mubr.msk.bf16.mxu1 %vm7577_vm6, %v7813_v12  ;;  %v6166_v12 = vld [vmem:[%s8346_s4 + $0x10] sm:$0xff]  }
 0x35e   : > { %5926 = vmatprep.subr.bf16.mxu0 %v6166_v12  ;;  %5956 = vmatprep.subr.bf16.mxu1 %v6166_v12 }
 0x35f   : > { %5927 = vmatpush3.bf16.msra.mxu0 %v6166_v12  ;;  %5964 = vmatpush3.bf16.msra.mxu1 %v6166_v12 }
 0x360   : > { %5928 = vmatprep.subr.bf16.mxu0 %v6167_v13  ;;  %5957 = vmatprep.subr.bf16.mxu1 %v6167_v13 }
 0x363   : > { %5929 = vmatpush3.bf16.msra.mxu0 %v6167_v13  ;;  %5965 = vmatpush3.bf16.msra.mxu1 %v6167_v13 }
 0x364   : > { %5919 = vmatmul.mubr.msk.bf16.gmra.mrb[172].mxu1 %vm7656_vm10, %v5176_v41  ;;  %5930 = vmatprep.subr.bf16.mxu0 %v6168_v29 }
 0x365   : > { %5958 = vmatprep.subr.bf16.mxu1 %v6168_v29 }
 0x367   : > { %5931 = vmatpush3.bf16.msra.mxu0 %v6168_v29  ;;  %5966 = vmatpush3.bf16.msra.mxu1 %v6168_v29 }
 0x368   : > { %5932 = vmatprep.subr.bf16.mxu0 %v6169_v59  ;;  %5959 = vmatprep.subr.bf16.mxu1 %v6169_v59 }
 0x36b   : > { %5933 = vmatpush3.bf16.msra.mxu0 %v6169_v59  ;;  %5967 = vmatpush3.bf16.msra.mxu1 %v6169_v59 }
 0x36c   : > { %5934 = vmatprep.subr.bf16.mxu0 %v6170_v35  ;;  %5960 = vmatprep.subr.bf16.mxu1 %v6170_v35 }
 0x36f   : > { %5935 = vmatpush3.bf16.msra.mxu0 %v6170_v35  ;;  %5968 = vmatpush3.bf16.msra.mxu1 %v6170_v35 }
 0x370   : > { %5936 = vmatprep.subr.bf16.mxu0 %v6171_v49  ;;  %5961 = vmatprep.subr.bf16.mxu1 %v6171_v49 }
 0x373   : > { %5937 = vmatpush3.bf16.msra.mxu0 %v6171_v49  ;;  %5969 = vmatpush3.bf16.msra.mxu1 %v6171_v49 }
 0x39f   : > { %v5506_v34 = vpop.f32.mrb[96].mxu1 }
 0x3a0   : > { %v5507_v9 = vpop.f32.mrb[97].mxu1 }
 0x3a1   : > { %v5508_v26 = vadd.f32 %v5507_v9, %v5506_v34  ;;  %v5509_v54 = vpop.f32.mrb[98].mxu1 }
 0x3a2   : > { %v5570_v10 = vpop.f32.mrb[112].mxu0  ;;  %v5510_v24 = vpop.f32.mrb[99].mxu1 }
 0x3a3   : > { %v3758_v23 = vadd.f32 %v5508_v26, %v7974_v11  ;;  %v5511_v42 = vadd.f32 %v5510_v24, %v5509_v54  ;;  %v5571_v22 = vpop.f32.mrb[113].mxu0 }
 0x3a4   : > { %v5572_v18 = vadd.f32 %v5571_v22, %v5570_v10  ;;  %v5573_v36 = vpop.f32.mrb[114].mxu0 }
 0x3a5   : > { %v3761_v3 = vadd.f32 %v5511_v42, %v7974_v11  ;;  %v5574_v61 = vpop.f32.mrb[115].mxu0 }
 0x3a6   : > { %v7984_v17 = vadd.f32 %v5572_v18, %v3758_v23  ;;  %v5575_v27 = vadd.f32 %v5574_v61, %v5573_v36 }
 0x3a7   : > { %v5512_v51 = vpop.f32.mrb[100].mxu1 }
 0x3a8   : > { %v7986_v16 = vadd.f32 %v5575_v27, %v3761_v3  ;;  %v5513_v62 = vpop.f32.mrb[101].mxu1 }
 0x3a9   : > { %v5514_v43 = vadd.f32 %v5513_v62, %v5512_v51  ;;  %v5515_v8 = vpop.f32.mrb[102].mxu1 }
 0x3aa   : > { %v5576_v63 = vpop.f32.mrb[116].mxu0  ;;  %v5516_v20 = vpop.f32.mrb[103].mxu1 }
 0x3ab   : > { %v3766_v19 = vadd.f32 %v5514_v43, %v7974_v11  ;;  %v5517_v14 = vadd.f32 %v5516_v20, %v5515_v8  ;;  %v5577_v56 = vpop.f32.mrb[117].mxu0 }
 0x3ac   : > { %v5578_v31 = vadd.f32 %v5577_v56, %v5576_v63  ;;  %v5579_v38 = vpop.f32.mrb[118].mxu0 }
 0x3ad   : > { %v3769_v30 = vadd.f32 %v5517_v14, %v7974_v11  ;;  %v5580_v4 = vpop.f32.mrb[119].mxu0 }
 0x3ae   : > { %v7993_v6 = vadd.f32 %v5578_v31, %v3766_v19  ;;  %v5581_v1 = vadd.f32 %v5580_v4, %v5579_v38 }
 0x3af   : > { %v5518_v7 = vpop.f32.mrb[104].mxu1 }
 0x3b0   : > { %v7995_v5 = vadd.f32 %v5581_v1, %v3769_v30  ;;  %v5519_v25 = vpop.f32.mrb[105].mxu1 }
 0x3b1   : > { %v5520_v44 = vadd.f32 %v5519_v25, %v5518_v7  ;;  %v5521_v2 = vpop.f32.mrb[106].mxu1 }
 0x3b2   : > { %v5582_v39 = vpop.f32.mrb[120].mxu0  ;;  %v5522_v15 = vpop.f32.mrb[107].mxu1 }
 0x3b3   : > { %v3774_v32 = vadd.f32 %v5520_v44, %v7974_v11  ;;  %v5523_v37 = vadd.f32 %v5522_v15, %v5521_v2  ;;  %v5583_v57 = vpop.f32.mrb[121].mxu0 }
 0x3b4   : > { %v5584_v58 = vadd.f32 %v5583_v57, %v5582_v39  ;;  %v5585_v0 = vpop.f32.mrb[122].mxu0 }
 0x3b5   : > { %v3777_v53 = vadd.f32 %v5523_v37, %v7974_v11  ;;  %v5586_v33 = vpop.f32.mrb[123].mxu0 }
 0x3b6   : > { %v7999_v40 = vadd.f32 %v5584_v58, %v3774_v32  ;;  %v5587_v55 = vadd.f32 %v5586_v33, %v5585_v0 }
 0x3b7   : > { %v5524_v45 = vpop.f32.mrb[108].mxu1 }
 0x3b8   : > { %v8001_v48 = vadd.f32 %v5587_v55, %v3777_v53  ;;  %v5525_v47 = vpop.f32.mrb[109].mxu1 }
 0x3b9   : > { %v5526_v52 = vadd.f32 %v5525_v47, %v5524_v45  ;;  %v5527_v41 = vpop.f32.mrb[110].mxu1 }
 0x3ba   : > { %v5588_v60 = vpop.f32.mrb[124].mxu0  ;;  %v5528_v46 = vpop.f32.mrb[111].mxu1 }
 0x3bb   : > { %v3782_v12 = vadd.f32 %v5526_v52, %v7974_v11  ;;  %v5529_v13 = vadd.f32 %v5528_v46, %v5527_v41  ;;  %v5589_v29 = vpop.f32.mrb[125].mxu0 }
 0x3bc   : > { %v5590_v34 = vadd.f32 %v5589_v29, %v5588_v60  ;;  %v5591_v9 = vpop.f32.mrb[126].mxu0 }
 0x3bd   : > { %v3785_v59 = vadd.f32 %v5529_v13, %v7974_v11  ;;  %v5592_v26 = vpop.f32.mrb[127].mxu0 }
 0x3be   : > { %v8005_v54 = vadd.f32 %v5590_v34, %v3782_v12  ;;  %v5593_v10 = vadd.f32 %v5592_v26, %v5591_v9 }
 0x3bf   : > { %v5530_v24 = vpop.f32.mrb[112].mxu1 }
 0x3c0   : > { %v8007_v23 = vadd.f32 %v5593_v10, %v3785_v59  ;;  %v5531_v42 = vpop.f32.mrb[113].mxu1 }
 0x3c1   : > { %v5532_v22 = vadd.f32 %v5531_v42, %v5530_v24  ;;  %v5533_v18 = vpop.f32.mrb[114].mxu1 }
 0x3c2   : > { %v5594_v36 = vpop.f32.mrb[128].mxu0  ;;  %v5534_v35 = vpop.f32.mrb[115].mxu1 }
 0x3c3   : > { %v3790_v3 = vadd.f32 %v5532_v22, %v7974_v11  ;;  %v5535_v61 = vadd.f32 %v5534_v35, %v5533_v18  ;;  %v5595_v27 = vpop.f32.mrb[129].mxu0 }
 0x3c4   : > { %v5596_v51 = vadd.f32 %v5595_v27, %v5594_v36  ;;  %v5597_v62 = vpop.f32.mrb[130].mxu0 }
 0x3c5   : > { %v3793_v49 = vadd.f32 %v5535_v61, %v7974_v11  ;;  %v5598_v43 = vpop.f32.mrb[131].mxu0 }
 0x3c6   : > { %v8011_v8 = vadd.f32 %v5596_v51, %v3790_v3  ;;  %v5599_v63 = vadd.f32 %v5598_v43, %v5597_v62 }
 0x3c7   : > { %v5536_v20 = vpop.f32.mrb[116].mxu1 }
 0x3c8   : > { %v8013_v19 = vadd.f32 %v5599_v63, %v3793_v49  ;;  %v5537_v14 = vpop.f32.mrb[117].mxu1 }
 0x3c9   : > { %v5538_v56 = vadd.f32 %v5537_v14, %v5536_v20  ;;  %v5539_v31 = vpop.f32.mrb[118].mxu1 }
 0x3ca   : > { %v5600_v38 = vpop.f32.mrb[132].mxu0  ;;  %v5540_v30 = vpop.f32.mrb[119].mxu1 }
 0x3cb   : > { %v3798_v4 = vadd.f32 %v5538_v56, %v7974_v11  ;;  %v5541_v1 = vadd.f32 %v5540_v30, %v5539_v31  ;;  %v5601_v7 = vpop.f32.mrb[133].mxu0 }
 0x3cc   : > { %v5602_v25 = vadd.f32 %v5601_v7, %v5600_v38  ;;  %v5603_v44 = vpop.f32.mrb[134].mxu0 }
 0x3cd   : > { %v3801_v2 = vadd.f32 %v5541_v1, %v7974_v11  ;;  %v5604_v39 = vpop.f32.mrb[135].mxu0 }
 0x3ce   : > { %v8017_v15 = vadd.f32 %v5602_v25, %v3798_v4  ;;  %v5605_v32 = vadd.f32 %v5604_v39, %v5603_v44 }
 0x3cf   : > { %v5542_v37 = vpop.f32.mrb[120].mxu1 }
 0x3d0   : > { %v8019_v57 = vadd.f32 %v5605_v32, %v3801_v2  ;;  %v5543_v58 = vpop.f32.mrb[121].mxu1 }
 0x3d1   : > { %v5544_v0 = vadd.f32 %v5543_v58, %v5542_v37  ;;  %v5545_v53 = vpop.f32.mrb[122].mxu1 }
 0x3d2   : > { %v5606_v33 = vpop.f32.mrb[136].mxu0  ;;  %v5546_v55 = vpop.f32.mrb[123].mxu1 }
 0x3d3   : > { %v3806_v45 = vadd.f32 %v5544_v0, %v7974_v11  ;;  %v5547_v47 = vadd.f32 %v5546_v55, %v5545_v53  ;;  %v5607_v52 = vpop.f32.mrb[137].mxu0 }
 0x3d4   : > { %v5608_v41 = vadd.f32 %v5607_v52, %v5606_v33  ;;  %v5609_v60 = vpop.f32.mrb[138].mxu0 }
 0x3d5   : > { %v3809_v46 = vadd.f32 %v5547_v47, %v7974_v11  ;;  %v5610_v12 = vpop.f32.mrb[139].mxu0 }
 0x3d6   : > { %v8023_v13 = vadd.f32 %v5608_v41, %v3806_v45  ;;  %v5611_v29 = vadd.f32 %v5610_v12, %v5609_v60 }
 0x3d7   : > { %v5548_v34 = vpop.f32.mrb[124].mxu1 }
 0x3d8   : > { %v8025_v9 = vadd.f32 %v5611_v29, %v3809_v46  ;;  %v5549_v59 = vpop.f32.mrb[125].mxu1 }
 0x3d9   : > { %v5550_v26 = vadd.f32 %v5549_v59, %v5548_v34  ;;  %v5551_v10 = vpop.f32.mrb[126].mxu1 }
 0x3da   : > { %v5612_v24 = vpop.f32.mrb[140].mxu0  ;;  %v5552_v42 = vpop.f32.mrb[127].mxu1 }
 0x3db   : > { %v3814_v22 = vadd.f32 %v5550_v26, %v7974_v11  ;;  %v5553_v18 = vadd.f32 %v5552_v42, %v5551_v10  ;;  %v5613_v36 = vpop.f32.mrb[141].mxu0 }
 0x3dc   : > { %v5614_v35 = vadd.f32 %v5613_v36, %v5612_v24  ;;  %v5615_v3 = vpop.f32.mrb[142].mxu0 }
 0x3dd   : > { %v3817_v61 = vadd.f32 %v5553_v18, %v7974_v11  ;;  %v5616_v27 = vpop.f32.mrb[143].mxu0 }
 0x3de   : > { %v8029_v51 = vadd.f32 %v5614_v35, %v3814_v22  ;;  %v5617_v62 = vadd.f32 %v5616_v27, %v5615_v3 }
 0x3df   : > { %v5634_v49 = vpop.f32.mrb[128].mxu1 }
 0x3e0   : > { %v8031_v43 = vadd.f32 %v5617_v62, %v3817_v61  ;;  %v5635_v63 = vpop.f32.mrb[129].mxu1 }
 0x3e1   : > { %v5636_v20 = vadd.f32 %v5635_v63, %v5634_v49  ;;  %v5637_v14 = vpop.f32.mrb[130].mxu1 }
 0x3e2   : > { %v5698_v56 = vpop.f32.mrb[144].mxu0  ;;  %v5638_v31 = vpop.f32.mrb[131].mxu1 }
 0x3e3   : > { %v3952_v38 = vadd.f32 %v5636_v20, %v7984_v17  ;;  %v5639_v30 = vadd.f32 %v5638_v31, %v5637_v14  ;;  %v5699_v4 = vpop.f32.mrb[145].mxu0 }
 0x3e4   : > { %v5700_v1 = vadd.f32 %v5699_v4, %v5698_v56  ;;  %v5701_v7 = vpop.f32.mrb[146].mxu0 }
 0x3e5   : > { %v3955_v11 = vadd.f32 %v5639_v30, %v7986_v16  ;;  %v5702_v25 = vpop.f32.mrb[147].mxu0 }
 0x3e6   : > { %v5703_v44 = vadd.f32 %v5702_v25, %v5701_v7  ;;  %v8035_v2 = vadd.f32 %v5700_v1, %v3952_v38 }
 0x3e7   : > { %v5640_v39 = vpop.f32.mrb[132].mxu1 }
 0x3e8   : > { %v5641_v32 = vpop.f32.mrb[133].mxu1  ;;  %v8037_v37 = vadd.f32 %v5703_v44, %v3955_v11 }
 0x3e9   : > { %v5642_v58 = vadd.f32 %v5641_v32, %v5640_v39  ;;  %v5643_v0 = vpop.f32.mrb[134].mxu1 }
 0x3ea   : > { %v5704_v53 = vpop.f32.mrb[148].mxu0  ;;  %v5644_v33 = vpop.f32.mrb[135].mxu1 }
 0x3eb   : > { %v3960_v17 = vadd.f32 %v5642_v58, %v7993_v6  ;;  %v5645_v55 = vadd.f32 %v5644_v33, %v5643_v0  ;;  %v5705_v45 = vpop.f32.mrb[149].mxu0 }
 0x3ec   : > { %v5706_v47 = vadd.f32 %v5705_v45, %v5704_v53  ;;  %v5707_v52 = vpop.f32.mrb[150].mxu0 }
 0x3ed   : > { %v3963_v16 = vadd.f32 %v5645_v55, %v7995_v5  ;;  %v5708_v41 = vpop.f32.mrb[151].mxu0 }
 0x3ee   : > { %v5709_v60 = vadd.f32 %v5708_v41, %v5707_v52  ;;  %v8041_v46 = vadd.f32 %v5706_v47, %v3960_v17 }
 0x3ef   : > { %v5646_v12 = vpop.f32.mrb[136].mxu1 }
 0x3f0   : > { %v5647_v29 = vpop.f32.mrb[137].mxu1  ;;  %v8043_v34 = vadd.f32 %v5709_v60, %v3963_v16 }
 0x3f1   : > { %v5648_v59 = vadd.f32 %v5647_v29, %v5646_v12  ;;  %v5649_v26 = vpop.f32.mrb[138].mxu1 }
 0x3f2   : > { %v5710_v10 = vpop.f32.mrb[152].mxu0  ;;  %v5650_v24 = vpop.f32.mrb[139].mxu1 }
 0x3f3   : > { %v3968_v6 = vadd.f32 %v5648_v59, %v7999_v40  ;;  %v5651_v42 = vadd.f32 %v5650_v24, %v5649_v26  ;;  %v5711_v22 = vpop.f32.mrb[153].mxu0 }
 0x3f4   : > { %v5712_v18 = vadd.f32 %v5711_v22, %v5710_v10  ;;  %v5713_v36 = vpop.f32.mrb[154].mxu0 }
 0x3f5   : > { %v3971_v5 = vadd.f32 %v5651_v42, %v8001_v48  ;;  %v5714_v35 = vpop.f32.mrb[155].mxu0 }
 0x3f6   : > { %v5715_v3 = vadd.f32 %v5714_v35, %v5713_v36  ;;  %v8047_v61 = vadd.f32 %v5712_v18, %v3968_v6 }
 0x3f7   : > { %v5652_v27 = vpop.f32.mrb[140].mxu1 }
 0x3f8   : > { %v5653_v62 = vpop.f32.mrb[141].mxu1  ;;  %v8049_v49 = vadd.f32 %v5715_v3, %v3971_v5 }
 0x3f9   : > { %v5654_v63 = vadd.f32 %v5653_v62, %v5652_v27  ;;  %v5655_v20 = vpop.f32.mrb[142].mxu1 }
 0x3fa   : > { %v5716_v14 = vpop.f32.mrb[156].mxu0  ;;  %v5656_v56 = vpop.f32.mrb[143].mxu1 }
 0x3fb   : > { %v3976_v40 = vadd.f32 %v5654_v63, %v8005_v54  ;;  %v5657_v31 = vadd.f32 %v5656_v56, %v5655_v20  ;;  %v5717_v38 = vpop.f32.mrb[157].mxu0 }
 0x3fc   : > { %v5718_v30 = vadd.f32 %v5717_v38, %v5716_v14  ;;  %v5719_v4 = vpop.f32.mrb[158].mxu0 }
 0x3fd   : > { %v3979_v48 = vadd.f32 %v5657_v31, %v8007_v23  ;;  %v5720_v1 = vpop.f32.mrb[159].mxu0 }
 0x3fe   : > { %v5721_v7 = vadd.f32 %v5720_v1, %v5719_v4  ;;  %v8053_v11 = vadd.f32 %v5718_v30, %v3976_v40 }
 0x3ff   : > { %v5658_v25 = vpop.f32.mrb[144].mxu1 }
 0x400   : > { %v5659_v44 = vpop.f32.mrb[145].mxu1  ;;  %v8055_v39 = vadd.f32 %v5721_v7, %v3979_v48 }
 0x401   : > { %v5660_v32 = vadd.f32 %v5659_v44, %v5658_v25  ;;  %v5661_v58 = vpop.f32.mrb[146].mxu1 }
 0x402   : > { %v5722_v0 = vpop.f32.mrb[160].mxu0  ;;  %v5662_v53 = vpop.f32.mrb[147].mxu1 }
 0x403   : > { %v3984_v54 = vadd.f32 %v5660_v32, %v8011_v8  ;;  %v5663_v33 = vadd.f32 %v5662_v53, %v5661_v58  ;;  %v5723_v17 = vpop.f32.mrb[161].mxu0 }
 0x404   : > { %v5724_v55 = vadd.f32 %v5723_v17, %v5722_v0  ;;  %v5725_v45 = vpop.f32.mrb[162].mxu0 }
 0x405   : > { %v3987_v23 = vadd.f32 %v5663_v33, %v8013_v19  ;;  %v5726_v47 = vpop.f32.mrb[163].mxu0 }
 0x406   : > { %v5727_v52 = vadd.f32 %v5726_v47, %v5725_v45  ;;  %v8059_v16 = vadd.f32 %v5724_v55, %v3984_v54 }
 0x407   : > { %v5664_v41 = vpop.f32.mrb[148].mxu1 }
 0x408   : > { %v5665_v60 = vpop.f32.mrb[149].mxu1  ;;  %v8061_v12 = vadd.f32 %v5727_v52, %v3987_v23 }
 0x409   : > { %v5666_v29 = vadd.f32 %v5665_v60, %v5664_v41  ;;  %v5667_v59 = vpop.f32.mrb[150].mxu1 }
 0x40a   : > { %v5728_v26 = vpop.f32.mrb[164].mxu0  ;;  %v5668_v10 = vpop.f32.mrb[151].mxu1 }
 0x40b   : > { %v3992_v8 = vadd.f32 %v5666_v29, %v8017_v15  ;;  %v5669_v24 = vadd.f32 %v5668_v10, %v5667_v59  ;;  %v5729_v6 = vpop.f32.mrb[165].mxu0 }
 0x40c   : > { %v5730_v42 = vadd.f32 %v5729_v6, %v5728_v26  ;;  %v5731_v22 = vpop.f32.mrb[166].mxu0 }
 0x40d   : > { %v3995_v19 = vadd.f32 %v5669_v24, %v8019_v57  ;;  %v5732_v18 = vpop.f32.mrb[167].mxu0 }
 0x40e   : > { %v5733_v36 = vadd.f32 %v5732_v18, %v5731_v22  ;;  %v8065_v5 = vadd.f32 %v5730_v42, %v3992_v8 }
 0x40f   : > { %v5670_v35 = vpop.f32.mrb[152].mxu1 }
 0x410   : > { %v5671_v3 = vpop.f32.mrb[153].mxu1  ;;  %v8067_v27 = vadd.f32 %v5733_v36, %v3995_v19 }
 0x411   : > { %v5672_v62 = vadd.f32 %v5671_v3, %v5670_v35  ;;  %v5673_v63 = vpop.f32.mrb[154].mxu1 }
 0x412   : > { %v5734_v20 = vpop.f32.mrb[168].mxu0  ;;  %v5674_v14 = vpop.f32.mrb[155].mxu1 }
 0x413   : > { %v4000_v15 = vadd.f32 %v5672_v62, %v8023_v13  ;;  %v5675_v56 = vadd.f32 %v5674_v14, %v5673_v63  ;;  %v5735_v40 = vpop.f32.mrb[169].mxu0 }
 0x414   : > { %v5736_v31 = vadd.f32 %v5735_v40, %v5734_v20  ;;  %v5737_v38 = vpop.f32.mrb[170].mxu0 }
 0x415   : > { %v4003_v57 = vadd.f32 %v5675_v56, %v8025_v9  ;;  %v5738_v30 = vpop.f32.mrb[171].mxu0 }
 0x416   : > { %v5739_v4 = vadd.f32 %v5738_v30, %v5737_v38  ;;  %v8071_v48 = vadd.f32 %v5736_v31, %v4000_v15 }
 0x417   : > { %v5676_v1 = vpop.f32.mrb[156].mxu1 }
 0x418   : > { %v5677_v7 = vpop.f32.mrb[157].mxu1  ;;  %v8073_v25 = vadd.f32 %v5739_v4, %v4003_v57 }
 0x419   : > { %v5678_v44 = vadd.f32 %v5677_v7, %v5676_v1  ;;  %v5679_v32 = vpop.f32.mrb[158].mxu1 }
 0x41a   : > { %v5740_v58 = vpop.f32.mrb[172].mxu0  ;;  %v5680_v0 = vpop.f32.mrb[159].mxu1 }
 0x41b   : > { %v4008_v13 = vadd.f32 %v5678_v44, %v8029_v51  ;;  %v5681_v53 = vadd.f32 %v5680_v0, %v5679_v32  ;;  %v5741_v54 = vpop.f32.mrb[173].mxu0 }
 0x41c   : > { %v5742_v33 = vadd.f32 %v5741_v54, %v5740_v58  ;;  %v5743_v17 = vpop.f32.mrb[174].mxu0 }
 0x41d   : > { %v4011_v9 = vadd.f32 %v5681_v53, %v8031_v43  ;;  %v5744_v55 = vpop.f32.mrb[175].mxu0 }
 0x41e   : > { %v5745_v45 = vadd.f32 %v5744_v55, %v5743_v17  ;;  %v4105_v23 = vadd.f32 %v5742_v33, %v4008_v13 }
 0x41f   : > { %v5908_v47 = vpop.f32.mrb[160].mxu1 }
 0x420   : > { %v4154_v52 = vadd.f32 %v5908_v47, %v8041_v46  ;;  %v4145_v41 = vpop.f32.mrb[161].mxu1  ;;  %v4108_v60 = vadd.f32 %v5745_v45, %v4011_v9 }
 0x421   : > { %v4146_v29 = vadd.f32 %v4145_v41, %v8035_v2  ;;  %v5909_v59 = vpop.f32.mrb[162].mxu1 }
 0x422   : > { %v4210_v26 = vmul.f32 0.1, %v4154_v52  ;;  %v4157_v51 = vadd.f32 %v5909_v59, %v8043_v34  ;;  %v4148_v10 = vpop.f32.mrb[163].mxu1 }
 0x423   : > { %v4208_v8 = vmul.f32 0.1, %v4146_v29  ;;  %v4149_v24 = vadd.f32 %v4148_v10, %v8037_v37 }
 0x424   : > { %v4211_v6 = vmul.f32 0.1, %v4157_v51  ;;  %v4226_v42 = vmax.f32 %v4154_v52, %v4210_v26 }
 0x425   : > { %v4209_v43 = vmul.f32 0.1, %v4149_v24  ;;  %v4224_v19 = vmax.f32 %v4146_v29, %v4208_v8 }
 0x426   : > { %v4227_v22 = vmax.f32 %v4157_v51, %v4211_v6 }
 0x427   : > { %v4225_v18 = vmax.f32 %v4149_v24, %v4209_v43  ;;  %v5912_v36 = vpop.f32.mrb[164].mxu1 }
 0x428   : > { %v4241_v46 = vpack.c.bf16 %v4227_v22, %v4226_v42  ;;  %v4170_v35 = vadd.f32 %v5912_v36, %v8053_v11  ;;  %v4161_v3 = vpop.f32.mrb[165].mxu1 }
 0x429   : > { %v4162_v2 = vadd.f32 %v4161_v3, %v8047_v61  ;;  %v5913_v62 = vpop.f32.mrb[166].mxu1  ;;  %v4240_v63 = vpack.c.bf16 %v4225_v18, %v4224_v19  ;;  %v8451_v18 = vsub.s32 1, %v8450_v28 }
 0x42a   : > { %v4214_v34 = vmul.f32 0.1, %v4170_v35  ;;  %v4173_v20 = vadd.f32 %v5913_v62, %v8055_v39  ;;  %v4164_v14 = vpop.f32.mrb[167].mxu1 }
 0x42b   : > { %v4212_v37 = vmul.f32 0.1, %v4162_v2  ;;  %v4165_v15 = vadd.f32 %v4164_v14, %v8049_v49  ;;  %5938 = vmatprep.mubr.bf16.mxu0 %v4240_v63 }
 0x42c   : > { %v4215_v56 = vmul.f32 0.1, %v4173_v20  ;;  %5939 = vmatmul.mubr.bf16.vlgmr.msra.gmra.mrb[176].mxu0 %v4241_v46  ;;  %v4230_v31 = vmax.f32 %v4170_v35, %v4214_v34 }
 0x42d   : > { %v4213_v40 = vmul.f32 0.1, %v4165_v15  ;;  %v4228_v57 = vmax.f32 %v4162_v2, %v4212_v37 }
 0x42e   : > { %v4231_v38 = vmax.f32 %v4173_v20, %v4215_v56 }
 0x42f   : > { %v4229_v11 = vmax.f32 %v4165_v15, %v4213_v40  ;;  %v5916_v30 = vpop.f32.mrb[168].mxu1 }
 0x430   : > { %v4186_v61 = vadd.f32 %v5916_v30, %v8065_v5  ;;  %v4177_v4 = vpop.f32.mrb[169].mxu1  ;;  %v4243_v1 = vpack.c.bf16 %v4231_v38, %v4230_v31 }
 0x431   : > { %v4178_v7 = vadd.f32 %v4177_v4, %v8059_v16  ;;  %v5917_v39 = vpop.f32.mrb[170].mxu1  ;;  %v4242_v44 = vpack.c.bf16 %v4229_v11, %v4228_v57 }
 0x432   : > { %v4218_v32 = vmul.f32 0.1, %v4186_v61  ;;  %v4189_v49 = vadd.f32 %v5917_v39, %v8067_v27  ;;  %v4180_v58 = vpop.f32.mrb[171].mxu1 }
 0x433   : > { %v4216_v0 = vmul.f32 0.1, %v4178_v7  ;;  %v4181_v13 = vadd.f32 %v4180_v58, %v8061_v12  ;;  %5942 = vmatprep.mubr.bf16.mxu0 %v4242_v44 }
 0x434   : > { %v4219_v53 = vmul.f32 0.1, %v4189_v49  ;;  %5943 = vmatmul.mubr.bf16.gmra.mrb[180].mxu0 %v4243_v1  ;;  %v4234_v33 = vmax.f32 %v4186_v61, %v4218_v32 }
 0x435   : > { %v4217_v54 = vmul.f32 0.1, %v4181_v13  ;;  %v4232_v5 = vmax.f32 %v4178_v7, %v4216_v0 }
 0x436   : > { %v4235_v17 = vmax.f32 %v4189_v49, %v4219_v53 }
 0x437   : > { %v4233_v9 = vmax.f32 %v4181_v13, %v4217_v54  ;;  %v5920_v55 = vpop.f32.mrb[172].mxu1 }
 0x438   : > { %v4245_v45 = vpack.c.bf16 %v4235_v17, %v4234_v33  ;;  %v4202_v16 = vadd.f32 %v5920_v55, %v4105_v23  ;;  %v4193_v47 = vpop.f32.mrb[173].mxu1 }
 0x439   : > { %v4194_v52 = vadd.f32 %v4193_v47, %v8071_v48  ;;  %v5921_v41 = vpop.f32.mrb[174].mxu1  ;;  %v4244_v27 = vpack.c.bf16 %v4233_v9, %v4232_v5  ;;  %v8094_v48 = vld [vmem:[%s8348_s6] sm:$0xff] }
 0x43a   : > { %v4222_v29 = vmul.f32 0.1, %v4202_v16  ;;  %v4205_v59 = vadd.f32 %v5921_v41, %v4108_v60  ;;  %v4196_v26 = vpop.f32.mrb[175].mxu1  ;;  %vm4414_vm2 = vcmp.gt.f32.partialorder %v8094_v48, 0.5  ;;  %v6281_v60 = vmov 0  }
 0x43b   : > { %v4220_v12 = vmul.f32 0.1, %v4194_v52  ;;  %v4197_v51 = vadd.f32 %v4196_v26, %v8073_v25  ;;  %5946 = vmatprep.mubr.bf16.mxu1 %v4244_v27  ;;  %v4266_v25 = vsub.s32 3, %v8450_v28  ;;  %v8098_v19 = vsel %vm4414_vm2, 1, %v6281_v60 }
 0x43c   : > { %v4223_v10 = vmul.f32 0.1, %v4205_v59  ;;  %5947 = vmatmul.mubr.bf16.vlgmr.msra.gmra.mrb[176].mxu1 %v4245_v45  ;;  %v4238_v24 = vmax.f32 %v4202_v16, %v4222_v29  ;;  %v8103_v36 = vrot.slane %v8098_v19, %v8451_v18 }
 0x43d   : > { %v4221_v8 = vmul.f32 0.1, %v4197_v51  ;;  %v4236_v43 = vmax.f32 %v4194_v52, %v4220_v12  ;;  %v8106_v46 = vrot.slane %v7969_v21, %v4266_v25  ;;  %v8452_v25 = vsub.s32 0, %v8450_v28 }
 0x43e   : > { %v4239_v6 = vmax.f32 %v4205_v59, %v4223_v10  ;;  %vm4564_vm5 = vcmp.eq.s32.totalorder %v8103_v36, 1 }
 0x43f   : > { %v4237_v42 = vmax.f32 %v4197_v51, %v4221_v8  ;;  %v8136_v60 = vrot.slane %v8098_v19, %v8452_v25 }
 0x440   : > { %v4247_v23 = vpack.c.bf16 %v4239_v6, %v4238_v24 }
 0x441   : > { %v4246_v22 = vpack.c.bf16 %v4237_v42, %v4236_v43  ;;  %vm4653_vm8 = vcmp.eq.s32.totalorder %v8136_v60, 1 }
 0x443   : > { %5950 = vmatprep.mubr.bf16.mxu1 %v4246_v22 }
 0x444   : > { %5951 = vmatmul.mubr.bf16.gmra.mrb[180].mxu1 %v4247_v23 }
 0x4ff   : > { %v5940_v35 = vpop.f32.mrb[176].mxu0 }
 0x500   : > { %v4359_v3 = vadd.f32 %v5940_v35, %v8106_v46  ;;  %v4350_v2 = vpop.f32.mrb[177].mxu0 }
 0x501   : > { %v4351_v62 = vadd.f32 %v4350_v2, %v8106_v46  ;;  %v5941_v63 = vpop.f32.mrb[178].mxu0 }
 0x502   : > { %v4944_v34 = vmul.f32 -1.442695, %v4359_v3  ;;  %v4567_v20 = vsel %vm4564_vm5, %v4359_v3, 0.0  ;;  %v4362_v14 = vadd.f32 %v5941_v63, %v8106_v46  ;;  %v4353_v37 = vpop.f32.mrb[179].mxu0  ;;  %v8141_v3 = vrot.slane %v8094_v48, %v3289_v50 }
 0x503   : > { %v4942_v15 = vmul.f32 -1.442695, %v4351_v62  ;;  %v4354_v21 = vadd.f32 %v4353_v37, %v8106_v46  ;;  %v4565_v56 = vsel %vm4564_vm5, %v4351_v62, 0.0  ;;  %v4585_v31 = vmul.f32 1.442695, %v4567_v20 }
 0x504   : > { %6172 = vpow2.f32 %v4944_v34  ;;  %v4945_v40 = vmul.f32 -1.442695, %v4362_v14  ;;  %v4568_v38 = vsel %vm4564_vm5, %v4362_v14, 0.0  ;;  %v4581_v11 = vmul.f32 1.442695, %v4565_v56 }
 0x505   : > { %6174 = vpow2.f32 %v4942_v15  ;;  %v4943_v57 = vmul.f32 -1.442695, %v4354_v21  ;;  %v4566_v61 = vsel %vm4564_vm5, %v4354_v21, 0.0  ;;  %v4587_v7 = vmul.f32 1.442695, %v4568_v38 }
 0x506   : > { %6176 = vpow2.f32 %v4945_v40  ;;  %v4583_v0 = vmul.f32 1.442695, %v4566_v61 }
 0x507   : > { %v5944_v30 = vpop.f32.mrb[180].mxu0  ;;  %6178 = vpow2.f32 %v4585_v31  ;;  %v4529_v31 = vld [vmem:[%s8349_s7 + $0x10] sm:$0xff] }
 0x508   : > { %v4375_v4 = vadd.f32 %v5944_v30, %v8106_v46  ;;  %v4366_v1 = vpop.f32.mrb[181].mxu0  ;;  %6180 = vpow2.f32 %v4943_v57 }
 0x509   : > { %v4367_v39 = vadd.f32 %v4366_v1, %v8106_v46  ;;  %v5945_v44 = vpop.f32.mrb[182].mxu0  ;;  %6182 = vpow2.f32 %v4581_v11 }
 0x50a   : > { %v4948_v32 = vmul.f32 -1.442695, %v4375_v4  ;;  %v4378_v49 = vadd.f32 %v5945_v44, %v8106_v46  ;;  %v4369_v58 = vpop.f32.mrb[183].mxu0  ;;  %v4571_v13 = vsel %vm4564_vm5, %v4375_v4, 0.0 }
 0x50b   : > { %v4946_v53 = vmul.f32 -1.442695, %v4367_v39  ;;  %v4370_v33 = vadd.f32 %v4369_v58, %v8106_v46  ;;  %v4593_v5 = vmul.f32 1.442695, %v4571_v13  ;;  %v4569_v55 = vsel %vm4564_vm5, %v4367_v39, 0.0  ;;  %v4527_v39 = vld [vmem:[%s8349_s7] sm:$0xff] }
 0x50c   : > { %6184 = vpow2.f32 %v4948_v32  ;;  %v4949_v54 = vmul.f32 -1.442695, %v4378_v49  ;;  %v4589_v26 = vmul.f32 1.442695, %v4569_v55  ;;  %v4572_v8 = vsel %vm4564_vm5, %v4378_v49, 0.0 }
 0x50d   : > { %6186 = vpow2.f32 %v4587_v7  ;;  %v4947_v47 = vmul.f32 -1.442695, %v4370_v33  ;;  %v4595_v18 = vmul.f32 1.442695, %v4572_v8  ;;  %v4570_v15 = vsel %vm4564_vm5, %v4370_v33, 0.0 }
 0x50e   : > { %v6173_v17 = vpop.eup %6172  ;;  %6188 = vpow2.f32 %v4946_v53  ;;  %v4591_v1 = vmul.f32 1.442695, %v4570_v15 }
 0x50f   : > { %v4465_v9 = vadd.f32 1.0, %v6173_v17  ;;  %6190 = vpow2.f32 %v4583_v0  ;;  %v5948_v45 = vpop.f32.mrb[176].mxu1  ;;  %v6175_v16 = vpop.eup %6174 }
 0x510   : > { %6192 = vpow2.f32 %v4949_v54  ;;  %v4391_v52 = vadd.f32 %v5948_v45, %v8106_v46  ;;  %v4382_v41 = vpop.f32.mrb[177].mxu1  ;;  %v4463_v27 = vadd.f32 1.0, %v6175_v16  ;;  %v6177_v59 = vpop.eup %6176 }
 0x511   : > { %6194 = vrcp.f32 %v4465_v9  ;;  %v5949_v29 = vpop.f32.mrb[178].mxu1  ;;  %v6179_v51 = vpop.eup %6178  ;;  %v4466_v10 = vadd.f32 1.0, %v6177_v59  ;;  %v4383_v43 = vadd.f32 %v4382_v41, %v8106_v46 }
 0x512   : > { %6196 = vpow2.f32 %v4593_v5  ;;  %v4385_v12 = vpop.f32.mrb[179].mxu1  ;;  %v6181_v24 = vpop.eup %6180  ;;  %v4952_v6 = vmul.f32 -1.442695, %v4391_v52  ;;  %v4394_v62 = vadd.f32 %v5949_v29, %v8106_v46  ;;  %v4575_v48 = vsel %vm4564_vm5, %v4391_v52, 0.0  ;;  %v4530_v5 = vld [vmem:[%s8349_s7 + $0x18] sm:$0xff]  ;;  %v4528_v29 = vld [vmem:[%s8349_s7 + $0x8] sm:$0xff] }
 0x513   : > { %6198 = vrcp.f32 %v4463_v27  ;;  %v6183_v42 = vpop.eup %6182  ;;  %v4464_v23 = vadd.f32 1.0, %v6181_v24  ;;  %v4950_v20 = vmul.f32 -1.442695, %v4383_v43  ;;  %v4573_v21 = vsel %vm4564_vm5, %v4383_v43, 0.0 }
 0x514   : > { %6200 = vpow2.f32 %v4947_v47  ;;  %v4619_v38 = vmul.f32 %v6179_v51, %v8141_v3  ;;  %v4953_v11 = vmul.f32 -1.442695, %v4394_v62  ;;  %v4617_v4 = vmul.f32 %v6183_v42, %v8141_v3  ;;  %v4533_v42 = vld [vmem:[%s8349_s7 + $0x30] sm:$0xff] }
 0x515   : > { %6202 = vrcp.f32 %v4466_v10  ;;  %v4601_v32 = vmul.f32 1.442695, %v4575_v48  ;;  %v8165_v49 = vmul.f32 1.442695, %v4573_v21  ;;  %v4576_v53 = vsel %vm4564_vm5, %v4394_v62, 0.0 }
 0x516   : > { %v6185_v22 = vpop.eup %6184  ;;  %6204 = vpow2.f32 %v4589_v26  ;;  %v8175_v54 = vadd.f32 %v4385_v12, %v8106_v46  ;;  %v4603_v59 = vmul.f32 1.442695, %v4576_v53  ;;  %v4532_v53 = vld [vmem:[%s8349_s7 + $0x28] sm:$0xff] }
 0x517   : > { %v6187_v35 = vpop.eup %6186  ;;  %6206 = vrcp.f32 %v4464_v23  ;;  %v4469_v2 = vadd.f32 1.0, %v6185_v22  ;;  %v5952_v63 = vpop.f32.mrb[180].mxu1 }
 0x518   : > { %v6189_v34 = vpop.eup %6188  ;;  %6208 = vpow2.f32 %v4952_v6  ;;  %v4398_v14 = vpop.f32.mrb[181].mxu1  ;;  %v4620_v44 = vmul.f32 %v6187_v35, %v8141_v3  ;;  %v8192_v26 = vadd.f32 %v5952_v63, %v8106_v46  ;;  %v4951_v25 = vmul.f32 -1.442695, %v8175_v54 }
 0x519   : > { %v6191_v19 = vpop.eup %6190  ;;  %6210 = vrcp.f32 %v4469_v2  ;;  %v4467_v37 = vadd.f32 1.0, %v6189_v34  ;;  %v8146_v28 = vpop.f32.mrb[182].mxu1  ;;  %v8197_v24 = vadd.f32 %v4398_v14, %v8106_v46 }
 0x51a   : > { %v6193_v50 = vpop.eup %6192  ;;  %6212 = vpow2.f32 %v4595_v18  ;;  %v8153_v56 = vpop.f32.mrb[183].mxu1  ;;  %v4618_v9 = vmul.f32 %v6191_v19, %v8141_v3  ;;  %v4956_v19 = vmul.f32 -1.442695, %v8192_v26 }
 0x51b   : > { %v6195_v40 = vpop.eup %6194  ;;  %6214 = vrcp.f32 %v4467_v37  ;;  %v4470_v57 = vadd.f32 1.0, %v6193_v50  ;;  %v4954_v21 = vmul.f32 -1.442695, %v8197_v24 }
 0x51c   : > { %v6197_v30 = vpop.eup %6196  ;;  %v4513_v61 = vmul.f32 2.0, %v6195_v40  ;;  %6216 = vpow2.f32 %v4950_v20  ;;  %v4635_v17 = vsel %vm4564_vm5, %v4619_v38, %v6195_v40  ;;  %v4531_v20 = vld [vmem:[%s8349_s7 + $0x20] sm:$0xff]  ;;  %v4534_v38 = vld [vmem:[%s8349_s7 + $0x38] sm:$0xff] }
 0x51d   : > { %v6199_v7 = vpop.eup %6198  ;;  %6218 = vrcp.f32 %v4470_v57  ;;  %v4623_v23 = vmul.f32 %v6197_v30, %v8141_v3 }
 0x51e   : > { %v6201_v58 = vpop.eup %6200  ;;  %v4545_v0 = vadd.f32 %v4529_v31, %v4513_v61  ;;  %v4511_v13 = vmul.f32 2.0, %v6199_v7  ;;  %6220 = vpow2.f32 %v4953_v11  ;;  %v4633_v27 = vsel %vm4564_vm5, %v4617_v4, %v6199_v7 }
 0x51f   : > { %v6203_v33 = vpop.eup %6202  ;;  %v4468_v55 = vadd.f32 1.0, %v6201_v58  ;;  %6222 = vpow2.f32 %v4591_v1  ;;  %v4410_v11 = vadd.f32 %v8146_v28, %v8106_v46 }
 0x520   : > { %v6205_v45 = vpop.eup %6204  ;;  %v4656_v16 = vsel %vm4653_vm8, %v4545_v0, %v4635_v17  ;;  %v4543_v47 = vadd.f32 %v4527_v39, %v4511_v13  ;;  %v4514_v52 = vmul.f32 2.0, %v6203_v33  ;;  %v4636_v43 = vsel %vm4564_vm5, %v4620_v44, %v6203_v33 }
 0x521   : > { %v6207_v41 = vpop.eup %6206  ;;  %4672 = vst [vmem:[%s8170_s29 + $0x10] sm:$0xff] %v4656_v16  ;;  %6224 = vrcp.f32 %v4468_v55  ;;  %v4621_v14 = vmul.f32 %v6205_v45, %v8141_v3  ;;  %v4402_v44 = vadd.f32 %v8153_v56, %v8106_v46  ;;  %v4574_v46 = vsel %vm4564_vm5, %v8175_v54, 0.0  ;;  %v4537_v54 = vld [vmem:[%s8349_s7 + $0x50] sm:$0xff] }
 0x522   : > { %v6209_v12 = vpop.eup %6208  ;;  %v4654_v51 = vsel %vm4653_vm8, %v4543_v47, %v4633_v27  ;;  %v4546_v10 = vadd.f32 %v4530_v5, %v4514_v52  ;;  %v4512_v8 = vmul.f32 2.0, %v6207_v41  ;;  %6226 = vpow2.f32 %v4601_v32 }
 0x523   : > { %v6211_v6 = vpop.eup %6210  ;;  %4670 = vst [vmem:[%s8170_s29] sm:$0xff] %v4654_v51  ;;  %v4473_v22 = vadd.f32 1.0, %v6209_v12  ;;  %v4634_v34 = vsel %vm4564_vm5, %v4618_v9, %v6207_v41  ;;  %v4957_v17 = vmul.f32 -1.442695, %v4410_v11  ;;  %v4955_v45 = vmul.f32 -1.442695, %v4402_v44 }
 0x524   : > { %v6213_v18 = vpop.eup %6212  ;;  %v4657_v35 = vsel %vm4653_vm8, %v4546_v10, %v4636_v43  ;;  %v4544_v2 = vadd.f32 %v4528_v29, %v4512_v8  ;;  %v4517_v62 = vmul.f32 2.0, %v6211_v6  ;;  %v4639_v31 = vsel %vm4564_vm5, %v4623_v23, %v6211_v6 }
 0x525   : > { %v6215_v63 = vpop.eup %6214  ;;  %4673 = vst [vmem:[%s8170_s29 + $0x18] sm:$0xff] %v4657_v35  ;;  %6228 = vrcp.f32 %v4473_v22  ;;  %v4624_v39 = vmul.f32 %v6213_v18, %v8141_v3  ;;  %v4599_v52 = vmul.f32 1.442695, %v4574_v46  ;;  %v4579_v29 = vsel %vm4564_vm5, %v8192_v26, 0.0  ;;  %v4541_v46 = vld [vmem:[%s8349_s7 + $0x70] sm:$0xff] }
 0x526   : > { %v6217_v37 = vpop.eup %6216  ;;  %v4655_v15 = vsel %vm4653_vm8, %v4544_v2, %v4634_v34  ;;  %v4549_v50 = vadd.f32 %v4533_v42, %v4517_v62  ;;  %v4515_v48 = vmul.f32 2.0, %v6215_v63  ;;  %6230 = vpow2.f32 %v4951_v25  ;;  %v4535_v42 = vld [vmem:[%s8349_s7 + $0x40] sm:$0xff] }
 0x527   : > { %v6219_v40 = vpop.eup %6218  ;;  %4671 = vst [vmem:[%s8170_s29 + $0x8] sm:$0xff] %v4655_v15  ;;  %v4471_v57 = vadd.f32 1.0, %v6217_v37  ;;  %6232 = vpow2.f32 %v8165_v49  ;;  %v4637_v7 = vsel %vm4564_vm5, %v4621_v14, %v6215_v63  ;;  %v4609_v26 = vmul.f32 1.442695, %v4579_v29  ;;  %v4542_v29 = vld [vmem:[%s8349_s7 + $0x78] sm:$0xff] }
 0x528   : > { %v4660_v30 = vsel %vm4653_vm8, %v4549_v50, %v4639_v31  ;;  %v4547_v61 = vadd.f32 %v4531_v20, %v4515_v48  ;;  %v4518_v4 = vmul.f32 2.0, %v6219_v40  ;;  %v6221_v1 = vpop.eup %6220  ;;  %v4640_v13 = vsel %vm4564_vm5, %v4624_v39, %v6219_v40 }
 0x529   : > { %4676 = vst [vmem:[%s8170_s29 + $0x30] sm:$0xff] %v4660_v30  ;;  %6234 = vrcp.f32 %v4471_v57  ;;  %v6223_v28 = vpop.eup %6222  ;;  %v4474_v0 = vadd.f32 1.0, %v6221_v1  ;;  %v4577_v23 = vsel %vm4564_vm5, %v8197_v24, 0.0  ;;  %v4580_v62 = vsel %vm4564_vm5, %v4410_v11, 0.0  ;;  %v4538_v24 = vld [vmem:[%s8349_s7 + $0x58] sm:$0xff] }
 0x52a   : > { %v4658_v32 = vsel %vm4653_vm8, %v4547_v61, %v4637_v7  ;;  %v4550_v58 = vadd.f32 %v4534_v38, %v4518_v4  ;;  %6236 = vpow2.f32 %v4603_v59  ;;  %v4622_v5 = vmul.f32 %v6223_v28, %v8141_v3  ;;  %v4536_v28 = vld [vmem:[%s8349_s7 + $0x48] sm:$0xff] }
 0x52b   : > { %v6225_v49 = vpop.eup %6224  ;;  %4674 = vst [vmem:[%s8170_s29 + $0x20] sm:$0xff] %v4658_v32  ;;  %6238 = vpow2.f32 %v4956_v19  ;;  %v4605_v14 = vmul.f32 1.442695, %v4577_v23  ;;  %v4578_v15 = vsel %vm4564_vm5, %v4402_v44, 0.0  ;;  %v4611_v40 = vmul.f32 1.442695, %v4580_v62 }
 0x52c   : > { %v4661_v56 = vsel %vm4653_vm8, %v4550_v58, %v4640_v13  ;;  %v4516_v33 = vmul.f32 2.0, %v6225_v49  ;;  %6240 = vrcp.f32 %v4474_v0  ;;  %v6227_v9 = vpop.eup %6226  ;;  %v4638_v47 = vsel %vm4564_vm5, %v4622_v5, %v6225_v49 }
 0x52d   : > { %4677 = vst [vmem:[%s8170_s29 + $0x38] sm:$0xff] %v4661_v56  ;;  %6242 = vpow2.f32 %v4954_v21  ;;  %v4627_v12 = vmul.f32 %v6227_v9, %v8141_v3  ;;  %v4607_v30 = vmul.f32 1.442695, %v4578_v15 }
 0x52e   : > { %v4548_v55 = vadd.f32 %v4532_v53, %v4516_v33  ;;  %6244 = vpow2.f32 %v4957_v17 }
 0x52f   : > { %v6229_v16 = vpop.eup %6228  ;;  %6246 = vpow2.f32 %v4955_v45  ;;  %v4539_v45 = vld [vmem:[%s8349_s7 + $0x60] sm:$0xff] }
 0x530   : > { %v4659_v41 = vsel %vm4653_vm8, %v4548_v55, %v4638_v47  ;;  %v4521_v27 = vmul.f32 2.0, %v6229_v16  ;;  %v6231_v59 = vpop.eup %6230  ;;  %v4643_v43 = vsel %vm4564_vm5, %v4627_v12, %v6229_v16  ;;  %6248 = vpow2.f32 %v4599_v52 }
 0x531   : > { %4675 = vst [vmem:[%s8170_s29 + $0x28] sm:$0xff] %v4659_v41  ;;  %v6233_v51 = vpop.eup %6232  ;;  %v4472_v8 = vadd.f32 1.0, %v6231_v59 }
 0x532   : > { %v4553_v10 = vadd.f32 %v4537_v54, %v4521_v27  ;;  %v4625_v2 = vmul.f32 %v6233_v51, %v8141_v3 }
 0x533   : > { %v6235_v6 = vpop.eup %6234  ;;  %6250 = vrcp.f32 %v4472_v8 }
 0x534   : > { %v6237_v22 = vpop.eup %6236  ;;  %v4664_v25 = vsel %vm4653_vm8, %v4553_v10, %v4643_v43  ;;  %v4519_v18 = vmul.f32 2.0, %v6235_v6  ;;  %v4641_v19 = vsel %vm4564_vm5, %v4625_v2, %v6235_v6  ;;  %6252 = vpow2.f32 %v4609_v26  ;;  %v4540_v43 = vld [vmem:[%s8349_s7 + $0x68] sm:$0xff] }
 0x535   : > { %v6239_v35 = vpop.eup %6238  ;;  %4680 = vst [vmem:[%s8170_s29 + $0x50] sm:$0xff] %v4664_v25  ;;  %v4628_v21 = vmul.f32 %v6237_v22, %v8141_v3 }
 0x536   : > { %v6241_v63 = vpop.eup %6240  ;;  %v4551_v34 = vadd.f32 %v4535_v42, %v4519_v18  ;;  %v4477_v20 = vadd.f32 1.0, %v6239_v35 }
 0x537   : > { %v4522_v37 = vmul.f32 2.0, %v6241_v63  ;;  %v6243_v50 = vpop.eup %6242  ;;  %v4644_v11 = vsel %vm4564_vm5, %v4628_v21, %v6241_v63 }
 0x538   : > { %v4662_v48 = vsel %vm4653_vm8, %v4551_v34, %v4641_v19  ;;  %6254 = vrcp.f32 %v4477_v20  ;;  %v4475_v38 = vadd.f32 1.0, %v6243_v50  ;;  %v6245_v57 = vpop.eup %6244 }
 0x539   : > { %4678 = vst [vmem:[%s8170_s29 + $0x40] sm:$0xff] %v4662_v48  ;;  %v4554_v31 = vadd.f32 %v4538_v24, %v4522_v37  ;;  %6256 = vpow2.f32 %v4605_v14  ;;  %v4478_v4 = vadd.f32 1.0, %v6245_v57  ;;  %v6247_v1 = vpop.eup %6246 }
 0x53a   : > { %6258 = vrcp.f32 %v4475_v38  ;;  %v6249_v7 = vpop.eup %6248  ;;  %v4476_v39 = vadd.f32 1.0, %v6247_v1 }
 0x53b   : > { %v4665_v61 = vsel %vm4653_vm8, %v4554_v31, %v4644_v11  ;;  %6260 = vpow2.f32 %v4611_v40  ;;  %v4626_v58 = vmul.f32 %v6249_v7, %v8141_v3 }
 0x53c   : > { %4681 = vst [vmem:[%s8170_s29 + $0x58] sm:$0xff] %v4665_v61  ;;  %6262 = vrcp.f32 %v4478_v4 }
 0x53d   : > { %v6251_v44 = vpop.eup %6250  ;;  %6264 = vpow2.f32 %v4607_v30 }
 0x53e   : > { %v4520_v32 = vmul.f32 2.0, %v6251_v44  ;;  %6266 = vrcp.f32 %v4476_v39  ;;  %v6253_v0 = vpop.eup %6252  ;;  %v4642_v53 = vsel %vm4564_vm5, %v4626_v58, %v6251_v44 }
 0x53f   : > { %v4631_v5 = vmul.f32 %v6253_v0, %v8141_v3 }
 0x540   : > { %v4552_v49 = vadd.f32 %v4536_v28, %v4520_v32 }
 0x542   : > { %v6255_v13 = vpop.eup %6254  ;;  %v4663_v56 = vsel %vm4653_vm8, %v4552_v49, %v4642_v53 }
 0x543   : > { %v4525_v33 = vmul.f32 2.0, %v6255_v13  ;;  %v6257_v17 = vpop.eup %6256  ;;  %4679 = vst [vmem:[%s8170_s29 + $0x48] sm:$0xff] %v4663_v56  ;;  %v4647_v47 = vsel %vm4564_vm5, %v4631_v5, %v6255_v13 }
 0x544   : > { %v6259_v9 = vpop.eup %6258  ;;  %v4629_v27 = vmul.f32 %v6257_v17, %v8141_v3 }
 0x545   : > { %v4557_v55 = vadd.f32 %v4541_v46, %v4525_v33  ;;  %v6261_v16 = vpop.eup %6260  ;;  %v4523_v54 = vmul.f32 2.0, %v6259_v9 }
 0x546   : > { %v6263_v52 = vpop.eup %6262  ;;  %v4645_v8 = vsel %vm4564_vm5, %v4629_v27, %v6259_v9  ;;  %v4632_v6 = vmul.f32 %v6261_v16, %v8141_v3 }
 0x547   : > { %v4668_v41 = vsel %vm4653_vm8, %v4557_v55, %v4647_v47  ;;  %v6265_v59 = vpop.eup %6264  ;;  %v4555_v12 = vadd.f32 %v4539_v45, %v4523_v54  ;;  %v4526_v51 = vmul.f32 2.0, %v6263_v52 }
 0x548   : > { %4684 = vst [vmem:[%s8170_s29 + $0x70] sm:$0xff] %v4668_v41  ;;  %v6267_v10 = vpop.eup %6266  ;;  %v4648_v22 = vsel %vm4564_vm5, %v4632_v6, %v6263_v52  ;;  %v4630_v25 = vmul.f32 %v6265_v59, %v8141_v3 }
 0x549   : > { %v4666_v42 = vsel %vm4653_vm8, %v4555_v12, %v4645_v8  ;;  %v4558_v26 = vadd.f32 %v4542_v29, %v4526_v51  ;;  %v4524_v23 = vmul.f32 2.0, %v6267_v10 }
 0x54a   : > { %4682 = vst [vmem:[%s8170_s29 + $0x60] sm:$0xff] %v4666_v42  ;;  %v4646_v2 = vsel %vm4564_vm5, %v4630_v25, %v6267_v10 }
 0x54b   : > { %v4669_v18 = vsel %vm4653_vm8, %v4558_v26, %v4648_v22  ;;  %v4556_v35 = vadd.f32 %v4540_v43, %v4524_v23 }
 0x54c   : > { %4685 = vst [vmem:[%s8170_s29 + $0x78] sm:$0xff] %v4669_v18 }
 0x54d   : > { %v4667_v62 = vsel %vm4653_vm8, %v4556_v35, %v4646_v2 }
 0x54e   : > { %4683 = vst [vmem:[%s8170_s29 + $0x68] sm:$0xff] %v4667_v62 }
 0x54f PF: > { %s18_s27 = sadd.s32 1, %s6278_s27  }
 0x550   : > { %p15_p4 = scmp.ge.s32.totalorder %s18_s27, 4  }
 0x552   :  { %17 = sbr.rel (!%p15_p4) target bundleno = 1 (0x1), region = 90 }

</bundles_post_ra>
